<compile_context>
chip_gen: v6e
topology: v6e:2x2x1
jax: 0.10.0
libtpu: 0.0.40
codegen_flags: <defaults>
</compile_context>

<pallas_src>
import jax
import jax.numpy as jnp
import numpy as np
from jax import lax
from jax.experimental import pallas as pl
from jax.experimental.pallas import tpu as pltpu

_LANE = 128
_TAPS = tuple((dy, dx) for dy in range(3) for dx in range(3))


def _round_up(n, m):
    return ((n + m - 1) // m) * m


def _pick_batch_tile(batch, hw):
    """Largest divisor of `batch` with Bt*hw <= 4096 (amortize step overhead)."""
    best = 1
    for d in range(1, batch + 1):
        if batch % d == 0 and d * hw <= 4096:
            best = d
    return best


def _down_kernel(x_ref, w1_ref, w2_ref, o_ref, pad1_ref, pad2_ref):
    # x_ref : (4, Bt, hh, wh, c_in_p)  -- the 4 corners of every 2x2 pool window
    # w1_ref: (9, c_in_p, c_mid_p)     -- tap-major conv1 weights (zero padded)
    # w2_ref: (9, c_mid_p, c_out_p)
    # o_ref : (Bt*hh*wh, c_out_p)      -- lane-dense output slab
    _, bt, hh, wh, c_in_p = x_ref.shape
    c_mid_p = w1_ref.shape[2]
    m = bt * hh * wh
    f32 = jnp.float32

    # ---- MaxPool2d(2): elementwise max of 4 contiguous corner planes (VPU).
    pooled = jnp.maximum(jnp.maximum(x_ref[0], x_ref[1]),
                         jnp.maximum(x_ref[2], x_ref[3])).astype(f32)

    # ---- conv1 (3x3, pad=1, no bias) + ReLU: 9 shifted-view matmuls
    # accumulated in f32.  Only the 1-px border of the pad scratch is zeroed
    # (the interior is fully overwritten every step -> correct under megacore).
    pad1_ref[:, 0:1, :, :] = jnp.zeros((bt, 1, wh + 2, c_in_p), f32)
    pad1_ref[:, hh + 1:hh + 2, :, :] = jnp.zeros((bt, 1, wh + 2, c_in_p), f32)
    pad1_ref[:, :, 0:1, :] = jnp.zeros((bt, hh + 2, 1, c_in_p), f32)
    pad1_ref[:, :, wh + 1:wh + 2, :] = jnp.zeros((bt, hh + 2, 1, c_in_p), f32)
    pad1_ref[:, 1:hh + 1, 1:wh + 1, :] = pooled

    acc1 = jnp.zeros((m, c_mid_p), f32)
    for t, (dy, dx) in enumerate(_TAPS):
        a = pad1_ref[:, dy:dy + hh, dx:dx + wh, :].reshape(m, c_in_p)
        acc1 = acc1 + jnp.dot(a, w1_ref[t], preferred_element_type=f32)
    h1 = jnp.maximum(acc1, 0.0)

    # ---- conv2 (3x3, pad=1, no bias) + ReLU.
    pad2_ref[:, 0:1, :, :] = jnp.zeros((bt, 1, wh + 2, c_mid_p), f32)
    pad2_ref[:, hh + 1:hh + 2, :, :] = jnp.zeros((bt, 1, wh + 2, c_mid_p), f32)
    pad2_ref[:, :, 0:1, :] = jnp.zeros((bt, hh + 2, 1, c_mid_p), f32)
    pad2_ref[:, :, wh + 1:wh + 2, :] = jnp.zeros((bt, hh + 2, 1, c_mid_p), f32)
    pad2_ref[:, 1:hh + 1, 1:wh + 1, :] = h1.reshape(bt, hh, wh, c_mid_p)

    acc2 = jnp.zeros((m, o_ref.shape[1]), f32)
    for t, (dy, dx) in enumerate(_TAPS):
        a = pad2_ref[:, dy:dy + hh, dx:dx + wh, :].reshape(m, c_mid_p)
        acc2 = acc2 + jnp.dot(a, w2_ref[t], preferred_element_type=f32)
    o_ref[...] = jnp.maximum(acc2, 0.0).astype(o_ref.dtype)


@jax.jit
def down_forward(x_nchw, w1_oihw, w2_oihw):
    """Down.forward: x (B, C_in, H, W) -> (B, C_out, H//2, W//2)."""
    B, c_in, H, W = x_nchw.shape
    c_mid = w1_oihw.shape[0]
    c_out = w2_oihw.shape[0]
    assert H % 2 == 0 and W % 2 == 0, "MaxPool2d(2) path assumes even H, W"
    hh, wh = H // 2, W // 2

    c_in_p = _round_up(c_in, _LANE)
    c_mid_p = _round_up(c_mid, _LANE)
    c_out_p = _round_up(c_out, _LANE)

    bt = _pick_batch_tile(B, hh * wh)
    m = bt * hh * wh
    assert bt == B or m % 8 == 0

    # Split each 2x2 pool window into 4 corner planes, channels last and
    # zero-padded to a full 128-lane width (one XLA transpose + pad; pure
    # layout plumbing so the kernel never does strided/masked accesses).
    x6 = x_nchw.reshape(B, c_in, hh, 2, wh, 2).transpose(3, 5, 0, 2, 4, 1)
    x5 = x6.reshape(4, B, hh, wh, c_in)
    x5 = jnp.pad(x5, ((0, 0),) * 4 + ((0, c_in_p - c_in),)).astype(jnp.float32)

    # Tap-major conv weights: (co, ci, ky, kx) -> (ky*kx, ci_p, co_p), zero pad.
    def prep_w(w, ci, ci_p, co, co_p):
        wt = jnp.transpose(w, (2, 3, 1, 0))                       # (3,3,ci,co)
        wt = jnp.pad(wt, ((0, 0), (0, 0), (0, ci_p - ci), (0, co_p - co)))
        return wt.reshape(9, ci_p, co_p).astype(jnp.float32)

    w1 = prep_w(w1_oihw, c_in, c_in_p, c_mid, c_mid_p)
    w2 = prep_w(w2_oihw, c_mid, c_mid_p, c_out, c_out_p)

    out = pl.pallas_call(
        _down_kernel,
        out_shape=jax.ShapeDtypeStruct((B * hh * wh, c_out_p), jnp.float32),
        grid_spec=pltpu.PrefetchScalarGridSpec(
            num_scalar_prefetch=0,
            grid=(B // bt,),
            in_specs=[
                pl.BlockSpec((4, bt, hh, wh, c_in_p),
                             lambda g: (0, g, 0, 0, 0)),
                pl.BlockSpec((9, c_in_p, c_mid_p), lambda g: (0, 0, 0)),
                pl.BlockSpec((9, c_mid_p, c_out_p), lambda g: (0, 0, 0)),
            ],
            out_specs=pl.BlockSpec((m, c_out_p), lambda g: (g, 0)),
            scratch_shapes=[
                pltpu.VMEM((bt, hh + 2, wh + 2, c_in_p), jnp.float32),   # pad1
                pltpu.VMEM((bt, hh + 2, wh + 2, c_mid_p), jnp.float32),  # pad2
            ],
        ),
        compiler_params=pltpu.CompilerParams(
            dimension_semantics=("parallel",),
            vmem_limit_bytes=32 * 1024 * 1024,   # conservative: v7x-safe
        ),
    )(x5, w1, w2)                                 # (B*hh*wh, c_out_p)

    # Lane-dense slab -> NCHW, dropping the channel padding.
    out = out.reshape(B, hh, wh, c_out_p)[..., :c_out]
    return out.transpose(0, 3, 1, 2).astype(x_nchw.dtype)


def down_reference(x, w1, w2):
    """Pure-JAX reference mirroring the PyTorch forward (NCHW)."""
    dn = ("NCHW", "OIHW", "NCHW")
    p = lax.reduce_window(x, -jnp.inf, lax.max,
                          (1, 1, 2, 2), (1, 1, 2, 2), "VALID")
    y = lax.conv_general_dilated(p, w1, (1, 1), "SAME", dimension_numbers=dn)
    y = jnp.maximum(y, 0.0)
    y = lax.conv_general_dilated(y, w2, (1, 1), "SAME", dimension_numbers=dn)
    return jnp.maximum(y, 0.0)


if __name__ == "__main__":
    # Down(in_channels=4, mid_channels=8, out_channels=8, level=1,
    #      group_norm=(4, 4)) -> no bias, no GroupNorm layers.
    B, C_in, H, W = 2, 4, 16, 16
    C_mid, C_out = 8, 8

    key = jax.random.PRNGKey(0)
    k1, k2, k3 = jax.random.split(key, 3)
    x = jax.random.normal(k1, (B, C_in, H, W), jnp.float32)
    w1 = jax.random.normal(k2, (C_mid, C_in, 3, 3), jnp.float32) * 0.2
    w2 = jax.random.normal(k3, (C_out, C_mid, 3, 3), jnp.float32) * 0.2

    y = jax.block_until_ready(down_forward(x, w1, w2))
    assert y.shape == (B, C_out, H // 2, W // 2)

    y_ref = down_reference(x, w1, w2)
    np.testing.assert_allclose(np.asarray(y), np.asarray(y_ref),
                               rtol=1e-4, atol=1e-4)
    print("KERNEL_OK")
</pallas_src>

<mosaic_0001>
module attributes {stable_mosaic.version = 11 : i64} {
  func.func @_down_kernel(%arg0: i32, %arg1: memref<4x2x8x8x128xf32, #tpu.memory_space<vmem>>, %arg2: memref<9x128x128xf32, #tpu.memory_space<vmem>>, %arg3: memref<9x128x128xf32, #tpu.memory_space<vmem>>, %arg4: memref<128x128xf32, #tpu.memory_space<vmem>>, %arg5: memref<2x10x10x128xf32, #tpu.memory_space<vmem>>, %arg6: memref<2x10x10x128xf32, #tpu.memory_space<vmem>>) attributes {dimension_semantics = [#tpu.dimension_semantics<parallel>], iteration_bounds = array<i64: 1>, scalar_prefetch = 0 : i64, scratch_operands = 2 : i64, tpu.core_type = #tpu.core_type<tc>, window_params = [{transform_indices = @transform_0, window_bounds = array<i64: 4, 2, 8, 8, 128>}, {pipeline_mode = #tpu.pipeline_mode<synchronous>, transform_indices = @transform_1, window_bounds = array<i64: 9, 128, 128>}, {pipeline_mode = #tpu.pipeline_mode<synchronous>, transform_indices = @transform_2, window_bounds = array<i64: 9, 128, 128>}, {transform_indices = @transform_3, window_bounds = array<i64: 128, 128>}]} {
    %c0 = arith.constant 0 : index
    %c0_0 = arith.constant 0 : index
    %c0_1 = arith.constant 0 : index
    %c0_2 = arith.constant 0 : index
    %c0_3 = arith.constant 0 : index
    %0 = vector.load %arg1[%c0, %c0_0, %c0_1, %c0_2, %c0_3] : memref<4x2x8x8x128xf32, #tpu.memory_space<vmem>>, vector<1x2x8x8x128xf32>
    %1 = vector.shape_cast %0 : vector<1x2x8x8x128xf32> to vector<2x8x8x128xf32>
    %c1 = arith.constant 1 : index
    %c0_4 = arith.constant 0 : index
    %c0_5 = arith.constant 0 : index
    %c0_6 = arith.constant 0 : index
    %c0_7 = arith.constant 0 : index
    %2 = vector.load %arg1[%c1, %c0_4, %c0_5, %c0_6, %c0_7] : memref<4x2x8x8x128xf32, #tpu.memory_space<vmem>>, vector<1x2x8x8x128xf32>
    %3 = vector.shape_cast %2 : vector<1x2x8x8x128xf32> to vector<2x8x8x128xf32>
    %4 = arith.maximumf %1, %3 : vector<2x8x8x128xf32>
    %c2 = arith.constant 2 : index
    %c0_8 = arith.constant 0 : index
    %c0_9 = arith.constant 0 : index
    %c0_10 = arith.constant 0 : index
    %c0_11 = arith.constant 0 : index
    %5 = vector.load %arg1[%c2, %c0_8, %c0_9, %c0_10, %c0_11] : memref<4x2x8x8x128xf32, #tpu.memory_space<vmem>>, vector<1x2x8x8x128xf32>
    %6 = vector.shape_cast %5 : vector<1x2x8x8x128xf32> to vector<2x8x8x128xf32>
    %c3 = arith.constant 3 : index
    %c0_12 = arith.constant 0 : index
    %c0_13 = arith.constant 0 : index
    %c0_14 = arith.constant 0 : index
    %c0_15 = arith.constant 0 : index
    %7 = vector.load %arg1[%c3, %c0_12, %c0_13, %c0_14, %c0_15] : memref<4x2x8x8x128xf32, #tpu.memory_space<vmem>>, vector<1x2x8x8x128xf32>
    %8 = vector.shape_cast %7 : vector<1x2x8x8x128xf32> to vector<2x8x8x128xf32>
    %9 = arith.maximumf %6, %8 : vector<2x8x8x128xf32>
    %10 = arith.maximumf %4, %9 : vector<2x8x8x128xf32>
    %cst = arith.constant 0.000000e+00 : f32
    %11 = vector.broadcast %cst : f32 to vector<2x1x10x128xf32>
    %c0_16 = arith.constant 0 : index
    %c0_17 = arith.constant 0 : index
    %c0_18 = arith.constant 0 : index
    %c0_19 = arith.constant 0 : index
    %12 = vector.load %arg5[%c0_16, %c0_17, %c0_18, %c0_19] : memref<2x10x10x128xf32, #tpu.memory_space<vmem>>, vector<2x1x10x128xf32>
    tpu.vector_store %arg5[%c0_16, %c0_17, %c0_18, %c0_19], %11 {strides = array<i32>} : memref<2x10x10x128xf32, #tpu.memory_space<vmem>>, vector<2x1x10x128xf32>,
    %cst_20 = arith.constant 0.000000e+00 : f32
    %13 = vector.broadcast %cst_20 : f32 to vector<2x1x10x128xf32>
    %c0_21 = arith.constant 0 : index
    %c9 = arith.constant 9 : index
    %c0_22 = arith.constant 0 : index
    %c0_23 = arith.constant 0 : index
    %14 = vector.load %arg5[%c0_21, %c9, %c0_22, %c0_23] : memref<2x10x10x128xf32, #tpu.memory_space<vmem>>, vector<2x1x10x128xf32>
    tpu.vector_store %arg5[%c0_21, %c9, %c0_22, %c0_23], %13 {strides = array<i32>} : memref<2x10x10x128xf32, #tpu.memory_space<vmem>>, vector<2x1x10x128xf32>,
    %cst_24 = arith.constant 0.000000e+00 : f32
    %15 = vector.broadcast %cst_24 : f32 to vector<2x10x1x128xf32>
    %c0_25 = arith.constant 0 : index
    %c0_26 = arith.constant 0 : index
    %c0_27 = arith.constant 0 : index
    %c0_28 = arith.constant 0 : index
    %16 = vector.load %arg5[%c0_25, %c0_26, %c0_27, %c0_28] : memref<2x10x10x128xf32, #tpu.memory_space<vmem>>, vector<2x10x1x128xf32>
    tpu.vector_store %arg5[%c0_25, %c0_26, %c0_27, %c0_28], %15 {strides = array<i32>} : memref<2x10x10x128xf32, #tpu.memory_space<vmem>>, vector<2x10x1x128xf32>,
    %cst_29 = arith.constant 0.000000e+00 : f32
    %17 = vector.broadcast %cst_29 : f32 to vector<2x10x1x128xf32>
    %c0_30 = arith.constant 0 : index
    %c0_31 = arith.constant 0 : index
    %c9_32 = arith.constant 9 : index
    %c0_33 = arith.constant 0 : index
    %18 = vector.load %arg5[%c0_30, %c0_31, %c9_32, %c0_33] : memref<2x10x10x128xf32, #tpu.memory_space<vmem>>, vector<2x10x1x128xf32>
    tpu.vector_store %arg5[%c0_30, %c0_31, %c9_32, %c0_33], %17 {strides = array<i32>} : memref<2x10x10x128xf32, #tpu.memory_space<vmem>>, vector<2x10x1x128xf32>,
    %c0_34 = arith.constant 0 : index
    %c1_35 = arith.constant 1 : index
    %c1_36 = arith.constant 1 : index
    %c0_37 = arith.constant 0 : index
    %19 = vector.load %arg5[%c0_34, %c1_35, %c1_36, %c0_37] : memref<2x10x10x128xf32, #tpu.memory_space<vmem>>, vector<2x8x8x128xf32>
    tpu.vector_store %arg5[%c0_34, %c1_35, %c1_36, %c0_37], %10 {strides = array<i32>} : memref<2x10x10x128xf32, #tpu.memory_space<vmem>>, vector<2x8x8x128xf32>,
    %cst_38 = arith.constant 0.000000e+00 : f32
    %20 = vector.broadcast %cst_38 : f32 to vector<128x128xf32>
    %c0_39 = arith.constant 0 : index
    %c0_40 = arith.constant 0 : index
    %c0_41 = arith.constant 0 : index
    %c0_42 = arith.constant 0 : index
    %21 = vector.load %arg5[%c0_39, %c0_40, %c0_41, %c0_42] : memref<2x10x10x128xf32, #tpu.memory_space<vmem>>, vector<2x8x8x128xf32>
    %22 = vector.shape_cast %21 : vector<2x8x8x128xf32> to vector<128x128xf32>
    %c0_43 = arith.constant 0 : index
    %c0_44 = arith.constant 0 : index
    %c0_45 = arith.constant 0 : index
    %23 = vector.load %arg2[%c0_43, %c0_44, %c0_45] : memref<9x128x128xf32, #tpu.memory_space<vmem>>, vector<1x128x128xf32>
    %24 = vector.shape_cast %23 : vector<1x128x128xf32> to vector<128x128xf32>
    %cst_46 = arith.constant dense<0.000000e+00> : vector<128x128xf32>
    %25 = tpu.matmul %22, %24, %cst_46 {dimension_numbers = #tpu.dot_dimension_numbers<[1], [0], [0], [1], [0, 0, 1, 1], [], []>} : vector<128x128xf32>, vector<128x128xf32>, vector<128x128xf32> -> vector<128x128xf32>
    %26 = arith.addf %20, %25 : vector<128x128xf32>
    %c0_47 = arith.constant 0 : index
    %c0_48 = arith.constant 0 : index
    %c1_49 = arith.constant 1 : index
    %c0_50 = arith.constant 0 : index
    %27 = vector.load %arg5[%c0_47, %c0_48, %c1_49, %c0_50] : memref<2x10x10x128xf32, #tpu.memory_space<vmem>>, vector<2x8x8x128xf32>
    %28 = vector.shape_cast %27 : vector<2x8x8x128xf32> to vector<128x128xf32>
    %c1_51 = arith.constant 1 : index
    %c0_52 = arith.constant 0 : index
    %c0_53 = arith.constant 0 : index
    %29 = vector.load %arg2[%c1_51, %c0_52, %c0_53] : memref<9x128x128xf32, #tpu.memory_space<vmem>>, vector<1x128x128xf32>
    %30 = vector.shape_cast %29 : vector<1x128x128xf32> to vector<128x128xf32>
    %cst_54 = arith.constant dense<0.000000e+00> : vector<128x128xf32>
    %31 = tpu.matmul %28, %30, %cst_54 {dimension_numbers = #tpu.dot_dimension_numbers<[1], [0], [0], [1], [0, 0, 1, 1], [], []>} : vector<128x128xf32>, vector<128x128xf32>, vector<128x128xf32> -> vector<128x128xf32>
    %32 = arith.addf %26, %31 : vector<128x128xf32>
    %c0_55 = arith.constant 0 : index
    %c0_56 = arith.constant 0 : index
    %c2_57 = arith.constant 2 : index
    %c0_58 = arith.constant 0 : index
    %33 = vector.load %arg5[%c0_55, %c0_56, %c2_57, %c0_58] : memref<2x10x10x128xf32, #tpu.memory_space<vmem>>, vector<2x8x8x128xf32>
    %34 = vector.shape_cast %33 : vector<2x8x8x128xf32> to vector<128x128xf32>
    %c2_59 = arith.constant 2 : index
    %c0_60 = arith.constant 0 : index
    %c0_61 = arith.constant 0 : index
    %35 = vector.load %arg2[%c2_59, %c0_60, %c0_61] : memref<9x128x128xf32, #tpu.memory_space<vmem>>, vector<1x128x128xf32>
    %36 = vector.shape_cast %35 : vector<1x128x128xf32> to vector<128x128xf32>
    %cst_62 = arith.constant dense<0.000000e+00> : vector<128x128xf32>
    %37 = tpu.matmul %34, %36, %cst_62 {dimension_numbers = #tpu.dot_dimension_numbers<[1], [0], [0], [1], [0, 0, 1, 1], [], []>} : vector<128x128xf32>, vector<128x128xf32>, vector<128x128xf32> -> vector<128x128xf32>
    %38 = arith.addf %32, %37 : vector<128x128xf32>
    %c0_63 = arith.constant 0 : index
    %c1_64 = arith.constant 1 : index
    %c0_65 = arith.constant 0 : index
    %c0_66 = arith.constant 0 : index
    %39 = vector.load %arg5[%c0_63, %c1_64, %c0_65, %c0_66] : memref<2x10x10x128xf32, #tpu.memory_space<vmem>>, vector<2x8x8x128xf32>
    %40 = vector.shape_cast %39 : vector<2x8x8x128xf32> to vector<128x128xf32>
    %c3_67 = arith.constant 3 : index
    %c0_68 = arith.constant 0 : index
    %c0_69 = arith.constant 0 : index
    %41 = vector.load %arg2[%c3_67, %c0_68, %c0_69] : memref<9x128x128xf32, #tpu.memory_space<vmem>>, vector<1x128x128xf32>
    %42 = vector.shape_cast %41 : vector<1x128x128xf32> to vector<128x128xf32>
    %cst_70 = arith.constant dense<0.000000e+00> : vector<128x128xf32>
    %43 = tpu.matmul %40, %42, %cst_70 {dimension_numbers = #tpu.dot_dimension_numbers<[1], [0], [0], [1], [0, 0, 1, 1], [], []>} : vector<128x128xf32>, vector<128x128xf32>, vector<128x128xf32> -> vector<128x128xf32>
    %44 = arith.addf %38, %43 : vector<128x128xf32>
    %c0_71 = arith.constant 0 : index
    %c1_72 = arith.constant 1 : index
    %c1_73 = arith.constant 1 : index
    %c0_74 = arith.constant 0 : index
    %45 = vector.load %arg5[%c0_71, %c1_72, %c1_73, %c0_74] : memref<2x10x10x128xf32, #tpu.memory_space<vmem>>, vector<2x8x8x128xf32>
    %46 = vector.shape_cast %45 : vector<2x8x8x128xf32> to vector<128x128xf32>
    %c4 = arith.constant 4 : index
    %c0_75 = arith.constant 0 : index
    %c0_76 = arith.constant 0 : index
    %47 = vector.load %arg2[%c4, %c0_75, %c0_76] : memref<9x128x128xf32, #tpu.memory_space<vmem>>, vector<1x128x128xf32>
    %48 = vector.shape_cast %47 : vector<1x128x128xf32> to vector<128x128xf32>
    %cst_77 = arith.constant dense<0.000000e+00> : vector<128x128xf32>
    %49 = tpu.matmul %46, %48, %cst_77 {dimension_numbers = #tpu.dot_dimension_numbers<[1], [0], [0], [1], [0, 0, 1, 1], [], []>} : vector<128x128xf32>, vector<128x128xf32>, vector<128x128xf32> -> vector<128x128xf32>
    %50 = arith.addf %44, %49 : vector<128x128xf32>
    %c0_78 = arith.constant 0 : index
    %c1_79 = arith.constant 1 : index
    %c2_80 = arith.constant 2 : index
    %c0_81 = arith.constant 0 : index
    %51 = vector.load %arg5[%c0_78, %c1_79, %c2_80, %c0_81] : memref<2x10x10x128xf32, #tpu.memory_space<vmem>>, vector<2x8x8x128xf32>
    %52 = vector.shape_cast %51 : vector<2x8x8x128xf32> to vector<128x128xf32>
    %c5 = arith.constant 5 : index
    %c0_82 = arith.constant 0 : index
    %c0_83 = arith.constant 0 : index
    %53 = vector.load %arg2[%c5, %c0_82, %c0_83] : memref<9x128x128xf32, #tpu.memory_space<vmem>>, vector<1x128x128xf32>
    %54 = vector.shape_cast %53 : vector<1x128x128xf32> to vector<128x128xf32>
    %cst_84 = arith.constant dense<0.000000e+00> : vector<128x128xf32>
    %55 = tpu.matmul %52, %54, %cst_84 {dimension_numbers = #tpu.dot_dimension_numbers<[1], [0], [0], [1], [0, 0, 1, 1], [], []>} : vector<128x128xf32>, vector<128x128xf32>, vector<128x128xf32> -> vector<128x128xf32>
    %56 = arith.addf %50, %55 : vector<128x128xf32>
    %c0_85 = arith.constant 0 : index
    %c2_86 = arith.constant 2 : index
    %c0_87 = arith.constant 0 : index
    %c0_88 = arith.constant 0 : index
    %57 = vector.load %arg5[%c0_85, %c2_86, %c0_87, %c0_88] : memref<2x10x10x128xf32, #tpu.memory_space<vmem>>, vector<2x8x8x128xf32>
    %58 = vector.shape_cast %57 : vector<2x8x8x128xf32> to vector<128x128xf32>
    %c6 = arith.constant 6 : index
    %c0_89 = arith.constant 0 : index
    %c0_90 = arith.constant 0 : index
    %59 = vector.load %arg2[%c6, %c0_89, %c0_90] : memref<9x128x128xf32, #tpu.memory_space<vmem>>, vector<1x128x128xf32>
    %60 = vector.shape_cast %59 : vector<1x128x128xf32> to vector<128x128xf32>
    %cst_91 = arith.constant dense<0.000000e+00> : vector<128x128xf32>
    %61 = tpu.matmul %58, %60, %cst_91 {dimension_numbers = #tpu.dot_dimension_numbers<[1], [0], [0], [1], [0, 0, 1, 1], [], []>} : vector<128x128xf32>, vector<128x128xf32>, vector<128x128xf32> -> vector<128x128xf32>
    %62 = arith.addf %56, %61 : vector<128x128xf32>
    %c0_92 = arith.constant 0 : index
    %c2_93 = arith.constant 2 : index
    %c1_94 = arith.constant 1 : index
    %c0_95 = arith.constant 0 : index
    %63 = vector.load %arg5[%c0_92, %c2_93, %c1_94, %c0_95] : memref<2x10x10x128xf32, #tpu.memory_space<vmem>>, vector<2x8x8x128xf32>
    %64 = vector.shape_cast %63 : vector<2x8x8x128xf32> to vector<128x128xf32>
    %c7 = arith.constant 7 : index
    %c0_96 = arith.constant 0 : index
    %c0_97 = arith.constant 0 : index
    %65 = vector.load %arg2[%c7, %c0_96, %c0_97] : memref<9x128x128xf32, #tpu.memory_space<vmem>>, vector<1x128x128xf32>
    %66 = vector.shape_cast %65 : vector<1x128x128xf32> to vector<128x128xf32>
    %cst_98 = arith.constant dense<0.000000e+00> : vector<128x128xf32>
    %67 = tpu.matmul %64, %66, %cst_98 {dimension_numbers = #tpu.dot_dimension_numbers<[1], [0], [0], [1], [0, 0, 1, 1], [], []>} : vector<128x128xf32>, vector<128x128xf32>, vector<128x128xf32> -> vector<128x128xf32>
    %68 = arith.addf %62, %67 : vector<128x128xf32>
    %c0_99 = arith.constant 0 : index
    %c2_100 = arith.constant 2 : index
    %c2_101 = arith.constant 2 : index
    %c0_102 = arith.constant 0 : index
    %69 = vector.load %arg5[%c0_99, %c2_100, %c2_101, %c0_102] : memref<2x10x10x128xf32, #tpu.memory_space<vmem>>, vector<2x8x8x128xf32>
    %70 = vector.shape_cast %69 : vector<2x8x8x128xf32> to vector<128x128xf32>
    %c8 = arith.constant 8 : index
    %c0_103 = arith.constant 0 : index
    %c0_104 = arith.constant 0 : index
    %71 = vector.load %arg2[%c8, %c0_103, %c0_104] : memref<9x128x128xf32, #tpu.memory_space<vmem>>, vector<1x128x128xf32>
    %72 = vector.shape_cast %71 : vector<1x128x128xf32> to vector<128x128xf32>
    %cst_105 = arith.constant dense<0.000000e+00> : vector<128x128xf32>
    %73 = tpu.matmul %70, %72, %cst_105 {dimension_numbers = #tpu.dot_dimension_numbers<[1], [0], [0], [1], [0, 0, 1, 1], [], []>} : vector<128x128xf32>, vector<128x128xf32>, vector<128x128xf32> -> vector<128x128xf32>
    %74 = arith.addf %68, %73 : vector<128x128xf32>
    %cst_106 = arith.constant 0.000000e+00 : f32
    %75 = vector.broadcast %cst_106 : f32 to vector<128x128xf32>
    %76 = arith.maximumf %74, %75 : vector<128x128xf32>
    %cst_107 = arith.constant 0.000000e+00 : f32
    %77 = vector.broadcast %cst_107 : f32 to vector<2x1x10x128xf32>
    %c0_108 = arith.constant 0 : index
    %c0_109 = arith.constant 0 : index
    %c0_110 = arith.constant 0 : index
    %c0_111 = arith.constant 0 : index
    %78 = vector.load %arg6[%c0_108, %c0_109, %c0_110, %c0_111] : memref<2x10x10x128xf32, #tpu.memory_space<vmem>>, vector<2x1x10x128xf32>
    tpu.vector_store %arg6[%c0_108, %c0_109, %c0_110, %c0_111], %77 {strides = array<i32>} : memref<2x10x10x128xf32, #tpu.memory_space<vmem>>, vector<2x1x10x128xf32>,
    %cst_112 = arith.constant 0.000000e+00 : f32
    %79 = vector.broadcast %cst_112 : f32 to vector<2x1x10x128xf32>
    %c0_113 = arith.constant 0 : index
    %c9_114 = arith.constant 9 : index
    %c0_115 = arith.constant 0 : index
    %c0_116 = arith.constant 0 : index
    %80 = vector.load %arg6[%c0_113, %c9_114, %c0_115, %c0_116] : memref<2x10x10x128xf32, #tpu.memory_space<vmem>>, vector<2x1x10x128xf32>
    tpu.vector_store %arg6[%c0_113, %c9_114, %c0_115, %c0_116], %79 {strides = array<i32>} : memref<2x10x10x128xf32, #tpu.memory_space<vmem>>, vector<2x1x10x128xf32>,
    %cst_117 = arith.constant 0.000000e+00 : f32
    %81 = vector.broadcast %cst_117 : f32 to vector<2x10x1x128xf32>
    %c0_118 = arith.constant 0 : index
    %c0_119 = arith.constant 0 : index
    %c0_120 = arith.constant 0 : index
    %c0_121 = arith.constant 0 : index
    %82 = vector.load %arg6[%c0_118, %c0_119, %c0_120, %c0_121] : memref<2x10x10x128xf32, #tpu.memory_space<vmem>>, vector<2x10x1x128xf32>
    tpu.vector_store %arg6[%c0_118, %c0_119, %c0_120, %c0_121], %81 {strides = array<i32>} : memref<2x10x10x128xf32, #tpu.memory_space<vmem>>, vector<2x10x1x128xf32>,
    %cst_122 = arith.constant 0.000000e+00 : f32
    %83 = vector.broadcast %cst_122 : f32 to vector<2x10x1x128xf32>
    %c0_123 = arith.constant 0 : index
    %c0_124 = arith.constant 0 : index
    %c9_125 = arith.constant 9 : index
    %c0_126 = arith.constant 0 : index
    %84 = vector.load %arg6[%c0_123, %c0_124, %c9_125, %c0_126] : memref<2x10x10x128xf32, #tpu.memory_space<vmem>>, vector<2x10x1x128xf32>
    tpu.vector_store %arg6[%c0_123, %c0_124, %c9_125, %c0_126], %83 {strides = array<i32>} : memref<2x10x10x128xf32, #tpu.memory_space<vmem>>, vector<2x10x1x128xf32>,
    %85 = vector.shape_cast %76 : vector<128x128xf32> to vector<2x8x8x128xf32>
    %c0_127 = arith.constant 0 : index
    %c1_128 = arith.constant 1 : index
    %c1_129 = arith.constant 1 : index
    %c0_130 = arith.constant 0 : index
    %86 = vector.load %arg6[%c0_127, %c1_128, %c1_129, %c0_130] : memref<2x10x10x128xf32, #tpu.memory_space<vmem>>, vector<2x8x8x128xf32>
    tpu.vector_store %arg6[%c0_127, %c1_128, %c1_129, %c0_130], %85 {strides = array<i32>} : memref<2x10x10x128xf32, #tpu.memory_space<vmem>>, vector<2x8x8x128xf32>,
    %cst_131 = arith.constant 0.000000e+00 : f32
    %87 = vector.broadcast %cst_131 : f32 to vector<128x128xf32>
    %c0_132 = arith.constant 0 : index
    %c0_133 = arith.constant 0 : index
    %c0_134 = arith.constant 0 : index
    %c0_135 = arith.constant 0 : index
    %88 = vector.load %arg6[%c0_132, %c0_133, %c0_134, %c0_135] : memref<2x10x10x128xf32, #tpu.memory_space<vmem>>, vector<2x8x8x128xf32>
    %89 = vector.shape_cast %88 : vector<2x8x8x128xf32> to vector<128x128xf32>
    %c0_136 = arith.constant 0 : index
    %c0_137 = arith.constant 0 : index
    %c0_138 = arith.constant 0 : index
    %90 = vector.load %arg3[%c0_136, %c0_137, %c0_138] : memref<9x128x128xf32, #tpu.memory_space<vmem>>, vector<1x128x128xf32>
    %91 = vector.shape_cast %90 : vector<1x128x128xf32> to vector<128x128xf32>
    %cst_139 = arith.constant dense<0.000000e+00> : vector<128x128xf32>
    %92 = tpu.matmul %89, %91, %cst_139 {dimension_numbers = #tpu.dot_dimension_numbers<[1], [0], [0], [1], [0, 0, 1, 1], [], []>} : vector<128x128xf32>, vector<128x128xf32>, vector<128x128xf32> -> vector<128x128xf32>
    %93 = arith.addf %87, %92 : vector<128x128xf32>
    %c0_140 = arith.constant 0 : index
    %c0_141 = arith.constant 0 : index
    %c1_142 = arith.constant 1 : index
    %c0_143 = arith.constant 0 : index
    %94 = vector.load %arg6[%c0_140, %c0_141, %c1_142, %c0_143] : memref<2x10x10x128xf32, #tpu.memory_space<vmem>>, vector<2x8x8x128xf32>
    %95 = vector.shape_cast %94 : vector<2x8x8x128xf32> to vector<128x128xf32>
    %c1_144 = arith.constant 1 : index
    %c0_145 = arith.constant 0 : index
    %c0_146 = arith.constant 0 : index
    %96 = vector.load %arg3[%c1_144, %c0_145, %c0_146] : memref<9x128x128xf32, #tpu.memory_space<vmem>>, vector<1x128x128xf32>
    %97 = vector.shape_cast %96 : vector<1x128x128xf32> to vector<128x128xf32>
    %cst_147 = arith.constant dense<0.000000e+00> : vector<128x128xf32>
    %98 = tpu.matmul %95, %97, %cst_147 {dimension_numbers = #tpu.dot_dimension_numbers<[1], [0], [0], [1], [0, 0, 1, 1], [], []>} : vector<128x128xf32>, vector<128x128xf32>, vector<128x128xf32> -> vector<128x128xf32>
    %99 = arith.addf %93, %98 : vector<128x128xf32>
    %c0_148 = arith.constant 0 : index
    %c0_149 = arith.constant 0 : index
    %c2_150 = arith.constant 2 : index
    %c0_151 = arith.constant 0 : index
    %100 = vector.load %arg6[%c0_148, %c0_149, %c2_150, %c0_151] : memref<2x10x10x128xf32, #tpu.memory_space<vmem>>, vector<2x8x8x128xf32>
    %101 = vector.shape_cast %100 : vector<2x8x8x128xf32> to vector<128x128xf32>
    %c2_152 = arith.constant 2 : index
    %c0_153 = arith.constant 0 : index
    %c0_154 = arith.constant 0 : index
    %102 = vector.load %arg3[%c2_152, %c0_153, %c0_154] : memref<9x128x128xf32, #tpu.memory_space<vmem>>, vector<1x128x128xf32>
    %103 = vector.shape_cast %102 : vector<1x128x128xf32> to vector<128x128xf32>
    %cst_155 = arith.constant dense<0.000000e+00> : vector<128x128xf32>
    %104 = tpu.matmul %101, %103, %cst_155 {dimension_numbers = #tpu.dot_dimension_numbers<[1], [0], [0], [1], [0, 0, 1, 1], [], []>} : vector<128x128xf32>, vector<128x128xf32>, vector<128x128xf32> -> vector<128x128xf32>
    %105 = arith.addf %99, %104 : vector<128x128xf32>
    %c0_156 = arith.constant 0 : index
    %c1_157 = arith.constant 1 : index
    %c0_158 = arith.constant 0 : index
    %c0_159 = arith.constant 0 : index
    %106 = vector.load %arg6[%c0_156, %c1_157, %c0_158, %c0_159] : memref<2x10x10x128xf32, #tpu.memory_space<vmem>>, vector<2x8x8x128xf32>
    %107 = vector.shape_cast %106 : vector<2x8x8x128xf32> to vector<128x128xf32>
    %c3_160 = arith.constant 3 : index
    %c0_161 = arith.constant 0 : index
    %c0_162 = arith.constant 0 : index
    %108 = vector.load %arg3[%c3_160, %c0_161, %c0_162] : memref<9x128x128xf32, #tpu.memory_space<vmem>>, vector<1x128x128xf32>
    %109 = vector.shape_cast %108 : vector<1x128x128xf32> to vector<128x128xf32>
    %cst_163 = arith.constant dense<0.000000e+00> : vector<128x128xf32>
    %110 = tpu.matmul %107, %109, %cst_163 {dimension_numbers = #tpu.dot_dimension_numbers<[1], [0], [0], [1], [0, 0, 1, 1], [], []>} : vector<128x128xf32>, vector<128x128xf32>, vector<128x128xf32> -> vector<128x128xf32>
    %111 = arith.addf %105, %110 : vector<128x128xf32>
    %c0_164 = arith.constant 0 : index
    %c1_165 = arith.constant 1 : index
    %c1_166 = arith.constant 1 : index
    %c0_167 = arith.constant 0 : index
    %112 = vector.load %arg6[%c0_164, %c1_165, %c1_166, %c0_167] : memref<2x10x10x128xf32, #tpu.memory_space<vmem>>, vector<2x8x8x128xf32>
    %113 = vector.shape_cast %112 : vector<2x8x8x128xf32> to vector<128x128xf32>
    %c4_168 = arith.constant 4 : index
    %c0_169 = arith.constant 0 : index
    %c0_170 = arith.constant 0 : index
    %114 = vector.load %arg3[%c4_168, %c0_169, %c0_170] : memref<9x128x128xf32, #tpu.memory_space<vmem>>, vector<1x128x128xf32>
    %115 = vector.shape_cast %114 : vector<1x128x128xf32> to vector<128x128xf32>
    %cst_171 = arith.constant dense<0.000000e+00> : vector<128x128xf32>
    %116 = tpu.matmul %113, %115, %cst_171 {dimension_numbers = #tpu.dot_dimension_numbers<[1], [0], [0], [1], [0, 0, 1, 1], [], []>} : vector<128x128xf32>, vector<128x128xf32>, vector<128x128xf32> -> vector<128x128xf32>
    %117 = arith.addf %111, %116 : vector<128x128xf32>
    %c0_172 = arith.constant 0 : index
    %c1_173 = arith.constant 1 : index
    %c2_174 = arith.constant 2 : index
    %c0_175 = arith.constant 0 : index
    %118 = vector.load %arg6[%c0_172, %c1_173, %c2_174, %c0_175] : memref<2x10x10x128xf32, #tpu.memory_space<vmem>>, vector<2x8x8x128xf32>
    %119 = vector.shape_cast %118 : vector<2x8x8x128xf32> to vector<128x128xf32>
    %c5_176 = arith.constant 5 : index
    %c0_177 = arith.constant 0 : index
    %c0_178 = arith.constant 0 : index
    %120 = vector.load %arg3[%c5_176, %c0_177, %c0_178] : memref<9x128x128xf32, #tpu.memory_space<vmem>>, vector<1x128x128xf32>
    %121 = vector.shape_cast %120 : vector<1x128x128xf32> to vector<128x128xf32>
    %cst_179 = arith.constant dense<0.000000e+00> : vector<128x128xf32>
    %122 = tpu.matmul %119, %121, %cst_179 {dimension_numbers = #tpu.dot_dimension_numbers<[1], [0], [0], [1], [0, 0, 1, 1], [], []>} : vector<128x128xf32>, vector<128x128xf32>, vector<128x128xf32> -> vector<128x128xf32>
    %123 = arith.addf %117, %122 : vector<128x128xf32>
    %c0_180 = arith.constant 0 : index
    %c2_181 = arith.constant 2 : index
    %c0_182 = arith.constant 0 : index
    %c0_183 = arith.constant 0 : index
    %124 = vector.load %arg6[%c0_180, %c2_181, %c0_182, %c0_183] : memref<2x10x10x128xf32, #tpu.memory_space<vmem>>, vector<2x8x8x128xf32>
    %125 = vector.shape_cast %124 : vector<2x8x8x128xf32> to vector<128x128xf32>
    %c6_184 = arith.constant 6 : index
    %c0_185 = arith.constant 0 : index
    %c0_186 = arith.constant 0 : index
    %126 = vector.load %arg3[%c6_184, %c0_185, %c0_186] : memref<9x128x128xf32, #tpu.memory_space<vmem>>, vector<1x128x128xf32>
    %127 = vector.shape_cast %126 : vector<1x128x128xf32> to vector<128x128xf32>
    %cst_187 = arith.constant dense<0.000000e+00> : vector<128x128xf32>
    %128 = tpu.matmul %125, %127, %cst_187 {dimension_numbers = #tpu.dot_dimension_numbers<[1], [0], [0], [1], [0, 0, 1, 1], [], []>} : vector<128x128xf32>, vector<128x128xf32>, vector<128x128xf32> -> vector<128x128xf32>
    %129 = arith.addf %123, %128 : vector<128x128xf32>
    %c0_188 = arith.constant 0 : index
    %c2_189 = arith.constant 2 : index
    %c1_190 = arith.constant 1 : index
    %c0_191 = arith.constant 0 : index
    %130 = vector.load %arg6[%c0_188, %c2_189, %c1_190, %c0_191] : memref<2x10x10x128xf32, #tpu.memory_space<vmem>>, vector<2x8x8x128xf32>
    %131 = vector.shape_cast %130 : vector<2x8x8x128xf32> to vector<128x128xf32>
    %c7_192 = arith.constant 7 : index
    %c0_193 = arith.constant 0 : index
    %c0_194 = arith.constant 0 : index
    %132 = vector.load %arg3[%c7_192, %c0_193, %c0_194] : memref<9x128x128xf32, #tpu.memory_space<vmem>>, vector<1x128x128xf32>
    %133 = vector.shape_cast %132 : vector<1x128x128xf32> to vector<128x128xf32>
    %cst_195 = arith.constant dense<0.000000e+00> : vector<128x128xf32>
    %134 = tpu.matmul %131, %133, %cst_195 {dimension_numbers = #tpu.dot_dimension_numbers<[1], [0], [0], [1], [0, 0, 1, 1], [], []>} : vector<128x128xf32>, vector<128x128xf32>, vector<128x128xf32> -> vector<128x128xf32>
    %135 = arith.addf %129, %134 : vector<128x128xf32>
    %c0_196 = arith.constant 0 : index
    %c2_197 = arith.constant 2 : index
    %c2_198 = arith.constant 2 : index
    %c0_199 = arith.constant 0 : index
    %136 = vector.load %arg6[%c0_196, %c2_197, %c2_198, %c0_199] : memref<2x10x10x128xf32, #tpu.memory_space<vmem>>, vector<2x8x8x128xf32>
    %137 = vector.shape_cast %136 : vector<2x8x8x128xf32> to vector<128x128xf32>
    %c8_200 = arith.constant 8 : index
    %c0_201 = arith.constant 0 : index
    %c0_202 = arith.constant 0 : index
    %138 = vector.load %arg3[%c8_200, %c0_201, %c0_202] : memref<9x128x128xf32, #tpu.memory_space<vmem>>, vector<1x128x128xf32>
    %139 = vector.shape_cast %138 : vector<1x128x128xf32> to vector<128x128xf32>
    %cst_203 = arith.constant dense<0.000000e+00> : vector<128x128xf32>
    %140 = tpu.matmul %137, %139, %cst_203 {dimension_numbers = #tpu.dot_dimension_numbers<[1], [0], [0], [1], [0, 0, 1, 1], [], []>} : vector<128x128xf32>, vector<128x128xf32>, vector<128x128xf32> -> vector<128x128xf32>
    %141 = arith.addf %135, %140 : vector<128x128xf32>
    %cst_204 = arith.constant 0.000000e+00 : f32
    %142 = vector.broadcast %cst_204 : f32 to vector<128x128xf32>
    %143 = arith.maximumf %141, %142 : vector<128x128xf32>
    %c0_205 = arith.constant 0 : index
    %c0_206 = arith.constant 0 : index
    %144 = vector.load %arg4[%c0_205, %c0_206] : memref<128x128xf32, #tpu.memory_space<vmem>>, vector<128x128xf32>
    tpu.vector_store %arg4[%c0_205, %c0_206], %143 {strides = array<i32>} : memref<128x128xf32, #tpu.memory_space<vmem>>, vector<128x128xf32>,
    return
  }
  func.func @transform_0(%arg0: i32) -> (i32, i32, i32, i32, i32) {
    %c0_i32 = arith.constant 0 : i32
    %c0_i32_0 = arith.constant 0 : i32
    %c0_i32_1 = arith.constant 0 : i32
    %c0_i32_2 = arith.constant 0 : i32
    %c0_i32_3 = arith.constant 0 : i32
    return %c0_i32, %arg0, %c0_i32_0, %c0_i32_1, %c0_i32_2 : i32, i32, i32, i32, i32
  }
  func.func @transform_1(%arg0: i32) -> (i32, i32, i32) {
    %c0_i32 = arith.constant 0 : i32
    %c0_i32_0 = arith.constant 0 : i32
    %c0_i32_1 = arith.constant 0 : i32
    %c0_i32_2 = arith.constant 0 : i32
    return %c0_i32, %c0_i32_0, %c0_i32_1 : i32, i32, i32
  }
  func.func @transform_2(%arg0: i32) -> (i32, i32, i32) {
    %c0_i32 = arith.constant 0 : i32
    %c0_i32_0 = arith.constant 0 : i32
    %c0_i32_1 = arith.constant 0 : i32
    %c0_i32_2 = arith.constant 0 : i32
    return %c0_i32, %c0_i32_0, %c0_i32_1 : i32, i32, i32
  }
  func.func @transform_3(%arg0: i32) -> (i32, i32) {
    %c0_i32 = arith.constant 0 : i32
    %c0_i32_0 = arith.constant 0 : i32
    return %arg0, %c0_i32 : i32, i32
  }
}

</mosaic_0001>

<bundles_post_ra>
// kernel: down_forward.1
= control target key start
LH: loop header
LB: loop body
LE: loop exit
PB: predicated region body
PF: predicated region fallthrough
CT: control target
= control target key end

     0   :  { %v5630_v3 = vmov 0.0   ;;  %s7885_s1 = inlined_call_operand.vmem [shape: f32[9,128,128], index: 1, kind: input, shape index: {}]   ;;  %s7886_s0 = inlined_call_operand.vmem [shape: f32[4,2,8,8,128], index: 0, kind: input, shape index: {}]   ;;  %s7887_s2 = inlined_call_operand.vmem [shape: f32[9,128,128], index: 2, kind: input, shape index: {}]   ;;  %s7888_s3 = inlined_call_operand.vmem [shape: f32[128,128], index: 3, kind: output, shape index: {}]  }
   0x1   :  { %v5654_v0 = vld [vmem:[%s7885_s1 + $0xf8] sm:$0xff]  ;;  %v5664_v2 = vld [vmem:[%s7885_s1 + $0xf0] sm:$0xff]  ;;  %129 = vst [vmem:[#allocation2] sm:$0xff] %v5630_v3  ;;  %130 = vst [vmem:[#allocation2 + $0x8] sm:$0x3] %v5630_v3 }
   0x2   :  { %v5659_v1 = vld [vmem:[%s7885_s1 + $0x78] sm:$0xff]  ;;  %131 = vst [vmem:[#allocation2 + $0xa0] sm:$0xff] %v5630_v3  ;;  %132 = vst [vmem:[#allocation2 + $0xa8] sm:$0x3] %v5630_v3  ;;  %4621 = vmatprep.subr.mxu0 %v5654_v0  ;;  %v225_v4 = vld [vmem:[%s7885_s1 + $0x70] sm:$0xff] }
   0x3   :  { %134 = vst [vmem:[#allocation2 + $0x90] sm:$0xff] %v5630_v3  ;;  %135 = vst [vmem:[#allocation2 + $0x98] sm:$0x3] %v5630_v3  ;;  %4677 = vmatprep.subr.mxu1 %v5659_v1  ;;  %4622 = vmatpush3.msra.mxu0 %v5654_v0  ;;  %v3802_v5 = vld [vmem:[%s7885_s1 + $0xe8] sm:$0xff]  ;;  %v3801_v7 = vld [vmem:[%s7885_s1 + $0xe0] sm:$0xff] }
   0x4   :  { %136 = vst [vmem:[#allocation2 + $0x130] sm:$0xff] %v5630_v3  ;;  %137 = vst [vmem:[#allocation2 + $0x138] sm:$0x3] %v5630_v3  ;;  %4678 = vmatpush3.msra.mxu1 %v5659_v1  ;;  %v224_v6 = vld [vmem:[%s7885_s1 + $0x68] sm:$0xff]  ;;  %4623 = vmatprep.subr.mxu0 %v5664_v2  ;;  %v223_v8 = vld [vmem:[%s7885_s1 + $0x60] sm:$0xff] }
   0x5   :  { %139 = vst [vmem:[#allocation2 + $0x10] sm:$0x1] %v5630_v3  ;;  %140 = vst [vmem:[#allocation2 + $0x20] sm:$0x1] %v5630_v3  ;;  %4679 = vmatprep.subr.mxu1 %v225_v4  ;;  %4624 = vmatpush3.msra.mxu0 %v5664_v2  ;;  %v3800_v9 = vld [vmem:[%s7885_s1 + $0xd8] sm:$0xff]  ;;  %v3799_v11 = vld [vmem:[%s7885_s1 + $0xd0] sm:$0xff] }
   0x6   :  { %141 = vst [vmem:[#allocation2 + $0x30] sm:$0x1] %v5630_v3  ;;  %142 = vst [vmem:[#allocation2 + $0x40] sm:$0x1] %v5630_v3  ;;  %4680 = vmatpush3.msra.mxu1 %v225_v4  ;;  %4625 = vmatprep.subr.mxu0 %v3802_v5  ;;  %v222_v10 = vld [vmem:[%s7885_s1 + $0x58] sm:$0xff]  ;;  %v221_v12 = vld [vmem:[%s7885_s1 + $0x50] sm:$0xff] }
   0x7   :  { %143 = vst [vmem:[#allocation2 + $0x50] sm:$0x1] %v5630_v3  ;;  %144 = vst [vmem:[#allocation2 + $0x60] sm:$0x1] %v5630_v3  ;;  %4681 = vmatprep.subr.mxu1 %v224_v6  ;;  %4626 = vmatpush3.msra.mxu0 %v3802_v5  ;;  %v3798_v13 = vld [vmem:[%s7885_s1 + $0xc8] sm:$0xff]  ;;  %v3797_v15 = vld [vmem:[%s7885_s1 + $0xc0] sm:$0xff] }
   0x8   :  { %145 = vst [vmem:[#allocation2 + $0x70] sm:$0x1] %v5630_v3  ;;  %146 = vst [vmem:[#allocation2 + $0x80] sm:$0x1] %v5630_v3  ;;  %4682 = vmatpush3.msra.mxu1 %v224_v6  ;;  %4627 = vmatprep.subr.mxu0 %v3801_v7  ;;  %v220_v14 = vld [vmem:[%s7885_s1 + $0x48] sm:$0xff]  ;;  %v14_v16 = vld [vmem:[%s7886_s0] sm:$0xff] }
   0x9   :  { %149 = vst [vmem:[#allocation2 + $0xb0] sm:$0x1] %v5630_v3  ;;  %150 = vst [vmem:[#allocation2 + $0xc0] sm:$0x1] %v5630_v3  ;;  %4683 = vmatprep.subr.mxu1 %v223_v8  ;;  %4628 = vmatpush3.msra.mxu0 %v3801_v7  ;;  %v3741_v17 = vld [vmem:[%s7886_s0 + $0x80] sm:$0xff]  ;;  %v3796_v22 = vld [vmem:[%s7885_s1 + $0xb8] sm:$0xff] }
   0xa   :  { %151 = vst [vmem:[#allocation2 + $0xd0] sm:$0x1] %v5630_v3  ;;  %152 = vst [vmem:[#allocation2 + $0xe0] sm:$0x1] %v5630_v3  ;;  %4684 = vmatpush3.msra.mxu1 %v223_v8  ;;  %4629 = vmatprep.subr.mxu0 %v3800_v9  ;;  %v219_v18 = vld [vmem:[%s7885_s1 + $0x40] sm:$0xff]  ;;  %v47_v19 = vmax.f32 %v14_v16, %v3741_v17  ;;  %v218_v23 = vld [vmem:[%s7885_s1 + $0x38] sm:$0xff] }
   0xb   :  { %153 = vst [vmem:[#allocation2 + $0xf0] sm:$0x1] %v5630_v3  ;;  %154 = vst [vmem:[#allocation2 + $0x100] sm:$0x1] %v5630_v3  ;;  %4685 = vmatprep.subr.mxu1 %v222_v10  ;;  %4630 = vmatpush3.msra.mxu0 %v3800_v9  ;;  %v3757_v20 = vld [vmem:[%s7886_s0 + $0x100] sm:$0xff]  ;;  %v15_v25 = vld [vmem:[%s7886_s0 + $0x8] sm:$0xff] }
   0xc   :  { %155 = vst [vmem:[#allocation2 + $0x110] sm:$0x1] %v5630_v3  ;;  %156 = vst [vmem:[#allocation2 + $0x120] sm:$0x1] %v5630_v3  ;;  %4686 = vmatpush3.msra.mxu1 %v222_v10  ;;  %4631 = vmatprep.subr.mxu0 %v3799_v11  ;;  %v3773_v21 = vld [vmem:[%s7886_s0 + $0x180] sm:$0xff]  ;;  %v3742_v26 = vld [vmem:[%s7886_s0 + $0x88] sm:$0xff] }
   0xd   :  { %159 = vst [vmem:[#allocation2 + $0x19] sm:$0x1] %v5630_v3  ;;  %160 = vst [vmem:[#allocation2 + $0x29] sm:$0x1] %v5630_v3  ;;  %4687 = vmatprep.subr.mxu1 %v221_v12  ;;  %4632 = vmatpush3.msra.mxu0 %v3799_v11  ;;  %v97_v24 = vmax.f32 %v3757_v20, %v3773_v21  ;;  %v3758_v27 = vld [vmem:[%s7886_s0 + $0x108] sm:$0xff]  ;;  %v48_v30 = vmax.f32 %v15_v25, %v3742_v26  ;;  %v16_v32 = vld [vmem:[%s7886_s0 + $0x10] sm:$0xff] }
   0xe   :  { %161 = vst [vmem:[#allocation2 + $0x39] sm:$0x1] %v5630_v3  ;;  %162 = vst [vmem:[#allocation2 + $0x49] sm:$0x1] %v5630_v3  ;;  %4688 = vmatpush3.msra.mxu1 %v221_v12  ;;  %4633 = vmatprep.subr.mxu0 %v3798_v13  ;;  %v3774_v28 = vld [vmem:[%s7886_s0 + $0x188] sm:$0xff]  ;;  %v3743_v33 = vld [vmem:[%s7886_s0 + $0x90] sm:$0xff] }
   0xf   :  { %163 = vst [vmem:[#allocation2 + $0x59] sm:$0x1] %v5630_v3  ;;  %164 = vst [vmem:[#allocation2 + $0x69] sm:$0x1] %v5630_v3  ;;  %4689 = vmatprep.subr.mxu1 %v220_v14  ;;  %4634 = vmatpush3.msra.mxu0 %v3798_v13  ;;  %v5837_v29 = vmax.f32 %v47_v19, %v97_v24  ;;  %v98_v31 = vmax.f32 %v3758_v27, %v3774_v28  ;;  %v3759_v34 = vld [vmem:[%s7886_s0 + $0x110] sm:$0xff]  ;;  %v3794_v39 = vld [vmem:[%s7885_s1 + $0xa8] sm:$0xff] }
  0x10   :  { %165 = vst [vmem:[#allocation2 + $0x79] sm:$0x1] %v5630_v3  ;;  %166 = vst [vmem:[#allocation2 + $0x89] sm:$0x1] %v5630_v3  ;;  %4690 = vmatpush3.msra.mxu1 %v220_v14  ;;  %4635 = vmatprep.subr.mxu0 %v3797_v15  ;;  %v3795_v35 = vld [vmem:[%s7885_s1 + $0xb0] sm:$0xff]  ;;  %v49_v37 = vmax.f32 %v16_v32, %v3743_v33  ;;  %v216_v40 = vld [vmem:[%s7885_s1 + $0x28] sm:$0xff] }
  0x11   :  { %169 = vst [vmem:[#allocation2 + $0xb9] sm:$0x1] %v5630_v3  ;;  %170 = vst [vmem:[#allocation2 + $0xc9] sm:$0x1] %v5630_v3  ;;  %4691 = vmatprep.subr.mxu1 %v219_v18  ;;  %4636 = vmatpush3.msra.mxu0 %v3797_v15  ;;  %v217_v36 = vld [vmem:[%s7885_s1 + $0x30] sm:$0xff]  ;;  %v5864_v41 = vmax.f32 %v48_v30, %v98_v31  ;;  %v17_v43 = vld [vmem:[%s7886_s0 + $0x18] sm:$0xff] }
  0x12   :  { %171 = vst [vmem:[#allocation2 + $0xd9] sm:$0x1] %v5630_v3  ;;  %172 = vst [vmem:[#allocation2 + $0xe9] sm:$0x1] %v5630_v3  ;;  %4692 = vmatpush3.msra.mxu1 %v219_v18  ;;  %v3775_v38 = vld [vmem:[%s7886_s0 + $0x190] sm:$0xff]  ;;  %4637 = vmatprep.subr.mxu0 %v3796_v22  ;;  %v3744_v44 = vld [vmem:[%s7886_s0 + $0x98] sm:$0xff] }
  0x13   :  { %173 = vst [vmem:[#allocation2 + $0xf9] sm:$0x1] %v5630_v3  ;;  %174 = vst [vmem:[#allocation2 + $0x109] sm:$0x1] %v5630_v3  ;;  %4693 = vmatprep.subr.mxu1 %v218_v23  ;;  %v99_v42 = vmax.f32 %v3759_v34, %v3775_v38  ;;  %4638 = vmatpush3.msra.mxu0 %v3796_v22  ;;  %v3760_v45 = vld [vmem:[%s7886_s0 + $0x118] sm:$0xff]  ;;  %v50_v48 = vmax.f32 %v17_v43, %v3744_v44  ;;  %v18_v50 = vld [vmem:[%s7886_s0 + $0x20] sm:$0xff] }
  0x14   :  { %175 = vst [vmem:[#allocation2 + $0x119] sm:$0x1] %v5630_v3  ;;  %176 = vst [vmem:[#allocation2 + $0x129] sm:$0x1] %v5630_v3  ;;  %4694 = vmatpush3.msra.mxu1 %v218_v23  ;;  %v3776_v46 = vld [vmem:[%s7886_s0 + $0x198] sm:$0xff]  ;;  %4639 = vmatprep.subr.mxu0 %v3795_v35  ;;  %v3745_v51 = vld [vmem:[%s7886_s0 + $0xa0] sm:$0xff] }
  0x15   :  { %1925 = vst [vmem:[#allocation3] sm:$0xff] %v5630_v3  ;;  %1926 = vst [vmem:[#allocation3 + $0x8] sm:$0x3] %v5630_v3  ;;  %4695 = vmatprep.subr.mxu1 %v217_v36  ;;  %v5879_v47 = vmax.f32 %v49_v37, %v99_v42  ;;  %v100_v49 = vmax.f32 %v3760_v45, %v3776_v46  ;;  %v3761_v52 = vld [vmem:[%s7886_s0 + $0x120] sm:$0xff]  ;;  %4640 = vmatpush3.msra.mxu0 %v3795_v35  ;;  %v3792_v57 = vld [vmem:[%s7885_s1 + $0x98] sm:$0xff] }
  0x16   :  { %1927 = vst [vmem:[#allocation3 + $0xa0] sm:$0xff] %v5630_v3  ;;  %1928 = vst [vmem:[#allocation3 + $0xa8] sm:$0x3] %v5630_v3  ;;  %4696 = vmatpush3.msra.mxu1 %v217_v36  ;;  %v3793_v53 = vld [vmem:[%s7885_s1 + $0xa0] sm:$0xff]  ;;  %v51_v55 = vmax.f32 %v18_v50, %v3745_v51  ;;  %4641 = vmatprep.subr.mxu0 %v3794_v39  ;;  %v214_v58 = vld [vmem:[%s7885_s1 + $0x18] sm:$0xff] }
  0x17   :  { %1930 = vst [vmem:[#allocation3 + $0x90] sm:$0xff] %v5630_v3  ;;  %1931 = vst [vmem:[#allocation3 + $0x98] sm:$0x3] %v5630_v3  ;;  %v215_v54 = vld [vmem:[%s7885_s1 + $0x20] sm:$0xff]  ;;  %4697 = vmatprep.subr.mxu1 %v216_v40  ;;  %v5906_v59 = vmax.f32 %v50_v48, %v100_v49  ;;  %v19_v61 = vld [vmem:[%s7886_s0 + $0x28] sm:$0xff]  ;;  %4642 = vmatpush3.msra.mxu0 %v3794_v39 }
  0x18   :  { %1932 = vst [vmem:[#allocation3 + $0x130] sm:$0xff] %v5630_v3  ;;  %1933 = vst [vmem:[#allocation3 + $0x138] sm:$0x3] %v5630_v3  ;;  %v3777_v56 = vld [vmem:[%s7886_s0 + $0x1a0] sm:$0xff]  ;;  %4698 = vmatpush3.msra.mxu1 %v216_v40  ;;  %v3746_v62 = vld [vmem:[%s7886_s0 + $0xa8] sm:$0xff]  ;;  %4643 = vmatprep.subr.mxu0 %v3793_v53 }
  0x19   :  { %1935 = vst [vmem:[#allocation3 + $0x10] sm:$0x1] %v5630_v3  ;;  %1936 = vst [vmem:[#allocation3 + $0x20] sm:$0x1] %v5630_v3  ;;  %v101_v60 = vmax.f32 %v3761_v52, %v3777_v56  ;;  %v3762_v63 = vld [vmem:[%s7886_s0 + $0x128] sm:$0xff]  ;;  %4699 = vmatprep.subr.mxu1 %v215_v54  ;;  %v52_v2 = vmax.f32 %v19_v61, %v3746_v62  ;;  %v20_v4 = vld [vmem:[%s7886_s0 + $0x30] sm:$0xff]  ;;  %4644 = vmatpush3.msra.mxu0 %v3793_v53 }
  0x1a   :  { %1937 = vst [vmem:[#allocation3 + $0x30] sm:$0x1] %v5630_v3  ;;  %1938 = vst [vmem:[#allocation3 + $0x40] sm:$0x1] %v5630_v3  ;;  %v3778_v0 = vld [vmem:[%s7886_s0 + $0x1a8] sm:$0xff]  ;;  %v3747_v5 = vld [vmem:[%s7886_s0 + $0xb0] sm:$0xff]  ;;  %4700 = vmatpush3.msra.mxu1 %v215_v54  ;;  %4645 = vmatprep.subr.mxu0 %v3792_v57 }
  0x1b   :  { %1939 = vst [vmem:[#allocation3 + $0x50] sm:$0x1] %v5630_v3  ;;  %1940 = vst [vmem:[#allocation3 + $0x60] sm:$0x1] %v5630_v3  ;;  %v5921_v1 = vmax.f32 %v51_v55, %v101_v60  ;;  %v3763_v6 = vld [vmem:[%s7886_s0 + $0x130] sm:$0xff]  ;;  %v53_v9 = vmax.f32 %v20_v4, %v3747_v5  ;;  %4701 = vmatprep.subr.mxu1 %v214_v58  ;;  %4646 = vmatpush3.msra.mxu0 %v3792_v57  ;;  %v3790_v13 = vld [vmem:[%s7885_s1 + $0x88] sm:$0xff] }
  0x1c   :  { %1941 = vst [vmem:[#allocation3 + $0x70] sm:$0x1] %v5630_v3  ;;  %1942 = vst [vmem:[#allocation3 + $0x80] sm:$0x1] %v5630_v3  ;;  %v3791_v7 = vld [vmem:[%s7885_s1 + $0x90] sm:$0xff]  ;;  %4702 = vmatpush3.msra.mxu1 %v214_v58  ;;  %v212_v14 = vld [vmem:[%s7885_s1 + $0x8] sm:$0xff] }
  0x1d   :  { %1945 = vst [vmem:[#allocation3 + $0xb0] sm:$0x1] %v5630_v3  ;;  %1946 = vst [vmem:[#allocation3 + $0xc0] sm:$0x1] %v5630_v3  ;;  %v213_v8 = vld [vmem:[%s7885_s1 + $0x10] sm:$0xff]  ;;  %4647 = vmatprep.subr.mxu0 %v3791_v7  ;;  %v22_v16 = vld [vmem:[%s7886_s0 + $0x40] sm:$0xff] }
  0x1e   :  { %1947 = vst [vmem:[#allocation3 + $0xd0] sm:$0x1] %v5630_v3  ;;  %1948 = vst [vmem:[#allocation3 + $0xe0] sm:$0x1] %v5630_v3  ;;  %v3779_v10 = vld [vmem:[%s7886_s0 + $0x1b0] sm:$0xff]  ;;  %4703 = vmatprep.subr.mxu1 %v213_v8  ;;  %v3749_v17 = vld [vmem:[%s7886_s0 + $0xc0] sm:$0xff]  ;;  %4648 = vmatpush3.msra.mxu0 %v3791_v7 }
  0x1f   :  { %1949 = vst [vmem:[#allocation3 + $0xf0] sm:$0x1] %v5630_v3  ;;  %1950 = vst [vmem:[#allocation3 + $0x100] sm:$0x1] %v5630_v3  ;;  %v103_v12 = vmax.f32 %v3763_v6, %v3779_v10  ;;  %v3765_v18 = vld [vmem:[%s7886_s0 + $0x140] sm:$0xff]  ;;  %4704 = vmatpush3.msra.mxu1 %v213_v8  ;;  %v55_v21 = vmax.f32 %v22_v16, %v3749_v17  ;;  %4649 = vmatprep.subr.mxu0 %v3790_v13  ;;  %v3820_v27 = vld [vmem:[%s7885_s1 + $0x178] sm:$0xff] }
  0x20   :  { %1951 = vst [vmem:[#allocation3 + $0x110] sm:$0x1] %v5630_v3  ;;  %1952 = vst [vmem:[#allocation3 + $0x120] sm:$0x1] %v5630_v3  ;;  %v3789_v19 = vld [vmem:[%s7885_s1 + $0x80] sm:$0xff]  ;;  %4705 = vmatprep.subr.mxu1 %v212_v14  ;;  %4650 = vmatpush3.msra.mxu0 %v3790_v13  ;;  %v23_v28 = vld [vmem:[%s7886_s0 + $0x48] sm:$0xff] }
  0x21   :  { %1955 = vst [vmem:[#allocation3 + $0x19] sm:$0x1] %v5630_v3  ;;  %1956 = vst [vmem:[#allocation3 + $0x29] sm:$0x1] %v5630_v3  ;;  %v5951_v15 = vmax.f32 %v53_v9, %v103_v12  ;;  %v211_v20 = vld [vmem:[%s7885_s1] sm:$0xff]  ;;  %4706 = vmatpush3.msra.mxu1 %v212_v14  ;;  %v3750_v30 = vld [vmem:[%s7886_s0 + $0xc8] sm:$0xff]  ;;  %4651 = vmatprep.subr.mxu0 %v3789_v19 }
  0x22   :  { %1957 = vst [vmem:[#allocation3 + $0x39] sm:$0x1] %v5630_v3  ;;  %1958 = vst [vmem:[#allocation3 + $0x49] sm:$0x1] %v5630_v3  ;;  %v3781_v22 = vld [vmem:[%s7886_s0 + $0x1c0] sm:$0xff]  ;;  %4707 = vmatprep.subr.mxu1 %v211_v20  ;;  %v56_v32 = vmax.f32 %v23_v28, %v3750_v30  ;;  %v3766_v33 = vld [vmem:[%s7886_s0 + $0x148] sm:$0xff]  ;;  %4652 = vmatpush3.msra.mxu0 %v3789_v19 }
  0x23   :  { %1959 = vst [vmem:[#allocation3 + $0x59] sm:$0x1] %v5630_v3  ;;  %1960 = vst [vmem:[#allocation3 + $0x69] sm:$0x1] %v5630_v3  ;;  %v227_v23 = vld [vmem:[#allocation2 + $0x1] sm:$0xff]  ;;  %v105_v25 = vmax.f32 %v3765_v18, %v3781_v22  ;;  %v24_v35 = vld [vmem:[%s7886_s0 + $0x50] sm:$0xff]  ;;  %4708 = vmatpush3.msra.mxu1 %v211_v20  ;;  %4733 = vmatprep.subr.mxu0 %v3820_v27 }
  0x24   :  { %1961 = vst [vmem:[#allocation3 + $0x79] sm:$0x1] %v5630_v3  ;;  %1962 = vst [vmem:[#allocation3 + $0x89] sm:$0x1] %v5630_v3  ;;  %v3782_v34 = vld [vmem:[%s7886_s0 + $0x1c8] sm:$0xff]  ;;  %4653 = vmatprep.mubr.f32.mxu0 %v227_v23  ;;  %v3836_v36 = vld [vmem:[%s7885_s1 + $0x1f8] sm:$0xff] }
  0x25   :  { %1965 = vst [vmem:[#allocation3 + $0xb9] sm:$0x1] %v5630_v3  ;;  %1966 = vst [vmem:[#allocation3 + $0xc9] sm:$0x1] %v5630_v3  ;;  %v5983_v31 = vmax.f32 %v55_v21, %v105_v25  ;;  %v106_v37 = vmax.f32 %v3766_v33, %v3782_v34  ;;  %v3751_v38 = vld [vmem:[%s7886_s0 + $0xd0] sm:$0xff]  ;;  %4654 = vmatmul.mubr.f32.vlgmr.msra.gmra.mxu0 %v5837_v29  ;;  %4789 = vmatprep.subr.mxu1 %v3836_v36  ;;  %v3818_v48 = vld [vmem:[%s7885_s1 + $0x168] sm:$0xff] }
  0x26   :  { %1967 = vst [vmem:[#allocation3 + $0xd9] sm:$0x1] %v5630_v3  ;;  %1968 = vst [vmem:[#allocation3 + $0xe9] sm:$0x1] %v5630_v3  ;;  %v3767_v39 = vld [vmem:[%s7886_s0 + $0x150] sm:$0xff]  ;;  %v57_v40 = vmax.f32 %v24_v35, %v3751_v38  ;;  %v25_v50 = vld [vmem:[%s7886_s0 + $0x58] sm:$0xff]  ;;  %4734 = vmatpush3.msra.mxu0 %v3820_v27  ;;  %4656 = vmatprep.mubr.f32.mxu0 %v5864_v41 }
  0x27   :  { %1969 = vst [vmem:[#allocation3 + $0xf9] sm:$0x1] %v5630_v3  ;;  %1970 = vst [vmem:[#allocation3 + $0x109] sm:$0x1] %v5630_v3  ;;  %v3783_v42 = vld [vmem:[%s7886_s0 + $0x1d0] sm:$0xff]  ;;  %v6014_v45 = vmax.f32 %v56_v32, %v106_v37  ;;  %v3752_v51 = vld [vmem:[%s7886_s0 + $0xd8] sm:$0xff] }
  0x28   :  { %1971 = vst [vmem:[#allocation3 + $0x119] sm:$0x1] %v5630_v3  ;;  %1972 = vst [vmem:[#allocation3 + $0x129] sm:$0x1] %v5630_v3  ;;  %v3819_v43 = vld [vmem:[%s7885_s1 + $0x170] sm:$0xff]  ;;  %v107_v46 = vmax.f32 %v3767_v39, %v3783_v42  ;;  %v3768_v52 = vld [vmem:[%s7886_s0 + $0x158] sm:$0xff]  ;;  %v58_v55 = vmax.f32 %v25_v50, %v3752_v51 }
  0x29   :  { %138 = vst [vmem:[#allocation2] sm:$0x1] %v5630_v3  ;;  %158 = vst [vmem:[#allocation2 + $0x9] sm:$0x1] %v5630_v3  ;;  %v3835_v49 = vld [vmem:[%s7885_s1 + $0x1f0] sm:$0xff]  ;;  %v3784_v56 = vld [vmem:[%s7886_s0 + $0x1d8] sm:$0xff]  ;;  %4735 = vmatprep.subr.mxu0 %v3819_v43  ;;  %4657 = vmatmul.mubr.f32.gmra.mxu0 %v5879_v47 }
  0x2a   :  { %147 = vst [vmem:[#allocation2 + $0x90] sm:$0x1] %v5630_v3  ;;  %148 = vst [vmem:[#allocation2 + $0xa0] sm:$0x1] %v5630_v3  ;;  %v6035_v54 = vmax.f32 %v57_v40, %v107_v46  ;;  %v26_v57 = vld [vmem:[%s7886_s0 + $0x60] sm:$0xff]  ;;  %v108_v58 = vmax.f32 %v3768_v52, %v3784_v56  ;;  %4736 = vmatpush3.msra.mxu0 %v3819_v43  ;;  %v27_v5 = vld [vmem:[%s7886_s0 + $0x68] sm:$0xff]  ;;  %4659 = vmatprep.mubr.f32.mxu0 %v5906_v59 }
  0x2b   :  { %157 = vst [vmem:[#allocation2 + $0x130] sm:$0x1] %v5630_v3  ;;  %167 = vst [vmem:[#allocation2 + $0x99] sm:$0x1] %v5630_v3  ;;  %v3753_v60 = vld [vmem:[%s7886_s0 + $0xe0] sm:$0xff]  ;;  %v3754_v6 = vld [vmem:[%s7886_s0 + $0xe8] sm:$0xff]  ;;  %4737 = vmatprep.subr.mxu0 %v3818_v48 }
  0x2c   :  { %168 = vst [vmem:[#allocation2 + $0xa9] sm:$0x1] %v5630_v3  ;;  %177 = vst [vmem:[#allocation2 + $0x139] sm:$0x1] %v5630_v3  ;;  %v3769_v61 = vld [vmem:[%s7886_s0 + $0x160] sm:$0xff]  ;;  %v6062_v4 = vmax.f32 %v58_v55, %v108_v58  ;;  %v60_v9 = vmax.f32 %v27_v5, %v3754_v6  ;;  %v3770_v10 = vld [vmem:[%s7886_s0 + $0x168] sm:$0xff]  ;;  %4738 = vmatpush3.msra.mxu0 %v3818_v48 }
  0x2d   :  { %1934 = vst [vmem:[#allocation3] sm:$0x1] %v5630_v3  ;;  %1943 = vst [vmem:[#allocation3 + $0x90] sm:$0x1] %v5630_v3  ;;  %v3785_v62 = vld [vmem:[%s7886_s0 + $0x1e0] sm:$0xff]  ;;  %v3786_v12 = vld [vmem:[%s7886_s0 + $0x1e8] sm:$0xff]  ;;  %4660 = vmatmul.mubr.f32.gmra.mxu0 %v5921_v1 }
  0x2e   :  { %1944 = vst [vmem:[#allocation3 + $0xa0] sm:$0x1] %v5630_v3  ;;  %1953 = vst [vmem:[#allocation3 + $0x130] sm:$0x1] %v5630_v3  ;;  %v110_v13 = vmax.f32 %v3770_v10, %v3786_v12  ;;  %v28_v14 = vld [vmem:[%s7886_s0 + $0x70] sm:$0xff]  ;;  %v3816_v21 = vld [vmem:[%s7885_s1 + $0x158] sm:$0xff] }
  0x2f   :  { %1954 = vst [vmem:[#allocation3 + $0x9] sm:$0x1] %v5630_v3  ;;  %1963 = vst [vmem:[#allocation3 + $0x99] sm:$0x1] %v5630_v3  ;;  %v3755_v16 = vld [vmem:[%s7886_s0 + $0xf0] sm:$0xff]  ;;  %v3833_v22 = vld [vmem:[%s7885_s1 + $0x1e0] sm:$0xff] }
  0x30   :  { %1964 = vst [vmem:[#allocation3 + $0xa9] sm:$0x1] %v5630_v3  ;;  %1973 = vst [vmem:[#allocation3 + $0x139] sm:$0x1] %v5630_v3  ;;  %v102_v3 = vmax.f32 %v3762_v63, %v3778_v0  ;;  %v195_v24 = vld [vmem:[#allocation2] sm:$0xff]  ;;  %v59_v0 = vmax.f32 %v26_v57, %v3753_v60  ;;  %v3771_v17 = vld [vmem:[%s7886_s0 + $0x170] sm:$0xff]  ;;  %v61_v19 = vmax.f32 %v28_v14, %v3755_v16 }
  0x31   :  { %179 = vst [vmem:[#allocation2 + $0x11] sm:$0xff] %v5837_v29  ;;  %180 = vst [vmem:[#allocation2 + $0x21] sm:$0xff] %v5864_v41  ;;  %4709 = vmatprep.mubr.f32.mxu1 %v195_v24  ;;  %v3817_v63 = vld [vmem:[%s7885_s1 + $0x160] sm:$0xff]  ;;  %v3787_v20 = vld [vmem:[%s7886_s0 + $0x1f0] sm:$0xff]  ;;  %v6104_v23 = vmax.f32 %v60_v9, %v110_v13 }
  0x32   :  { %181 = vst [vmem:[#allocation2 + $0x31] sm:$0xff] %v5879_v47  ;;  %182 = vst [vmem:[#allocation2 + $0x41] sm:$0xff] %v5906_v59  ;;  %v5942_v11 = vmax.f32 %v52_v2, %v102_v3  ;;  %v109_v2 = vmax.f32 %v3769_v61, %v3785_v62  ;;  %v3834_v3 = vld [vmem:[%s7885_s1 + $0x1e8] sm:$0xff]  ;;  %4739 = vmatprep.subr.mxu0 %v3817_v63  ;;  %v111_v24 = vmax.f32 %v3771_v17, %v3787_v20  ;;  %v3815_v25 = vld [vmem:[%s7885_s1 + $0x150] sm:$0xff] }
  0x33   :  { %183 = vst [vmem:[#allocation2 + $0x51] sm:$0xff] %v5921_v1  ;;  %185 = vst [vmem:[#allocation2 + $0x71] sm:$0xff] %v5951_v15  ;;  %4740 = vmatpush3.msra.mxu0 %v3817_v63  ;;  %v3832_v27 = vld [vmem:[%s7885_s1 + $0x1d8] sm:$0xff]  ;;  %v3814_v33 = vld [vmem:[%s7885_s1 + $0x148] sm:$0xff] }
  0x34   :  { %184 = vst [vmem:[#allocation2 + $0x61] sm:$0xff] %v5942_v11  ;;  %187 = vst [vmem:[#allocation2 + $0xb1] sm:$0xff] %v5983_v31  ;;  %v6072_v8 = vmax.f32 %v59_v0, %v109_v2  ;;  %v6115_v28 = vmax.f32 %v61_v19, %v111_v24  ;;  %4741 = vmatprep.subr.mxu0 %v3816_v21  ;;  %4662 = vmatprep.mubr.f32.mxu0 %v5942_v11  ;;  %v3831_v34 = vld [vmem:[%s7885_s1 + $0x1d0] sm:$0xff]  ;;  %v3813_v35 = vld [vmem:[%s7885_s1 + $0x140] sm:$0xff] }
  0x35   :  { %188 = vst [vmem:[#allocation2 + $0xc1] sm:$0xff] %v6014_v45  ;;  %189 = vst [vmem:[#allocation2 + $0xd1] sm:$0xff] %v6035_v54  ;;  %4742 = vmatpush3.msra.mxu0 %v3816_v21  ;;  %v235_v37 = vld [vmem:[#allocation2 + $0xa1] sm:$0xff]  ;;  %v21_v39 = vld [vmem:[%s7886_s0 + $0x38] sm:$0xff] }
  0x36   :  { %190 = vst [vmem:[#allocation2 + $0xe1] sm:$0xff] %v6062_v4  ;;  %191 = vst [vmem:[#allocation2 + $0xf1] sm:$0xff] %v6072_v8  ;;  %4743 = vmatprep.subr.mxu0 %v3815_v25  ;;  %4663 = vmatmul.mubr.f32.gmra.mxu0 %v5951_v15  ;;  %v203_v38 = vld [vmem:[#allocation2 + $0xa0] sm:$0xff]  ;;  %v3748_v40 = vld [vmem:[%s7886_s0 + $0xb8] sm:$0xff] }
  0x37   :  { %192 = vst [vmem:[#allocation2 + $0x101] sm:$0xff] %v6104_v23  ;;  %193 = vst [vmem:[#allocation2 + $0x111] sm:$0xff] %v6115_v28  ;;  %4744 = vmatpush3.msra.mxu0 %v3815_v25  ;;  %v3764_v42 = vld [vmem:[%s7886_s0 + $0x138] sm:$0xff]  ;;  %v54_v48 = vmax.f32 %v21_v39, %v3748_v40  ;;  %4665 = vmatprep.mubr.f32.mxu0 %v235_v37  ;;  %v3829_v51 = vld [vmem:[%s7885_s1 + $0x1c0] sm:$0xff] }
  0x38   :  { %v5972_v26 = vld [vmem:[#allocation2 + $0x10] sm:$0xff]  ;;  %v6012_v44 = vld [vmem:[#allocation2 + $0x20] sm:$0xff]  ;;  %4745 = vmatprep.subr.mxu0 %v3814_v33  ;;  %v3780_v43 = vld [vmem:[%s7886_s0 + $0x1b8] sm:$0xff] }
  0x39   :  { %4710 = vmatmul.mubr.f32.vlgmr.msra.gmra.mxu1 %v5972_v26  ;;  %v6032_v53 = vld [vmem:[#allocation2 + $0x30] sm:$0xff]  ;;  %v6070_v7 = vld [vmem:[#allocation2 + $0x40] sm:$0xff]  ;;  %4746 = vmatpush3.msra.mxu0 %v3814_v33  ;;  %v3812_v50 = vld [vmem:[%s7885_s1 + $0x138] sm:$0xff] }
  0x3a   :  { %4712 = vmatprep.mubr.f32.mxu1 %v6012_v44  ;;  %4790 = vmatpush3.msra.mxu1 %v3836_v36  ;;  %v6090_v18 = vld [vmem:[#allocation2 + $0x50] sm:$0xff]  ;;  %v3830_v36 = vld [vmem:[%s7885_s1 + $0x1c8] sm:$0xff]  ;;  %v3828_v56 = vld [vmem:[%s7885_s1 + $0x1b8] sm:$0xff] }
  0x3b   :  { %4791 = vmatprep.subr.mxu1 %v3835_v49  ;;  %v6117_v30 = vld [vmem:[#allocation2 + $0x60] sm:$0xff]  ;;  %v6120_v32 = vld [vmem:[#allocation2 + $0x70] sm:$0xff]  ;;  %4747 = vmatprep.subr.mxu0 %v3813_v35  ;;  %v3810_v60 = vld [vmem:[%s7885_s1 + $0x128] sm:$0xff] }
  0x3c   :  { %4792 = vmatpush3.msra.mxu1 %v3835_v49  ;;  %v6150_v46 = vld [vmem:[#allocation2 + $0xb0] sm:$0xff]  ;;  %v104_v49 = vmax.f32 %v3764_v42, %v3780_v43  ;;  %4748 = vmatpush3.msra.mxu0 %v3813_v35  ;;  %v6168_v57 = vld [vmem:[#allocation2 + $0xc0] sm:$0xff]  ;;  %v29_v63 = vld [vmem:[%s7886_s0 + $0x78] sm:$0xff] }
  0x3d   :  { %4713 = vmatmul.mubr.f32.gmra.mxu1 %v6032_v53  ;;  %4793 = vmatprep.subr.mxu1 %v3834_v3  ;;  %v3811_v55 = vld [vmem:[%s7885_s1 + $0x130] sm:$0xff]  ;;  %v3809_v62 = vld [vmem:[%s7885_s1 + $0x120] sm:$0xff]  ;;  %v3756_v0 = vld [vmem:[%s7886_s0 + $0xf8] sm:$0xff] }
  0x3e   :  { %4715 = vmatprep.mubr.f32.mxu1 %v6070_v7  ;;  %4794 = vmatpush3.msra.mxu1 %v3834_v3  ;;  %v6158_v52 = vmax.f32 %v54_v48, %v104_v49  ;;  %v6171_v58 = vld [vmem:[#allocation2 + $0xd0] sm:$0xff]  ;;  %v3826_v2 = vld [vmem:[%s7885_s1 + $0x1a8] sm:$0xff]  ;;  %v62_v3 = vmax.f32 %v29_v63, %v3756_v0  ;;  %v3772_v5 = vld [vmem:[%s7886_s0 + $0x178] sm:$0xff] }
  0x3f   :  { %4795 = vmatprep.subr.mxu1 %v3833_v22  ;;  %4666 = vmatmul.mubr.f32.gmra.mxu0 %v5983_v31  ;;  %v3827_v61 = vld [vmem:[%s7885_s1 + $0x1b0] sm:$0xff]  ;;  %v3788_v6 = vld [vmem:[%s7886_s0 + $0x1f8] sm:$0xff]  ;;  %v6201_v9 = vld [vmem:[#allocation2 + $0xe0] sm:$0xff] }
  0x40   :  { %4796 = vmatpush3.msra.mxu1 %v3833_v22  ;;  %4749 = vmatprep.subr.mxu0 %v3812_v50  ;;  %186 = vst [vmem:[#allocation2 + $0x81] sm:$0xff] %v6158_v52  ;;  %v112_v10 = vmax.f32 %v3772_v5, %v3788_v6  ;;  %v6203_v12 = vld [vmem:[#allocation2 + $0xf0] sm:$0xff]  ;;  %v3808_v14 = vld [vmem:[%s7885_s1 + $0x118] sm:$0xff]  ;;  %v3825_v16 = vld [vmem:[%s7885_s1 + $0x1a0] sm:$0xff] }
  0x41   :  { %4716 = vmatmul.mubr.f32.gmra.mxu1 %v6090_v18  ;;  %4797 = vmatprep.subr.mxu1 %v3832_v27  ;;  %v3807_v17 = vld [vmem:[%s7885_s1 + $0x110] sm:$0xff]  ;;  %v3824_v19 = vld [vmem:[%s7885_s1 + $0x198] sm:$0xff]  ;;  %v6224_v20 = vld [vmem:[#allocation2 + $0x100] sm:$0xff] }
  0x42   :  { %4718 = vmatprep.mubr.f32.mxu1 %v6117_v30  ;;  %4798 = vmatpush3.msra.mxu1 %v3832_v27  ;;  %v6205_v13 = vmax.f32 %v62_v3, %v112_v10  ;;  %v6226_v21 = vld [vmem:[#allocation2 + $0x110] sm:$0xff]  ;;  %v3806_v22 = vld [vmem:[%s7885_s1 + $0x108] sm:$0xff]  ;;  %v3805_v25 = vld [vmem:[%s7885_s1 + $0x100] sm:$0xff] }
  0x43   :  { %4799 = vmatprep.subr.mxu1 %v3831_v34  ;;  %4750 = vmatpush3.msra.mxu0 %v3812_v50  ;;  %v3823_v24 = vld [vmem:[%s7885_s1 + $0x190] sm:$0xff]  ;;  %v3822_v27 = vld [vmem:[%s7885_s1 + $0x188] sm:$0xff]  ;;  %v3821_v35 = vld [vmem:[%s7885_s1 + $0x180] sm:$0xff] }
  0x44   :  { %4800 = vmatpush3.msra.mxu1 %v3831_v34  ;;  %4751 = vmatprep.subr.mxu0 %v3811_v55  ;;  %194 = vst [vmem:[#allocation2 + $0x121] sm:$0xff] %v6205_v13  ;;  %v550_v33 = vld [vmem:[#allocation2 + $0x2] sm:$0xff]  ;;  %v6244_v34 = vld [vmem:[#allocation2 + $0x12] sm:$0xff] }
  0x45   :  { %4719 = vmatmul.mubr.f32.gmra.mxu1 %v6120_v32  ;;  %4801 = vmatprep.subr.mxu1 %v3830_v36  ;;  %v3851_v37 = vld [vmem:[%s7885_s1 + $0x270] sm:$0xff]  ;;  %v6260_v39 = vld [vmem:[#allocation2 + $0x22] sm:$0xff]  ;;  %v3848_v50 = vld [vmem:[%s7885_s1 + $0x258] sm:$0xff] }
  0x46   :  { %4721 = vmatprep.mubr.f32.mxu1 %v203_v38  ;;  %4802 = vmatpush3.msra.mxu1 %v3830_v36  ;;  %v3852_v36 = vld [vmem:[%s7885_s1 + $0x278] sm:$0xff]  ;;  %v3850_v42 = vld [vmem:[%s7885_s1 + $0x268] sm:$0xff]  ;;  %v3867_v43 = vld [vmem:[%s7885_s1 + $0x2f0] sm:$0xff] }
  0x47   :  { %4803 = vmatprep.subr.mxu1 %v3829_v51  ;;  %4668 = vmatprep.mubr.f32.mxu0 %v6014_v45  ;;  %v3868_v38 = vld [vmem:[%s7885_s1 + $0x2f8] sm:$0xff]  ;;  %v6280_v48 = vld [vmem:[#allocation2 + $0x42] sm:$0xff] }
  0x48   :  { %4804 = vmatpush3.msra.mxu1 %v3829_v51  ;;  %4752 = vmatpush3.msra.mxu0 %v3811_v55  ;;  %v6263_v40 = vld [vmem:[#allocation2 + $0x32] sm:$0xff]  ;;  %v3865_v51 = vld [vmem:[%s7885_s1 + $0x2e0] sm:$0xff] }
  0x49   :  { %4722 = vmatmul.mubr.f32.gmra.mxu1 %v6150_v46  ;;  %4805 = vmatprep.subr.mxu1 %v3828_v56  ;;  %v6282_v49 = vld [vmem:[#allocation2 + $0x52] sm:$0xff]  ;;  %v6300_v55 = vld [vmem:[#allocation2 + $0x62] sm:$0xff] }
  0x4a   :  { %4724 = vmatprep.mubr.f32.mxu1 %v6168_v57  ;;  %4806 = vmatpush3.msra.mxu1 %v3828_v56  ;;  %v6302_v56 = vld [vmem:[#allocation2 + $0x72] sm:$0xff]  ;;  %v558_v63 = vld [vmem:[#allocation2 + $0xa2] sm:$0xff] }
  0x4b   :  { %4669 = vmatmul.mubr.f32.gmra.mxu0 %v6035_v54  ;;  %4753 = vmatprep.subr.mxu0 %v3810_v60  ;;  %v6322_v0 = vld [vmem:[#allocation2 + $0xb2] sm:$0xff]  ;;  %v3861_v3 = vld [vmem:[%s7885_s1 + $0x2c0] sm:$0xff] }
  0x4c   :  { %4807 = vmatprep.subr.mxu1 %v3827_v61  ;;  %4754 = vmatpush3.msra.mxu0 %v3810_v60  ;;  %v3846_v60 = vld [vmem:[%s7885_s1 + $0x248] sm:$0xff]  ;;  %v3860_v5 = vld [vmem:[%s7885_s1 + $0x2b8] sm:$0xff] }
  0x4d   :  { %4725 = vmatmul.mubr.f32.gmra.mxu1 %v6171_v58  ;;  %4755 = vmatprep.subr.mxu0 %v3809_v62  ;;  %v6339_v6 = vld [vmem:[#allocation2 + $0xc2] sm:$0xff]  ;;  %v6341_v10 = vld [vmem:[#allocation2 + $0xd2] sm:$0xff] }
  0x4e   :  { %4808 = vmatpush3.msra.mxu1 %v3827_v61  ;;  %4671 = vmatprep.mubr.f32.mxu0 %v6062_v4  ;;  %v3863_v61 = vld [vmem:[%s7885_s1 + $0x2d0] sm:$0xff] }
  0x4f   :  { %4809 = vmatprep.subr.mxu1 %v3826_v2  ;;  %4727 = vmatprep.mubr.f32.mxu1 %v6201_v9 }
  0x50   :  { %4756 = vmatpush3.msra.mxu0 %v3809_v62  ;;  %4810 = vmatpush3.msra.mxu1 %v3826_v2  ;;  %v3862_v62 = vld [vmem:[%s7885_s1 + $0x2c8] sm:$0xff]  ;;  %v3844_v2 = vld [vmem:[%s7885_s1 + $0x238] sm:$0xff] }
  0x51   :  { %4672 = vmatmul.mubr.f32.gmra.mxu0 %v6072_v8  ;;  %4728 = vmatmul.mubr.f32.gmra.mxu1 %v6203_v12 }
  0x52   :  { %4757 = vmatprep.subr.mxu0 %v3808_v14  ;;  %4811 = vmatprep.subr.mxu1 %v3825_v16 }
  0x53   :  { %4758 = vmatpush3.msra.mxu0 %v3808_v14  ;;  %4812 = vmatpush3.msra.mxu1 %v3825_v16  ;;  %v3842_v14 = vld [vmem:[%s7885_s1 + $0x228] sm:$0xff]  ;;  %v3859_v16 = vld [vmem:[%s7885_s1 + $0x2b0] sm:$0xff] }
  0x54   :  { %4759 = vmatprep.subr.mxu0 %v3807_v17  ;;  %4813 = vmatprep.subr.mxu1 %v3824_v19 }
  0x55   :  { %4674 = vmatprep.mubr.f32.mxu0 %v6104_v23  ;;  %4730 = vmatprep.mubr.f32.mxu1 %v6224_v20 }
  0x56   :  { %4760 = vmatpush3.msra.mxu0 %v3807_v17  ;;  %4814 = vmatpush3.msra.mxu1 %v3824_v19  ;;  %v3858_v17 = vld [vmem:[%s7885_s1 + $0x2a8] sm:$0xff] }
  0x57   :  { %4675 = vmatmul.mubr.f32.gmra.mxu0 %v6115_v28  ;;  %4731 = vmatmul.mubr.f32.gmra.mxu1 %v6226_v21  ;;  %v6359_v19 = vld [vmem:[#allocation2 + $0xe2] sm:$0xff] }
  0x58   :  { %4761 = vmatprep.subr.mxu0 %v3806_v22  ;;  %4815 = vmatprep.subr.mxu1 %v3823_v24 }
  0x59   :  { %4762 = vmatpush3.msra.mxu0 %v3806_v22  ;;  %4816 = vmatpush3.msra.mxu1 %v3823_v24  ;;  %v6361_v22 = vld [vmem:[#allocation2 + $0xf2] sm:$0xff] }
  0x5a   :  { %4763 = vmatprep.subr.mxu0 %v3805_v25  ;;  %4817 = vmatprep.subr.mxu1 %v3822_v27  ;;  %v3840_v24 = vld [vmem:[%s7885_s1 + $0x218] sm:$0xff] }
  0x5b   :  { %4764 = vmatpush3.msra.mxu0 %v3805_v25  ;;  %4765 = vmatprep.mubr.f32.mxu0 %v550_v33  ;;  %v3857_v25 = vld [vmem:[%s7885_s1 + $0x2a0] sm:$0xff]  ;;  %v3856_v33 = vld [vmem:[%s7885_s1 + $0x298] sm:$0xff] }
  0x5c   :  { %4818 = vmatpush3.msra.mxu1 %v3822_v27  ;;  %4766 = vmatmul.mubr.f32.vlgmr.msra.gmra.mxu0 %v6244_v34  ;;  %v3839_v27 = vld [vmem:[%s7885_s1 + $0x210] sm:$0xff] }
  0x5d   :  { %4819 = vmatprep.subr.mxu1 %v3821_v35  ;;  %4845 = vmatprep.subr.mxu0 %v3852_v36 }
  0x5e   :  { %4820 = vmatpush3.msra.mxu1 %v3821_v35  ;;  %4821 = vmatprep.mubr.f32.mxu1 %v5972_v26  ;;  %v3849_v26 = vld [vmem:[%s7885_s1 + $0x260] sm:$0xff] }
  0x5f   :  { %4846 = vmatpush3.msra.mxu0 %v3852_v36  ;;  %4822 = vmatmul.mubr.f32.vlgmr.msra.gmra.mxu1 %v6012_v44  ;;  %v3866_v44 = vld [vmem:[%s7885_s1 + $0x2e8] sm:$0xff]  ;;  %v6381_v36 = vld [vmem:[#allocation2 + $0x112] sm:$0xff] }
  0x60   :  { %4847 = vmatprep.subr.mxu0 %v3851_v37  ;;  %4901 = vmatprep.subr.mxu1 %v3868_v38  ;;  %v6379_v35 = vld [vmem:[#allocation2 + $0x102] sm:$0xff] }
  0x61   :  { %4768 = vmatprep.mubr.f32.mxu0 %v6260_v39  ;;  %4848 = vmatpush3.msra.mxu0 %v3851_v37  ;;  %v3838_v37 = vld [vmem:[%s7885_s1 + $0x208] sm:$0xff] }
  0x62   :  { %4902 = vmatpush3.msra.mxu1 %v3868_v38  ;;  %4769 = vmatmul.mubr.f32.gmra.mxu0 %v6263_v40  ;;  %v3855_v38 = vld [vmem:[%s7885_s1 + $0x290] sm:$0xff] }
  0x63   :  { %4849 = vmatprep.subr.mxu0 %v3850_v42  ;;  %4903 = vmatprep.subr.mxu1 %v3867_v43 }
  0x64   :  { %4824 = vmatprep.mubr.f32.mxu1 %v6032_v53  ;;  %4850 = vmatpush3.msra.mxu0 %v3850_v42  ;;  %v3847_v53 = vld [vmem:[%s7885_s1 + $0x250] sm:$0xff]  ;;  %v3837_v42 = vld [vmem:[%s7885_s1 + $0x200] sm:$0xff] }
  0x65   :  { %4904 = vmatpush3.msra.mxu1 %v3867_v43  ;;  %4851 = vmatprep.subr.mxu0 %v3849_v26  ;;  %v6395_v43 = vld [vmem:[#allocation2 + $0x120] sm:$0xff] }
  0x66   :  { %4825 = vmatmul.mubr.f32.gmra.mxu1 %v6070_v7  ;;  %4905 = vmatprep.subr.mxu1 %v3866_v44  ;;  %v3864_v7 = vld [vmem:[%s7885_s1 + $0x2d8] sm:$0xff] }
  0x67   :  { %4771 = vmatprep.mubr.f32.mxu0 %v6280_v48  ;;  %4852 = vmatpush3.msra.mxu0 %v3849_v26  ;;  %v3854_v26 = vld [vmem:[%s7885_s1 + $0x288] sm:$0xff] }
  0x68   :  { %4906 = vmatpush3.msra.mxu1 %v3866_v44  ;;  %4772 = vmatmul.mubr.f32.gmra.mxu0 %v6282_v49  ;;  %v3853_v44 = vld [vmem:[%s7885_s1 + $0x280] sm:$0xff] }
  0x69   :  { %4853 = vmatprep.subr.mxu0 %v3848_v50  ;;  %4907 = vmatprep.subr.mxu1 %v3865_v51 }
  0x6a   :  { %4827 = vmatprep.mubr.f32.mxu1 %v6090_v18  ;;  %4854 = vmatpush3.msra.mxu0 %v3848_v50  ;;  %v3845_v18 = vld [vmem:[%s7885_s1 + $0x240] sm:$0xff]  ;;  %v3884_v50 = vld [vmem:[%s7885_s1 + $0x378] sm:$0xff] }
  0x6b   :  { %4908 = vmatpush3.msra.mxu1 %v3865_v51  ;;  %4855 = vmatprep.subr.mxu0 %v3847_v53  ;;  %v3883_v51 = vld [vmem:[%s7885_s1 + $0x370] sm:$0xff] }
  0x6c   :  { %4828 = vmatmul.mubr.f32.gmra.mxu1 %v6117_v30  ;;  %4909 = vmatprep.subr.mxu1 %v3864_v7  ;;  %v6316_v30 = vld [vmem:[#allocation2 + $0x80] sm:$0xff] }
  0x6d   :  { %4774 = vmatprep.mubr.f32.mxu0 %v6300_v55  ;;  %4856 = vmatpush3.msra.mxu0 %v3847_v53  ;;  %v3900_v53 = vld [vmem:[%s7885_s1 + $0x3f8] sm:$0xff] }
  0x6e   :  { %4910 = vmatpush3.msra.mxu1 %v3864_v7  ;;  %4775 = vmatmul.mubr.f32.gmra.mxu0 %v6302_v56  ;;  %v3898_v7 = vld [vmem:[%s7885_s1 + $0x3e8] sm:$0xff] }
  0x6f   :  { %4857 = vmatprep.subr.mxu0 %v3846_v60  ;;  %4911 = vmatprep.subr.mxu1 %v3863_v61 }
  0x70   :  { %4830 = vmatprep.mubr.f32.mxu1 %v6120_v32  ;;  %4858 = vmatpush3.msra.mxu0 %v3846_v60  ;;  %v3843_v32 = vld [vmem:[%s7885_s1 + $0x230] sm:$0xff] }
  0x71   :  { %4912 = vmatpush3.msra.mxu1 %v3863_v61  ;;  %4859 = vmatprep.subr.mxu0 %v3845_v18  ;;  %v3879_v60 = vld [vmem:[%s7885_s1 + $0x350] sm:$0xff]  ;;  %v3896_v61 = vld [vmem:[%s7885_s1 + $0x3d8] sm:$0xff] }
  0x72   :  { %4831 = vmatmul.mubr.f32.gmra.mxu1 %v6316_v30  ;;  %4913 = vmatprep.subr.mxu1 %v3862_v62 }
  0x73   :  { %4777 = vmatprep.mubr.f32.mxu0 %v558_v63  ;;  %4860 = vmatpush3.msra.mxu0 %v3845_v18  ;;  %v3877_v18 = vld [vmem:[%s7885_s1 + $0x340] sm:$0xff]  ;;  %v3894_v63 = vld [vmem:[%s7885_s1 + $0x3c8] sm:$0xff] }
  0x74   :  { %4914 = vmatpush3.msra.mxu1 %v3862_v62  ;;  %4778 = vmatmul.mubr.f32.gmra.mxu0 %v6322_v0  ;;  %v6461_v62 = vld [vmem:[#allocation2 + $0x82] sm:$0xff] }
  0x75   :  { %4861 = vmatprep.subr.mxu0 %v3844_v2  ;;  %4915 = vmatprep.subr.mxu1 %v3861_v3 }
  0x76   :  { %4833 = vmatprep.mubr.f32.mxu1 %v6150_v46  ;;  %4862 = vmatpush3.msra.mxu0 %v3844_v2  ;;  %v3841_v46 = vld [vmem:[%s7885_s1 + $0x220] sm:$0xff] }
  0x77   :  { %4916 = vmatpush3.msra.mxu1 %v3861_v3  ;;  %4863 = vmatprep.subr.mxu0 %v3843_v32  ;;  %v3893_v2 = vld [vmem:[%s7885_s1 + $0x3c0] sm:$0xff]  ;;  %v3875_v3 = vld [vmem:[%s7885_s1 + $0x330] sm:$0xff] }
  0x78   :  { %4834 = vmatmul.mubr.f32.gmra.mxu1 %v6168_v57  ;;  %4917 = vmatprep.subr.mxu1 %v3860_v5 }
  0x79   :  { %4780 = vmatprep.mubr.f32.mxu0 %v6339_v6  ;;  %4864 = vmatpush3.msra.mxu0 %v3843_v32  ;;  %v3892_v32 = vld [vmem:[%s7885_s1 + $0x3b8] sm:$0xff] }
  0x7a   :  { %4918 = vmatpush3.msra.mxu1 %v3860_v5  ;;  %4781 = vmatmul.mubr.f32.gmra.mxu0 %v6341_v10  ;;  %v3891_v5 = vld [vmem:[%s7885_s1 + $0x3b0] sm:$0xff] }
  0x7b   :  { %4865 = vmatprep.subr.mxu0 %v3842_v14  ;;  %4919 = vmatprep.subr.mxu1 %v3859_v16 }
  0x7c   :  { %4836 = vmatprep.mubr.f32.mxu1 %v6171_v58  ;;  %4866 = vmatpush3.msra.mxu0 %v3842_v14  ;;  %v3890_v14 = vld [vmem:[%s7885_s1 + $0x3a8] sm:$0xff] }
  0x7d   :  { %4920 = vmatpush3.msra.mxu1 %v3859_v16  ;;  %4867 = vmatprep.subr.mxu0 %v3841_v46  ;;  %v3872_v16 = vld [vmem:[%s7885_s1 + $0x318] sm:$0xff] }
  0x7e   :  { %4837 = vmatmul.mubr.f32.gmra.mxu1 %v6201_v9  ;;  %4921 = vmatprep.subr.mxu1 %v3858_v17 }
  0x7f   :  { %4783 = vmatprep.mubr.f32.mxu0 %v6359_v19  ;;  %4868 = vmatpush3.msra.mxu0 %v3841_v46  ;;  %v3889_v46 = vld [vmem:[%s7885_s1 + $0x3a0] sm:$0xff] }
  0x80   :  { %4922 = vmatpush3.msra.mxu1 %v3858_v17  ;;  %4784 = vmatmul.mubr.f32.gmra.mxu0 %v6361_v22  ;;  %v3871_v17 = vld [vmem:[%s7885_s1 + $0x310] sm:$0xff] }
  0x81   :  { %4869 = vmatprep.subr.mxu0 %v3840_v24  ;;  %4923 = vmatprep.subr.mxu1 %v3857_v25 }
  0x82   :  { %4839 = vmatprep.mubr.f32.mxu1 %v6203_v12  ;;  %4870 = vmatpush3.msra.mxu0 %v3840_v24  ;;  %v3888_v24 = vld [vmem:[%s7885_s1 + $0x398] sm:$0xff] }
  0x83   :  { %4924 = vmatpush3.msra.mxu1 %v3857_v25  ;;  %4871 = vmatprep.subr.mxu0 %v3839_v27  ;;  %v3870_v25 = vld [vmem:[%s7885_s1 + $0x308] sm:$0xff] }
  0x84   :  { %4840 = vmatmul.mubr.f32.gmra.mxu1 %v6224_v20  ;;  %4925 = vmatprep.subr.mxu1 %v3856_v33 }
  0x85   :  { %4786 = vmatprep.mubr.f32.mxu0 %v6379_v35  ;;  %4872 = vmatpush3.msra.mxu0 %v3839_v27  ;;  %v3887_v27 = vld [vmem:[%s7885_s1 + $0x390] sm:$0xff] }
  0x86   :  { %4926 = vmatpush3.msra.mxu1 %v3856_v33  ;;  %4787 = vmatmul.mubr.f32.gmra.mxu0 %v6381_v36  ;;  %v3869_v33 = vld [vmem:[%s7885_s1 + $0x300] sm:$0xff] }
  0x87   :  { %4873 = vmatprep.subr.mxu0 %v3838_v37  ;;  %4927 = vmatprep.subr.mxu1 %v3855_v38 }
  0x88   :  { %4842 = vmatprep.mubr.f32.mxu1 %v6226_v21  ;;  %4874 = vmatpush3.msra.mxu0 %v3838_v37  ;;  %v6527_v37 = vld [vmem:[#allocation2 + $0x122] sm:$0xff] }
  0x89   :  { %4928 = vmatpush3.msra.mxu1 %v3855_v38  ;;  %4875 = vmatprep.subr.mxu0 %v3837_v42  ;;  %v3886_v38 = vld [vmem:[%s7885_s1 + $0x388] sm:$0xff] }
  0x8a   :  { %4843 = vmatmul.mubr.f32.gmra.mxu1 %v6395_v43  ;;  %4929 = vmatprep.subr.mxu1 %v3854_v26 }
  0x8b   :  { %4876 = vmatpush3.msra.mxu0 %v3837_v42  ;;  %4877 = vmatprep.mubr.f32.mxu0 %v5837_v29  ;;  %v3882_v29 = vld [vmem:[%s7885_s1 + $0x368] sm:$0xff]  ;;  %v1327_v42 = vld [vmem:[#allocation2 + $0x20] sm:$0xff] }
  0x8c   :  { %4930 = vmatpush3.msra.mxu1 %v3854_v26  ;;  %4878 = vmatmul.mubr.f32.vlgmr.msra.gmra.mxu0 %v5864_v41  ;;  %v3899_v41 = vld [vmem:[%s7885_s1 + $0x3f0] sm:$0xff] }
  0x8d   :  { %4931 = vmatprep.subr.mxu1 %v3853_v44  ;;  %4957 = vmatprep.subr.mxu0 %v3884_v50  ;;  %v1328_v26 = vld [vmem:[#allocation2 + $0x30] sm:$0xff] }
  0x8e   :  { %4932 = vmatpush3.msra.mxu1 %v3853_v44  ;;  %4933 = vmatprep.mubr.f32.mxu1 %v6244_v34  ;;  %v3881_v34 = vld [vmem:[%s7885_s1 + $0x360] sm:$0xff] }
  0x8f   :  { %4958 = vmatpush3.msra.mxu0 %v3884_v50  ;;  %4934 = vmatmul.mubr.f32.vlgmr.msra.gmra.mxu1 %v6260_v39  ;;  %v3885_v44 = vld [vmem:[%s7885_s1 + $0x380] sm:$0xff]  ;;  %v3916_v50 = vld [vmem:[%s7885_s1 + $0x478] sm:$0xff] }
  0x90   :  { %4959 = vmatprep.subr.mxu0 %v3883_v51  ;;  %5013 = vmatprep.subr.mxu1 %v3900_v53 }
  0x91   :  { %4880 = vmatprep.mubr.f32.mxu0 %v5879_v47  ;;  %4960 = vmatpush3.msra.mxu0 %v3883_v51  ;;  %v3880_v47 = vld [vmem:[%s7885_s1 + $0x358] sm:$0xff]  ;;  %v1521_v51 = vld [vmem:[#allocation2 + $0x21] sm:$0xff] }
  0x92   :  { %5014 = vmatpush3.msra.mxu1 %v3900_v53  ;;  %4881 = vmatmul.mubr.f32.gmra.mxu0 %v5906_v59  ;;  %v3897_v59 = vld [vmem:[%s7885_s1 + $0x3e0] sm:$0xff]  ;;  %v1522_v53 = vld [vmem:[#allocation2 + $0x31] sm:$0xff] }
  0x93   :  { %4961 = vmatprep.subr.mxu0 %v3882_v29  ;;  %5015 = vmatprep.subr.mxu1 %v3899_v41 }
  0x94   :  { %4936 = vmatprep.mubr.f32.mxu1 %v6263_v40  ;;  %4962 = vmatpush3.msra.mxu0 %v3882_v29  ;;  %v3915_v29 = vld [vmem:[%s7885_s1 + $0x470] sm:$0xff] }
  0x95   :  { %5016 = vmatpush3.msra.mxu1 %v3899_v41  ;;  %4963 = vmatprep.subr.mxu0 %v3881_v34  ;;  %v1329_v41 = vld [vmem:[#allocation2 + $0x40] sm:$0xff] }
  0x96   :  { %4937 = vmatmul.mubr.f32.gmra.mxu1 %v6280_v48  ;;  %5017 = vmatprep.subr.mxu1 %v3898_v7 }
  0x97   :  { %4883 = vmatprep.mubr.f32.mxu0 %v5921_v1  ;;  %4964 = vmatpush3.msra.mxu0 %v3881_v34  ;;  %v3878_v1 = vld [vmem:[%s7885_s1 + $0x348] sm:$0xff] }
  0x98   :  { %5018 = vmatpush3.msra.mxu1 %v3898_v7  ;;  %4884 = vmatmul.mubr.f32.gmra.mxu0 %v5942_v11  ;;  %v3895_v11 = vld [vmem:[%s7885_s1 + $0x3d0] sm:$0xff]  ;;  %v1523_v34 = vld [vmem:[#allocation2 + $0x41] sm:$0xff] }
  0x99   :  { %4965 = vmatprep.subr.mxu0 %v3880_v47  ;;  %5019 = vmatprep.subr.mxu1 %v3897_v59  ;;  %v1330_v7 = vld [vmem:[#allocation2 + $0x50] sm:$0xff] }
  0x9a   :  { %4939 = vmatprep.mubr.f32.mxu1 %v6282_v49  ;;  %4966 = vmatpush3.msra.mxu0 %v3880_v47  ;;  %v3914_v47 = vld [vmem:[%s7885_s1 + $0x468] sm:$0xff] }
  0x9b   :  { %5020 = vmatpush3.msra.mxu1 %v3897_v59  ;;  %4967 = vmatprep.subr.mxu0 %v3879_v60  ;;  %v1524_v59 = vld [vmem:[#allocation2 + $0x51] sm:$0xff] }
  0x9c   :  { %4940 = vmatmul.mubr.f32.gmra.mxu1 %v6300_v55  ;;  %5021 = vmatprep.subr.mxu1 %v3896_v61 }
  0x9d   :  { %4886 = vmatprep.mubr.f32.mxu0 %v5951_v15  ;;  %4968 = vmatpush3.msra.mxu0 %v3879_v60  ;;  %v3876_v15 = vld [vmem:[%s7885_s1 + $0x338] sm:$0xff]  ;;  %v3913_v60 = vld [vmem:[%s7885_s1 + $0x460] sm:$0xff] }
  0x9e   :  { %5022 = vmatpush3.msra.mxu1 %v3896_v61  ;;  %4887 = vmatmul.mubr.f32.gmra.mxu0 %v6158_v52  ;;  %v1331_v61 = vld [vmem:[#allocation2 + $0x60] sm:$0xff] }
  0x9f   :  { %4969 = vmatprep.subr.mxu0 %v3878_v1  ;;  %5023 = vmatprep.subr.mxu1 %v3895_v11 }
  0xa0   :  { %4942 = vmatprep.mubr.f32.mxu1 %v6302_v56  ;;  %4970 = vmatpush3.msra.mxu0 %v3878_v1  ;;  %v1525_v1 = vld [vmem:[#allocation2 + $0x61] sm:$0xff] }
  0xa1   :  { %5024 = vmatpush3.msra.mxu1 %v3895_v11  ;;  %4971 = vmatprep.subr.mxu0 %v3877_v18  ;;  %v1332_v11 = vld [vmem:[#allocation2 + $0x70] sm:$0xff] }
  0xa2   :  { %4943 = vmatmul.mubr.f32.gmra.mxu1 %v6461_v62  ;;  %5025 = vmatprep.subr.mxu1 %v3894_v63 }
  0xa3   :  { %4889 = vmatprep.mubr.f32.mxu0 %v5983_v31  ;;  %4972 = vmatpush3.msra.mxu0 %v3877_v18  ;;  %v3874_v31 = vld [vmem:[%s7885_s1 + $0x328] sm:$0xff]  ;;  %v3912_v18 = vld [vmem:[%s7885_s1 + $0x458] sm:$0xff] }
  0xa4   :  { %5026 = vmatpush3.msra.mxu1 %v3894_v63  ;;  %4890 = vmatmul.mubr.f32.gmra.mxu0 %v6014_v45  ;;  %v1526_v63 = vld [vmem:[#allocation2 + $0x71] sm:$0xff] }
  0xa5   :  { %4973 = vmatprep.subr.mxu0 %v3876_v15  ;;  %5027 = vmatprep.subr.mxu1 %v3893_v2 }
  0xa6   :  { %4945 = vmatprep.mubr.f32.mxu1 %v6322_v0  ;;  %4974 = vmatpush3.msra.mxu0 %v3876_v15  ;;  %v3873_v0 = vld [vmem:[%s7885_s1 + $0x320] sm:$0xff]  ;;  %v3911_v15 = vld [vmem:[%s7885_s1 + $0x450] sm:$0xff] }
  0xa7   :  { %5028 = vmatpush3.msra.mxu1 %v3893_v2  ;;  %4975 = vmatprep.subr.mxu0 %v3875_v3  ;;  %v1334_v2 = vld [vmem:[#allocation2 + $0x90] sm:$0xff] }
  0xa8   :  { %4946 = vmatmul.mubr.f32.gmra.mxu1 %v6339_v6  ;;  %5029 = vmatprep.subr.mxu1 %v3892_v32 }
  0xa9   :  { %4892 = vmatprep.mubr.f32.mxu0 %v6035_v54  ;;  %4976 = vmatpush3.msra.mxu0 %v3875_v3  ;;  %v3910_v3 = vld [vmem:[%s7885_s1 + $0x448] sm:$0xff] }
  0xaa   :  { %5030 = vmatpush3.msra.mxu1 %v3892_v32  ;;  %4893 = vmatmul.mubr.f32.gmra.mxu0 %v6062_v4  ;;  %v1528_v32 = vld [vmem:[#allocation2 + $0x91] sm:$0xff] }
  0xab   :  { %4977 = vmatprep.subr.mxu0 %v3874_v31  ;;  %5031 = vmatprep.subr.mxu1 %v3891_v5 }
  0xac   :  { %4948 = vmatprep.mubr.f32.mxu1 %v6341_v10  ;;  %4978 = vmatpush3.msra.mxu0 %v3874_v31  ;;  %v3909_v31 = vld [vmem:[%s7885_s1 + $0x440] sm:$0xff] }
  0xad   :  { %5032 = vmatpush3.msra.mxu1 %v3891_v5  ;;  %4979 = vmatprep.subr.mxu0 %v3873_v0  ;;  %v3908_v5 = vld [vmem:[%s7885_s1 + $0x438] sm:$0xff] }
  0xae   :  { %4949 = vmatmul.mubr.f32.gmra.mxu1 %v6359_v19  ;;  %5033 = vmatprep.subr.mxu1 %v3890_v14 }
  0xaf   :  { %4895 = vmatprep.mubr.f32.mxu0 %v6072_v8  ;;  %4980 = vmatpush3.msra.mxu0 %v3873_v0 }
  0xb0   :  { %5034 = vmatpush3.msra.mxu1 %v3890_v14  ;;  %4896 = vmatmul.mubr.f32.gmra.mxu0 %v6104_v23 }
  0xb1   :  { %4981 = vmatprep.subr.mxu0 %v3872_v16  ;;  %5035 = vmatprep.subr.mxu1 %v3889_v46 }
  0xb2   :  { %4951 = vmatprep.mubr.f32.mxu1 %v6361_v22  ;;  %4982 = vmatpush3.msra.mxu0 %v3872_v16 }
  0xb3   :  { %5036 = vmatpush3.msra.mxu1 %v3889_v46  ;;  %4983 = vmatprep.subr.mxu0 %v3871_v17 }
  0xb4   :  { %4952 = vmatmul.mubr.f32.gmra.mxu1 %v6379_v35  ;;  %5037 = vmatprep.subr.mxu1 %v3888_v24 }
  0xb5   :  { %4898 = vmatprep.mubr.f32.mxu0 %v6115_v28  ;;  %4984 = vmatpush3.msra.mxu0 %v3871_v17 }
  0xb6   :  { %5038 = vmatpush3.msra.mxu1 %v3888_v24  ;;  %4899 = vmatmul.mubr.f32.gmra.mxu0 %v6205_v13 }
  0xb7   :  { %4985 = vmatprep.subr.mxu0 %v3870_v25  ;;  %5039 = vmatprep.subr.mxu1 %v3887_v27 }
  0xb8   :  { %4954 = vmatprep.mubr.f32.mxu1 %v6381_v36  ;;  %4986 = vmatpush3.msra.mxu0 %v3870_v25  ;;  %v3931_v25 = vld [vmem:[%s7887_s2 + $0xf0] sm:$0xff] }
  0xb9   :  { %5040 = vmatpush3.msra.mxu1 %v3887_v27  ;;  %4987 = vmatprep.subr.mxu0 %v3869_v33 }
  0xba   :  { %4955 = vmatmul.mubr.f32.gmra.mxu1 %v6527_v37  ;;  %5041 = vmatprep.subr.mxu1 %v3886_v38 }
  0xbb   :  { %4988 = vmatpush3.msra.mxu0 %v3869_v33  ;;  %4989 = vmatprep.mubr.f32.mxu0 %v1327_v42 }
  0xbc   :  { %5042 = vmatpush3.msra.mxu1 %v3886_v38  ;;  %4990 = vmatmul.mubr.f32.vlgmr.msra.gmra.mxu0 %v1328_v26  ;;  %v3929_v38 = vld [vmem:[%s7887_s2 + $0xe0] sm:$0xff] }
  0xbd   :  { %5043 = vmatprep.subr.mxu1 %v3885_v44  ;;  %5069 = vmatprep.subr.mxu0 %v3916_v50 }
  0xbe   :  { %5044 = vmatpush3.msra.mxu1 %v3885_v44  ;;  %5045 = vmatprep.mubr.f32.mxu1 %v1521_v51  ;;  %v3928_v51 = vld [vmem:[%s7887_s2 + $0xd8] sm:$0xff] }
  0xbf   :  { %5070 = vmatpush3.msra.mxu0 %v3916_v50  ;;  %5046 = vmatmul.mubr.f32.vlgmr.msra.gmra.mxu1 %v1522_v53  ;;  %v2022_v50 = vld [vmem:[%s7887_s2 + $0x78] sm:$0xff] }
  0xc0   :  { %5071 = vmatprep.subr.mxu0 %v3915_v29  ;;  %4992 = vmatprep.mubr.f32.mxu0 %v1329_v41  ;;  %v2021_v41 = vld [vmem:[%s7887_s2 + $0x70] sm:$0xff] }
  0xc1   :  { %5072 = vmatpush3.msra.mxu0 %v3915_v29  ;;  %5048 = vmatprep.mubr.f32.mxu1 %v1523_v34  ;;  %v3927_v34 = vld [vmem:[%s7887_s2 + $0xd0] sm:$0xff] }
  0xc2   :  { %4993 = vmatmul.mubr.f32.gmra.mxu0 %v1330_v7  ;;  %5073 = vmatprep.subr.mxu0 %v3914_v47  ;;  %v2020_v7 = vld [vmem:[%s7887_s2 + $0x68] sm:$0xff] }
  0xc3   :  { %5074 = vmatpush3.msra.mxu0 %v3914_v47  ;;  %5049 = vmatmul.mubr.f32.gmra.mxu1 %v1524_v59  ;;  %v3926_v47 = vld [vmem:[%s7887_s2 + $0xc8] sm:$0xff] }
  0xc4   :  { %5075 = vmatprep.subr.mxu0 %v3913_v60  ;;  %4995 = vmatprep.mubr.f32.mxu0 %v1331_v61 }
  0xc5   :  { %5076 = vmatpush3.msra.mxu0 %v3913_v60  ;;  %5051 = vmatprep.mubr.f32.mxu1 %v1525_v1  ;;  %v2019_v1 = vld [vmem:[%s7887_s2 + $0x60] sm:$0xff] }
  0xc6   :  { %4996 = vmatmul.mubr.f32.gmra.mxu0 %v1332_v11  ;;  %5077 = vmatprep.subr.mxu0 %v3912_v18  ;;  %v3925_v11 = vld [vmem:[%s7887_s2 + $0xc0] sm:$0xff] }
  0xc7   :  { %5078 = vmatpush3.msra.mxu0 %v3912_v18  ;;  %5052 = vmatmul.mubr.f32.gmra.mxu1 %v1526_v63 }
  0xc8   :  { %5079 = vmatprep.subr.mxu0 %v3911_v15  ;;  %4998 = vmatprep.mubr.f32.mxu0 %v6316_v30  ;;  %v3906_v30 = vld [vmem:[%s7885_s1 + $0x428] sm:$0xff] }
  0xc9   :  { %5080 = vmatpush3.msra.mxu0 %v3911_v15  ;;  %5054 = vmatprep.mubr.f32.mxu1 %v6158_v52  ;;  %v3907_v52 = vld [vmem:[%s7885_s1 + $0x430] sm:$0xff]  ;;  %v2018_v15 = vld [vmem:[%s7887_s2 + $0x58] sm:$0xff] }
  0xca   :  { %4999 = vmatmul.mubr.f32.gmra.mxu0 %v1334_v2  ;;  %5081 = vmatprep.subr.mxu0 %v3910_v3  ;;  %v3924_v2 = vld [vmem:[%s7887_s2 + $0xb8] sm:$0xff] }
  0xcb   :  { %5082 = vmatpush3.msra.mxu0 %v3910_v3  ;;  %5055 = vmatmul.mubr.f32.gmra.mxu1 %v1528_v32  ;;  %v2017_v3 = vld [vmem:[%s7887_s2 + $0x50] sm:$0xff] }
  0xcc   :  { %5083 = vmatprep.subr.mxu0 %v3909_v31  ;;  %5001 = vmatprep.mubr.f32.mxu0 %v6168_v57  ;;  %v3902_v57 = vld [vmem:[%s7885_s1 + $0x408] sm:$0xff]  ;;  %v3923_v32 = vld [vmem:[%s7887_s2 + $0xb0] sm:$0xff] }
  0xcd   :  { %5084 = vmatpush3.msra.mxu0 %v3909_v31  ;;  %5057 = vmatprep.mubr.f32.mxu1 %v6014_v45  ;;  %v3905_v45 = vld [vmem:[%s7885_s1 + $0x420] sm:$0xff] }
  0xce   :  { %5002 = vmatmul.mubr.f32.gmra.mxu0 %v6171_v58  ;;  %5085 = vmatprep.subr.mxu0 %v3908_v5  ;;  %v1536_v58 = vld [vmem:[#allocation2 + $0x131] sm:$0xff] }
  0xcf   :  { %5086 = vmatpush3.msra.mxu0 %v3908_v5  ;;  %5058 = vmatmul.mubr.f32.gmra.mxu1 %v6035_v54  ;;  %v3904_v54 = vld [vmem:[%s7885_s1 + $0x418] sm:$0xff] }
  0xd0   :  { %5087 = vmatprep.subr.mxu0 %v3907_v52  ;;  %5004 = vmatprep.mubr.f32.mxu0 %v6201_v9 }
  0xd1   :  { %5088 = vmatpush3.msra.mxu0 %v3907_v52  ;;  %5060 = vmatprep.mubr.f32.mxu1 %v6062_v4  ;;  %v3903_v4 = vld [vmem:[%s7885_s1 + $0x410] sm:$0xff] }
  0xd2   :  { %5005 = vmatmul.mubr.f32.gmra.mxu0 %v6203_v12  ;;  %5089 = vmatprep.subr.mxu0 %v3906_v30 }
  0xd3   :  { %5090 = vmatpush3.msra.mxu0 %v3906_v30  ;;  %5061 = vmatmul.mubr.f32.gmra.mxu1 %v6072_v8  ;;  %v1342_v8 = vld [vmem:[#allocation2 + $0x130] sm:$0xff]  ;;  %v2016_v30 = vld [vmem:[%s7887_s2 + $0x48] sm:$0xff] }
  0xd4   :  { %5091 = vmatprep.subr.mxu0 %v3905_v45  ;;  %5007 = vmatprep.mubr.f32.mxu0 %v6224_v20 }
  0xd5   :  { %5092 = vmatpush3.msra.mxu0 %v3905_v45  ;;  %5063 = vmatprep.mubr.f32.mxu1 %v6104_v23  ;;  %v3901_v23 = vld [vmem:[%s7885_s1 + $0x400] sm:$0xff]  ;;  %v3922_v45 = vld [vmem:[%s7887_s2 + $0xa8] sm:$0xff] }
  0xd6   :  { %5008 = vmatmul.mubr.f32.gmra.mxu0 %v6226_v21  ;;  %5093 = vmatprep.subr.mxu0 %v3904_v54 }
  0xd7   :  { %5094 = vmatpush3.msra.mxu0 %v3904_v54  ;;  %5064 = vmatmul.mubr.f32.gmra.mxu1 %v6115_v28  ;;  %v1722_v28 = vld [vmem:[#allocation2 + $0x92] sm:$0xff] }
  0xd8   :  { %5095 = vmatprep.subr.mxu0 %v3903_v4  ;;  %5010 = vmatprep.mubr.f32.mxu0 %v6395_v43 }
  0xd9   :  { %5096 = vmatpush3.msra.mxu0 %v3903_v4  ;;  %5066 = vmatprep.mubr.f32.mxu1 %v6205_v13  ;;  %v2015_v4 = vld [vmem:[%s7887_s2 + $0x40] sm:$0xff] }
  0xda   :  { %5011 = vmatmul.mubr.f32.gmra.mxu0 %v1342_v8  ;;  %5097 = vmatprep.subr.mxu0 %v3902_v57  ;;  %v3921_v8 = vld [vmem:[%s7887_s2 + $0xa0] sm:$0xff] }
  0xdb   :  { %5098 = vmatpush3.msra.mxu0 %v3902_v57  ;;  %5067 = vmatmul.mubr.f32.gmra.mxu1 %v1536_v58  ;;  %v2014_v58 = vld [vmem:[%s7887_s2 + $0x38] sm:$0xff] }
  0xdc   :  { %5099 = vmatprep.subr.mxu0 %v3901_v23  ;;  %5101 = vmatprep.mubr.f32.mxu0 %v6260_v39 }
  0xdd   :  { %5100 = vmatpush3.msra.mxu0 %v3901_v23  ;;  %v3920_v23 = vld [vmem:[%s7887_s2 + $0x98] sm:$0xff] }
  0xde   :  { %5102 = vmatmul.mubr.f32.vlgmr.msra.gmra.mxu0 %v6263_v40  ;;  %5181 = vmatprep.subr.mxu0 %v2022_v50 }
  0xdf   :  { %5104 = vmatprep.mubr.f32.mxu0 %v6280_v48  ;;  %5182 = vmatpush3.msra.mxu0 %v2022_v50 }
  0xe0   :  { %5183 = vmatprep.subr.mxu0 %v2021_v41 }
  0xe1   :  { %5184 = vmatpush3.msra.mxu0 %v2021_v41 }
  0xe2   :  { %5105 = vmatmul.mubr.f32.gmra.mxu0 %v6282_v49  ;;  %5185 = vmatprep.subr.mxu0 %v2020_v7 }
  0xe3   :  { %5107 = vmatprep.mubr.f32.mxu0 %v6300_v55  ;;  %5186 = vmatpush3.msra.mxu0 %v2020_v7  ;;  %v2007_v7 = vld [vmem:[%s7887_s2] sm:$0xff] }
  0xe4   :  { %5187 = vmatprep.subr.mxu0 %v2019_v1 }
  0xe5   :  { %v4655_v9 = vpop.f32.mrf.mxu0  ;;  %5188 = vmatpush3.msra.mxu0 %v2019_v1 }
  0xe6   :  { %5108 = vmatmul.mubr.f32.gmra.mxu0 %v6302_v56  ;;  %v1730_v56 = vld [vmem:[#allocation2 + $0x132] sm:$0xff]  ;;  %5189 = vmatprep.subr.mxu0 %v2018_v15 }
  0xe7   :  { %5110 = vmatprep.mubr.f32.mxu0 %v6461_v62  ;;  %v6613_v20 = vpop.f32.mrf.mxu0  ;;  %5190 = vmatpush3.msra.mxu0 %v2018_v15 }
  0xe8   :  { %5191 = vmatprep.subr.mxu0 %v2017_v3 }
  0xe9   :  { %v4658_v39 = vpop.f32.mrf.mxu0  ;;  %5192 = vmatpush3.msra.mxu0 %v2017_v3 }
  0xea   :  { %5111 = vmatmul.mubr.f32.gmra.mxu0 %v1722_v28  ;;  %5193 = vmatprep.subr.mxu0 %v2016_v30 }
  0xeb   :  { %5113 = vmatprep.mubr.f32.mxu0 %v6339_v6  ;;  %v6621_v49 = vpop.f32.mrf.mxu0  ;;  %5194 = vmatpush3.msra.mxu0 %v2016_v30 }
  0xec   :  { %5195 = vmatprep.subr.mxu0 %v2015_v4 }
  0xed   :  { %v4661_v6 = vpop.f32.mrf.mxu0  ;;  %5196 = vmatpush3.msra.mxu0 %v2015_v4 }
  0xee   :  { %5114 = vmatmul.mubr.f32.gmra.mxu0 %v6341_v10  ;;  %5197 = vmatprep.subr.mxu0 %v2014_v58 }
  0xef   :  { %5116 = vmatprep.mubr.f32.mxu0 %v6359_v19  ;;  %5198 = vmatpush3.msra.mxu0 %v2014_v58 }
  0xf2   :  { %5117 = vmatmul.mubr.f32.gmra.mxu0 %v6361_v22  ;;  %v6629_v22 = vpop.f32.mrf.mxu0 }
  0xf3   :  { %5119 = vmatprep.mubr.f32.mxu0 %v6379_v35 }
  0xf6   :  { %5120 = vmatmul.mubr.f32.gmra.mxu0 %v6381_v36  ;;  %v4664_v43 = vpop.f32.mrf.mxu0  ;;  %v3932_v36 = vld [vmem:[%s7887_s2 + $0xf8] sm:$0xff] }
  0xf7   :  { %5122 = vmatprep.mubr.f32.mxu0 %v6527_v37  ;;  %5125 = vmatprep.subr.mxu1 %v3932_v36  ;;  %v3930_v37 = vld [vmem:[%s7887_s2 + $0xe8] sm:$0xff] }
  0xf8   :  { %v6635_v14 = vpop.f32.mrf.mxu0  ;;  %5126 = vmatpush3.msra.mxu1 %v3932_v36  ;;  %v3917_v36 = vld [vmem:[%s7887_s2 + $0x80] sm:$0xff] }
  0xf9   :  { %v4711_v12 = vpop.f32.mrf.mxu1  ;;  %5127 = vmatprep.subr.mxu1 %v3931_v25 }
  0xfa   :  { %v6611_v13 = vadd.f32 %v4711_v12, %v4655_v9  ;;  %5123 = vmatmul.mubr.f32.gmra.mxu0 %v1730_v56  ;;  %5128 = vmatpush3.msra.mxu1 %v3931_v25 }
  0xfb   :  { %v6615_v21 = vpop.f32.mrf.mxu1  ;;  %5129 = vmatprep.subr.mxu1 %v3930_v37 }
  0xfc   :  { %5130 = vmatpush3.msra.mxu1 %v3930_v37  ;;  %v2010_v37 = vld [vmem:[%s7887_s2 + $0x18] sm:$0xff] }
  0xfd   :  { %v4714_v40 = vpop.f32.mrf.mxu1  ;;  %5131 = vmatprep.subr.mxu1 %v3929_v38 }
  0xfe   :  { %v6619_v48 = vadd.f32 %v4714_v40, %v4658_v39  ;;  %5132 = vmatpush3.msra.mxu1 %v3929_v38  ;;  %v2013_v39 = vld [vmem:[%s7887_s2 + $0x30] sm:$0xff]  ;;  %v6767_v38 = vld [vmem:[%s7887_s2 + $0x178] sm:$0xff] }
  0xff   :  { %v6623_v55 = vpop.f32.mrf.mxu1  ;;  %v4667_v46 = vpop.f32.mrf.mxu0  ;;  %5133 = vmatprep.subr.mxu1 %v3928_v51  ;;  %v3919_v40 = vld [vmem:[%s7887_s2 + $0x90] sm:$0xff]  ;;  %5199 = vmatprep.subr.mxu0 %v2013_v39  ;;  %7891 = vst [vmem:[#allocation4_spill] sm:$0xff] %v6767_v38 }
 0x100   :  { %5134 = vmatpush3.msra.mxu1 %v3928_v51  ;;  %5200 = vmatpush3.msra.mxu0 %v2013_v39  ;;  %v2008_v51 = vld [vmem:[%s7887_s2 + $0x8] sm:$0xff] }
 0x101   :  { %v4717_v10 = vpop.f32.mrf.mxu1  ;;  %v6647_v27 = vpop.f32.mrf.mxu0  ;;  %5135 = vmatprep.subr.mxu1 %v3927_v34 }
 0x102   :  { %v6627_v19 = vadd.f32 %v4717_v10, %v4661_v6  ;;  %5136 = vmatpush3.msra.mxu1 %v3927_v34  ;;  %v3918_v6 = vld [vmem:[%s7887_s2 + $0x88] sm:$0xff] }
 0x103   :  { %v6631_v35 = vpop.f32.mrf.mxu1  ;;  %5137 = vmatprep.subr.mxu1 %v3926_v47 }
 0x104   :  { %5138 = vmatpush3.msra.mxu1 %v3926_v47  ;;  %v1991_v47 = vld [vmem:[#allocation3] sm:$0xff] }
 0x105   :  { %v4720_v62 = vpop.f32.mrf.mxu1  ;;  %5139 = vmatprep.subr.mxu1 %v3925_v11  ;;  %5213 = vmatprep.mubr.f32.mxu0 %v1991_v47 }
 0x106   :  { %v6633_v0 = vadd.f32 %v4720_v62, %v4664_v43  ;;  %5140 = vmatpush3.msra.mxu1 %v3925_v11  ;;  %v2011_v62 = vld [vmem:[%s7887_s2 + $0x20] sm:$0xff] }
 0x107   :  { %v6637_v16 = vpop.f32.mrf.mxu1  ;;  %5141 = vmatprep.subr.mxu1 %v3924_v2 }
 0x108   :  { %5142 = vmatpush3.msra.mxu1 %v3924_v2 }
 0x109   :  { %v4723_v17 = vpop.f32.mrf.mxu1  ;;  %5143 = vmatprep.subr.mxu1 %v3923_v32 }
 0x10a   :  { %v6642_v24 = vadd.f32 %v4723_v17, %v4667_v46  ;;  %5144 = vmatpush3.msra.mxu1 %v3923_v32  ;;  %v2023_v17 = vld [vmem:[#allocation3 + $0x1] sm:$0xff] }
 0x10b   :  { %v6649_v33 = vpop.f32.mrf.mxu1  ;;  %v4670_v42 = vpop.f32.mrf.mxu0  ;;  %5145 = vmatprep.subr.mxu1 %v3922_v45  ;;  %5157 = vmatprep.mubr.f32.mxu1 %v2023_v17 }
 0x10c   :  { %5146 = vmatpush3.msra.mxu1 %v3922_v45 }
 0x10d   :  { %v4726_v26 = vpop.f32.mrf.mxu1  ;;  %v6665_v53 = vpop.f32.mrf.mxu0  ;;  %5147 = vmatprep.subr.mxu1 %v3921_v8 }
 0x10e   :  { %v6657_v44 = vadd.f32 %v4726_v26, %v4670_v42  ;;  %5148 = vmatpush3.msra.mxu1 %v3921_v8  ;;  %v2009_v42 = vld [vmem:[%s7887_s2 + $0x10] sm:$0xff] }
 0x10f   :  { %v6667_v29 = vpop.f32.mrf.mxu1  ;;  %5149 = vmatprep.subr.mxu1 %v3920_v23 }
 0x110   :  { %5150 = vmatpush3.msra.mxu1 %v3920_v23 }
 0x111   :  { %v4673_v59 = vpop.f32.mrf.mxu0  ;;  %v4729_v60 = vpop.f32.mrf.mxu1  ;;  %5151 = vmatprep.subr.mxu1 %v3919_v40 }
 0x112   :  { %v6681_v61 = vadd.f32 %v4729_v60, %v4673_v59  ;;  %5152 = vmatpush3.msra.mxu1 %v3919_v40  ;;  %v6793_v60 = vld [vmem:[%s7887_s2 + $0x1f8] sm:$0xff] }
 0x113   :  { %v6689_v18 = vpop.f32.mrf.mxu0  ;;  %v6691_v63 = vpop.f32.mrf.mxu1  ;;  %5153 = vmatprep.subr.mxu1 %v3918_v6  ;;  %7892 = vst [vmem:[#allocation5_spill] sm:$0xff] %v6793_v60 }
 0x114   :  { %5154 = vmatpush3.msra.mxu1 %v3918_v6 }
 0x115   :  { %5155 = vmatprep.subr.mxu1 %v3917_v36 }
 0x116   :  { %5156 = vmatpush3.msra.mxu1 %v3917_v36 }
 0x117   :  { %v4676_v31 = vpop.f32.mrf.mxu0  ;;  %v4732_v5 = vpop.f32.mrf.mxu1  ;;  %5237 = vmatprep.subr.mxu1 %v6767_v38 }
 0x118   :  { %v6705_v52 = vadd.f32 %v4732_v5, %v4676_v31 }
 0x119   :  { %v6713_v54 = vpop.f32.mrf.mxu0  ;;  %v6727_v28 = vpop.f32.mrf.mxu1 }
 0x11c   :  { %v4767_v57 = vpop.f32.mrf.mxu0 }
 0x11d   :  { %v6730_v9 = vadd.f32 %v4767_v57, %v6611_v13  ;;  %v2012_v13 = vld [vmem:[%s7887_s2 + $0x28] sm:$0xff] }
 0x11e   :  { %v6732_v12 = vpop.f32.mrf.mxu0  ;;  %5201 = vmatprep.subr.mxu0 %v2012_v13 }
 0x11f   :  { %v6740_v56 = vpop.f32.mrf.mxu1  ;;  %5202 = vmatpush3.msra.mxu0 %v2012_v13 }
 0x120   :  { %5203 = vmatprep.subr.mxu0 %v2011_v62 }
 0x121   :  { %v6748_v43 = vpop.f32.mrf.mxu1  ;;  %5204 = vmatpush3.msra.mxu0 %v2011_v62 }
 0x122   :  { %v4770_v10 = vpop.f32.mrf.mxu0  ;;  %5205 = vmatprep.subr.mxu0 %v2010_v37 }
 0x123   :  { %v6757_v46 = vadd.f32 %v4770_v10, %v6619_v48  ;;  %5206 = vmatpush3.msra.mxu0 %v2010_v37 }
 0x124   :  { %v6759_v25 = vpop.f32.mrf.mxu0  ;;  %5207 = vmatprep.subr.mxu0 %v2009_v42 }
 0x125   :  { %5208 = vmatpush3.msra.mxu0 %v2009_v42 }
 0x126   :  { %v6769_v48 = vpop.f32.mrf.mxu1  ;;  %5209 = vmatprep.subr.mxu0 %v2008_v51 }
 0x127   :  { %5210 = vmatpush3.msra.mxu0 %v2008_v51 }
 0x128   :  { %v4773_v26 = vpop.f32.mrf.mxu0  ;;  %v6775_v50 = vpop.f32.mrf.mxu1  ;;  %5211 = vmatprep.subr.mxu0 %v2007_v7 }
 0x129   :  { %v6781_v41 = vadd.f32 %v4773_v26, %v6627_v19  ;;  %5212 = vmatpush3.msra.mxu0 %v2007_v7 }
 0x12a   :  { %v6783_v34 = vpop.f32.mrf.mxu0  ;;  %5293 = vmatprep.subr.mxu0 %v6793_v60 }
 0x12c   :  { %v6788_v59 = vpop.f32.mrf.mxu1 }
 0x12e   :  { %v4776_v19 = vpop.f32.mrf.mxu0  ;;  %v6796_v1 = vpop.f32.mrf.mxu1 }
 0x12f   :  { %v6799_v11 = vadd.f32 %v4776_v19, %v6633_v0 }
 0x130   :  { %v6801_v15 = vpop.f32.mrf.mxu0 }
 0x132   :  { %v6803_v2 = vpop.f32.mrf.mxu1 }
 0x134   :  { %v4779_v3 = vpop.f32.mrf.mxu0  ;;  %v6805_v32 = vpop.f32.mrf.mxu1 }
 0x135   :  { %v6808_v31 = vadd.f32 %v4779_v3, %v6642_v24 }
 0x136   :  { %v6810_v5 = vpop.f32.mrf.mxu0 }
 0x138   :  { %v6812_v30 = vpop.f32.mrf.mxu1 }
 0x13a   :  { %v4782_v45 = vpop.f32.mrf.mxu0  ;;  %v6814_v4 = vpop.f32.mrf.mxu1 }
 0x13b   :  { %7893 = vst [vmem:[#allocation6_spill] sm:$0xff] %v6814_v4  ;;  %v6817_v0 = vadd.f32 %v4782_v45, %v6657_v44 }
 0x13c   :  { %v6819_v8 = vpop.f32.mrf.mxu0 }
 0x13d   :  { %7894 = vst [vmem:[#allocation7_spill] sm:$0xff] %v6817_v0  ;;  %7895 = vst [vmem:[#allocation8_spill] sm:$0xff] %v6819_v8 }
 0x13e   :  { %v6821_v57 = vpop.f32.mrf.mxu1 }
 0x13f   :  { %7896 = vst [vmem:[#allocation9_spill] sm:$0xff] %v6821_v57 }
 0x140   :  { %v4785_v58 = vpop.f32.mrf.mxu0  ;;  %v6823_v23 = vpop.f32.mrf.mxu1 }
 0x141   :  { %7897 = vst [vmem:[#allocation10_spill] sm:$0xff] %v6823_v23  ;;  %v6826_v24 = vadd.f32 %v4785_v58, %v6681_v61 }
 0x142   :  { %v6828_v39 = vpop.f32.mrf.mxu0 }
 0x143   :  { %7898 = vst [vmem:[#allocation11_spill] sm:$0xff] %v6826_v24  ;;  %7899 = vst [vmem:[#allocation12_spill] sm:$0xff] %v6828_v39 }
 0x144   :  { %v6830_v40 = vpop.f32.mrf.mxu1 }
 0x145   :  { %7900 = vst [vmem:[#allocation13_spill] sm:$0xff] %v6830_v40 }
 0x146   :  { %v4788_v13 = vpop.f32.mrf.mxu0  ;;  %v6832_v6 = vpop.f32.mrf.mxu1 }
 0x147   :  { %7901 = vst [vmem:[#allocation14_spill] sm:$0xff] %v6832_v6  ;;  %v6835_v44 = vadd.f32 %v4788_v13, %v6705_v52 }
 0x148   :  { %v6837_v10 = vpop.f32.mrf.mxu0 }
 0x149   :  { %7902 = vst [vmem:[#allocation15_spill] sm:$0xff] %v6835_v44  ;;  %7903 = vst [vmem:[#allocation16_spill] sm:$0xff] %v6837_v10 }
 0x14a   :  { %v6839_v62 = vpop.f32.mrf.mxu1 }
 0x14b   :  { %7904 = vst [vmem:[#allocation17_spill] sm:$0xff] %v6839_v62 }
 0x14c   :  { %v6841_v36 = vpop.f32.mrf.mxu1  ;;  %v4879_v17 = vpop.f32.mrf.mxu0 }
 0x14d   :  { %7905 = vst [vmem:[#allocation18_spill] sm:$0xff] %v6841_v36 }
 0x14e   :  { %v1037_v37 = vpop.f32.mrf.mxu0 }
 0x14f   :  { %v4935_v61 = vpop.f32.mrf.mxu1 }
 0x151   :  { %v6843_v26 = vpop.f32.mrf.mxu1 }
 0x152   :  { %v4882_v42 = vpop.f32.mrf.mxu0 }
 0x154   :  { %v6845_v51 = vpop.f32.mrf.mxu0 }
 0x156   :  { %v6847_v7 = vpop.f32.mrf.mxu1 }
 0x158   :  { %v6849_v47 = vpop.f32.mrf.mxu0  ;;  %v6851_v52 = vpop.f32.mrf.mxu1 }
 0x15a   :  { %v6853_v19 = vpop.f32.mrf.mxu0 }
 0x15c   :  { %v6855_v3 = vpop.f32.mrf.mxu1 }
 0x15e   :  { %v6857_v45 = vpop.f32.mrf.mxu0  ;;  %v6859_v58 = vpop.f32.mrf.mxu1 }
 0x160   :  { %v6861_v13 = vpop.f32.mrf.mxu0 }
 0x161   :  { %7906 = vst [vmem:[#allocation19_spill] sm:$0xff] %v6861_v13 }
 0x162   :  { %v6863_v60 = vpop.f32.mrf.mxu1 }
 0x163   :  { %7907 = vst [vmem:[#allocation20_spill] sm:$0xff] %v6863_v60 }
 0x164   :  { %v6865_v36 = vpop.f32.mrf.mxu0  ;;  %v6867_v62 = vpop.f32.mrf.mxu1 }
 0x165   :  { %7908 = vst [vmem:[#allocation21_spill] sm:$0xff] %v6865_v36  ;;  %7909 = vst [vmem:[#allocation22_spill] sm:$0xff] %v6867_v62 }
 0x166   :  { %v6869_v44 = vpop.f32.mrf.mxu0 }
 0x167   :  { %7910 = vst [vmem:[#allocation23_spill] sm:$0xff] %v6869_v44 }
 0x168   :  { %v6871_v10 = vpop.f32.mrf.mxu1 }
 0x169   :  { %7911 = vst [vmem:[#allocation24_spill] sm:$0xff] %v6871_v10 }
 0x16a   :  { %v6873_v6 = vpop.f32.mrf.mxu0  ;;  %v6875_v40 = vpop.f32.mrf.mxu1 }
 0x16b   :  { %7912 = vst [vmem:[#allocation25_spill] sm:$0xff] %v6873_v6  ;;  %7913 = vst [vmem:[#allocation26_spill] sm:$0xff] %v6875_v40 }
 0x16c   :  { %v6877_v24 = vpop.f32.mrf.mxu0 }
 0x16d   :  { %7914 = vst [vmem:[#allocation27_spill] sm:$0xff] %v6877_v24 }
 0x16e   :  { %v6879_v38 = vpop.f32.mrf.mxu1 }
 0x16f   :  { %7915 = vst [vmem:[#allocation28_spill] sm:$0xff] %v6879_v38 }
 0x170   :  { %v6881_v23 = vpop.f32.mrf.mxu0  ;;  %v6883_v39 = vpop.f32.mrf.mxu1 }
 0x171   :  { %7916 = vst [vmem:[#allocation29_spill] sm:$0xff] %v6881_v23  ;;  %7917 = vst [vmem:[#allocation30_spill] sm:$0xff] %v6883_v39 }
 0x172   :  { %v6885_v57 = vpop.f32.mrf.mxu0 }
 0x173   :  { %7918 = vst [vmem:[#allocation31_spill] sm:$0xff] %v6885_v57 }
 0x174   :  { %v6887_v0 = vpop.f32.mrf.mxu1 }
 0x175   :  { %7919 = vst [vmem:[#allocation32_spill] sm:$0xff] %v6887_v0 }
 0x176   :  { %v6889_v62 = vpop.f32.mrf.mxu0  ;;  %v6891_v44 = vpop.f32.mrf.mxu1 }
 0x177   :  { %7920 = vst [vmem:[#allocation33_spill] sm:$0xff] %v6889_v62  ;;  %7921 = vst [vmem:[#allocation34_spill] sm:$0xff] %v6891_v44 }
 0x178   :  { %v6893_v10 = vpop.f32.mrf.mxu0 }
 0x179   :  { %7922 = vst [vmem:[#allocation35_spill] sm:$0xff] %v6893_v10 }
 0x17a   :  { %v6895_v6 = vpop.f32.mrf.mxu1 }
 0x17b   :  { %7923 = vst [vmem:[#allocation36_spill] sm:$0xff] %v6895_v6 }
 0x17c   :  { %v6897_v40 = vpop.f32.mrf.mxu1  ;;  %v4991_v24 = vpop.f32.mrf.mxu0 }
 0x17d   :  { %7924 = vst [vmem:[#allocation37_spill] sm:$0xff] %v6897_v40  ;;  %v472_v40 = vadd.f32 %v6615_v21, %v6613_v20 }
 0x17e   :  { %v1426_v38 = vpop.f32.mrf.mxu0 }
 0x17f   :  { %v5047_v36 = vpop.f32.mrf.mxu1  ;;  %v728_v13 = vadd.f32 %v6732_v12, %v472_v40  ;;  %v492_v12 = vadd.f32 %v6631_v35, %v6629_v22 }
 0x181   :  { %v1620_v23 = vpop.f32.mrf.mxu1 }
 0x182   :  { %v4994_v60 = vpop.f32.mrf.mxu0 }
 0x183   :  { %v6899_v8 = vpop.f32.mrf.mxu1 }
 0x184   :  { %v1436_v39 = vpop.f32.mrf.mxu0  ;;  %7925 = vst [vmem:[#allocation38_spill] sm:$0xff] %v6899_v8 }
 0x185   :  { %v6903_v0 = vpop.f32.mrf.mxu1 }
 0x186   :  { %v6901_v57 = vpop.f32.mrf.mxu0 }
 0x187   :  { %7926 = vst [vmem:[#allocation39_spill] sm:$0xff] %v6901_v57  ;;  %v6909_v10 = vpop.f32.mrf.mxu1 }
 0x188   :  { %v6905_v62 = vpop.f32.mrf.mxu0  ;;  %7929 = vst [vmem:[#allocation42_spill] sm:$0xff] %v6909_v10 }
 0x189   :  { %7927 = vst [vmem:[#allocation40_spill] sm:$0xff] %v6905_v62  ;;  %v6918_v8 = vpop.f32.mrf.mxu1  ;;  %v482_v62 = vadd.f32 %v6623_v55, %v6621_v49  ;;  %v925_v49 = vadd.f32 %v6769_v48, %v6757_v46 }
 0x18a   :  { %v6907_v44 = vpop.f32.mrf.mxu0 }
 0x18b   :  { %7928 = vst [vmem:[#allocation41_spill] sm:$0xff] %v6907_v44  ;;  %v923_v44 = vadd.f32 %v6740_v56, %v6730_v9  ;;  %v730_v20 = vadd.f32 %v6759_v25, %v482_v62  ;;  %v6932_v40 = vpop.f32.mrf.mxu1  ;;  %v732_v9 = vadd.f32 %v6783_v34, %v492_v12  ;;  %v1119_v25 = vadd.f32 %v4882_v42, %v925_v49  ;;  %v7937_v49 = vld [vmem:[#allocation20_spill] sm:$0xff] }
 0x18c   :  { %v6911_v6 = vpop.f32.mrf.mxu0  ;;  %v927_v62 = vadd.f32 %v6788_v59, %v6781_v41  ;;  %v929_v41 = vadd.f32 %v6803_v2, %v6799_v11 }
 0x18d   :  { %7930 = vst [vmem:[#allocation43_spill] sm:$0xff] %v6911_v6  ;;  %v922_v6 = vadd.f32 %v6748_v43, %v728_v13  ;;  %v1117_v21 = vadd.f32 %v4879_v17, %v923_v44  ;;  %v924_v43 = vadd.f32 %v6775_v50, %v730_v20  ;;  %v502_v44 = vadd.f32 %v6637_v16, %v6635_v14  ;;  %v6944_v22 = vpop.f32.mrf.mxu1 }
 0x18e   :  { %v6915_v4 = vpop.f32.mrf.mxu0  ;;  %v1313_v14 = vadd.f32 %v6847_v7, %v1119_v25  ;;  %v1121_v16 = vadd.f32 %v6849_v47, %v927_v62  ;;  %v1123_v11 = vadd.f32 %v6857_v45, %v929_v41  ;;  %v7934_v45 = vld [vmem:[#allocation39_spill] sm:$0xff] }
 0x18f   :  { %7931 = vst [vmem:[#allocation44_spill] sm:$0xff] %v6915_v4  ;;  %v1116_v55 = vadd.f32 %v1037_v37, %v922_v6  ;;  %v1311_v13 = vadd.f32 %v4935_v61, %v1117_v21  ;;  %v1118_v48 = vadd.f32 %v6845_v51, %v924_v43  ;;  %v926_v6 = vadd.f32 %v6796_v1, %v732_v9  ;;  %v7935_v21 = vld [vmem:[#allocation6_spill] sm:$0xff]  ;;  %v7940_v62 = vld [vmem:[#allocation7_spill] sm:$0xff] }
 0x190   :  { %v6920_v57 = vpop.f32.mrf.mxu0  ;;  %v734_v50 = vadd.f32 %v6801_v15, %v502_v44  ;;  %v512_v61 = vadd.f32 %v6649_v33, %v6647_v27  ;;  %v522_v15 = vadd.f32 %v6667_v29, %v6665_v53  ;;  %v1508_v51 = vadd.f32 %v4994_v60, %v1313_v14  ;;  %v7939_v43 = vld [vmem:[#allocation40_spill] sm:$0xff] }
 0x191   :  { %v1310_v46 = vadd.f32 %v6843_v26, %v1116_v55  ;;  %v1506_v34 = vadd.f32 %v4991_v24, %v1311_v13  ;;  %v1120_v59 = vadd.f32 %v6853_v19, %v926_v6  ;;  %v6963_v24 = vpop.f32.mrf.mxu1  ;;  %v1312_v42 = vadd.f32 %v6851_v52, %v1118_v48 }
 0x192   :  { %v6926_v10 = vpop.f32.mrf.mxu0  ;;  %v928_v27 = vadd.f32 %v6805_v32, %v734_v50  ;;  %v736_v33 = vadd.f32 %v6810_v5, %v512_v61  ;;  %v1315_v7 = vadd.f32 %v6855_v3, %v1121_v16  ;;  %v542_v53 = vadd.f32 %v6727_v28, %v6713_v54  ;;  %v7936_v54 = vld [vmem:[#allocation8_spill] sm:$0xff]  ;;  %v7943_v50 = vld [vmem:[#allocation22_spill] sm:$0xff]  ;;  %v7944_v16 = vld [vmem:[#allocation23_spill] sm:$0xff] }
 0x193   :  { %v1505_v37 = vadd.f32 %v1426_v38, %v1310_v46  ;;  %v1700_v26 = vadd.f32 %v5047_v36, %v1506_v34  ;;  %v532_v38 = vadd.f32 %v6691_v63, %v6689_v18  ;;  %v1507_v19 = vadd.f32 %v1436_v39, %v1312_v42  ;;  %v7932_v63 = vld [vmem:[#allocation19_spill] sm:$0xff]  ;;  %v6982_v32 = vpop.f32.mrf.mxu1  ;;  %v7933_v36 = vld [vmem:[#allocation38_spill] sm:$0xff]  ;;  %v7941_v46 = vld [vmem:[#allocation9_spill] sm:$0xff] }
 0x194   :  { %v6934_v4 = vpop.f32.mrf.mxu0  ;;  %v931_v29 = vadd.f32 %v6812_v30, %v6808_v31  ;;  %v1314_v18 = vadd.f32 %v6859_v58, %v1120_v59  ;;  %v1122_v60 = vadd.f32 %v7932_v63, %v928_v27  ;;  %v1702_v52 = vadd.f32 %v7933_v36, %v1508_v51  ;;  %v7938_v30 = vld [vmem:[#allocation21_spill] sm:$0xff]  ;;  %v7942_v34 = vld [vmem:[#allocation12_spill] sm:$0xff]  ;;  %v7945_v59 = vld [vmem:[#allocation42_spill] sm:$0xff] }
 0x195   :  { %v1699_v47 = vadd.f32 %v1620_v23, %v1505_v37  ;;  %v1510_v3 = vadd.f32 %v7934_v45, %v1315_v7  ;;  %v930_v12 = vadd.f32 %v7935_v21, %v736_v33  ;;  %v738_v28 = vadd.f32 %v7936_v54, %v522_v15  ;;  %v7002_v61 = vpop.f32.mrf.mxu1  ;;  %v7946_v42 = vld [vmem:[#allocation41_spill] sm:$0xff]  ;;  %v7947_v27 = vld [vmem:[#allocation10_spill] sm:$0xff]  ;;  %v7951_v63 = vld [vmem:[#allocation43_spill] sm:$0xff] }
 0x196   :  { %v6939_v56 = vpop.f32.mrf.mxu0  ;;  %v1317_v31 = vadd.f32 %v7937_v49, %v1123_v11  ;;  %v1125_v58 = vadd.f32 %v7938_v30, %v931_v29  ;;  %v1701_v9 = vadd.f32 %v6903_v0, %v1507_v19  ;;  %v1509_v13 = vadd.f32 %v7939_v43, %v1314_v18  ;;  %v3947_v0 = vld [vmem:[%s7887_s2 + $0x170] sm:$0xff]  ;;  %v7948_v11 = vld [vmem:[#allocation24_spill] sm:$0xff]  ;;  %v7949_v7 = vld [vmem:[#allocation25_spill] sm:$0xff] }
 0x197   :  { %v933_v48 = vadd.f32 %v7941_v46, %v7940_v62  ;;  %v740_v6 = vadd.f32 %v7942_v34, %v532_v38  ;;  %v1316_v14 = vadd.f32 %v7943_v50, %v1122_v60  ;;  %v1124_v37 = vadd.f32 %v7944_v16, %v930_v12  ;;  %v3946_v29 = vld [vmem:[%s7887_s2 + $0x168] sm:$0xff]  ;;  %v7955_v12 = vld [vmem:[#allocation26_spill] sm:$0xff]  ;;  %v3945_v30 = vld [vmem:[%s7887_s2 + $0x160] sm:$0xff] }
 0x198   :  { %v6946_v35 = vpop.f32.mrf.mxu0  ;;  %v1704_v15 = vadd.f32 %v7945_v59, %v1510_v3  ;;  %v932_v33 = vadd.f32 %v7947_v27, %v738_v28  ;;  %v1703_v18 = vadd.f32 %v6918_v8, %v1509_v13  ;;  %v7953_v45 = vld [vmem:[#allocation13_spill] sm:$0xff]  ;;  %v7956_v28 = vld [vmem:[#allocation27_spill] sm:$0xff]  ;;  %v7959_v46 = vld [vmem:[#allocation28_spill] sm:$0xff] }
 0x199   :  { %v1511_v60 = vadd.f32 %v7951_v63, %v1316_v14  ;;  %v1318_v54 = vadd.f32 %v7955_v12, %v1124_v37  ;;  %v7960_v34 = vld [vmem:[#allocation29_spill] sm:$0xff]  ;;  %v7963_v59 = vld [vmem:[#allocation30_spill] sm:$0xff] }
 0x19a   :  { %v6954_v17 = vpop.f32.mrf.mxu0  ;;  %v1126_v49 = vadd.f32 %v7956_v28, %v932_v33  ;;  %v3944_v33 = vld [vmem:[%s7887_s2 + $0x158] sm:$0xff]  ;;  %v7969_v12 = vld [vmem:[#allocation34_spill] sm:$0xff] }
 0x19b   :  { %v1513_v14 = vadd.f32 %v6920_v57, %v1318_v54  ;;  %v3963_v57 = vld [vmem:[%s7887_s2 + $0x1f0] sm:$0xff]  ;;  %v7970_v28 = vld [vmem:[#allocation35_spill] sm:$0xff] }
 0x19c   :  { %v6965_v1 = vpop.f32.mrf.mxu0 }
 0x19e   :  { %v5103_v2 = vpop.f32.mrf.mxu0 }
 0x19f   :  { %v1894_v20 = vadd.f32 %v5103_v2, %v1700_v26  ;;  %v1512_v26 = vadd.f32 %v7946_v42, %v1317_v31  ;;  %v1319_v2 = vadd.f32 %v7948_v11, %v1125_v58  ;;  %v7031_v31 = vpop.f32.mrf.mxu1  ;;  %v7964_v42 = vld [vmem:[#allocation31_spill] sm:$0xff] }
 0x1a0   :  { %v1814_v5 = vpop.f32.mrf.mxu0 }
 0x1a1   :  { %v6986_v23 = vmax.f32 %v1894_v20, 0.0  ;;  %v1893_v39 = vadd.f32 %v1814_v5, %v1699_v47  ;;  %v1127_v47 = vadd.f32 %v7949_v7, %v933_v48  ;;  %v7950_v20 = vld [vmem:[#allocation4_spill] sm:$0xff]  ;;  %v1706_v58 = vadd.f32 %v6932_v40, %v1512_v26 }
 0x1a2   :  { %v5106_v55 = vpop.f32.mrf.mxu0  ;;  %v1705_v40 = vadd.f32 %v6944_v22, %v1511_v60  ;;  %v7967_v60 = vld [vmem:[#allocation33_spill] sm:$0xff] }
 0x1a3   :  { %1976 = vst [vmem:[#allocation3 + $0x21] sm:$0xff] %v6986_v23  ;;  %v6995_v25 = vmax.f32 %v1893_v39, 0.0  ;;  %v1896_v44 = vadd.f32 %v5106_v55, %v1702_v52  ;;  %v7952_v52 = vld [vmem:[#allocation11_spill] sm:$0xff]  ;;  %v7954_v39 = vld [vmem:[#allocation14_spill] sm:$0xff]  ;;  %v7957_v55 = vld [vmem:[#allocation44_spill] sm:$0xff]  ;;  %v1321_v48 = vadd.f32 %v7959_v46, %v1127_v47 }
 0x1a4   :  { %v1824_v41 = vpop.f32.mrf.mxu0  ;;  %v935_v3 = vadd.f32 %v7953_v45, %v7952_v52  ;;  %v934_v21 = vadd.f32 %v7954_v39, %v740_v6  ;;  %v3962_v52 = vld [vmem:[%s7887_s2 + $0x1e8] sm:$0xff]  ;;  %v1707_v45 = vadd.f32 %v6982_v32, %v1513_v14  ;;  %v7971_v46 = vld [vmem:[#allocation36_spill] sm:$0xff] }
 0x1a5   :  { %1975 = vst [vmem:[#allocation3 + $0x11] sm:$0xff] %v6995_v25  ;;  %v7010_v51 = vmax.f32 %v1896_v44, 0.0  ;;  %v1895_v38 = vadd.f32 %v1824_v41, %v1701_v9  ;;  %5158 = vmatmul.mubr.f32.vlgmr.msra.gmra.mxu1 %v6995_v25  ;;  %v1514_v9 = vadd.f32 %v7957_v55, %v1319_v2  ;;  %v7958_v44 = vld [vmem:[#allocation16_spill] sm:$0xff]  ;;  %v7962_v41 = vld [vmem:[#allocation17_spill] sm:$0xff]  ;;  %v1516_v2 = vadd.f32 %v6926_v10, %v1321_v48 }
 0x1a6   :  { %v5109_v19 = vpop.f32.mrf.mxu0  ;;  %5160 = vmatprep.mubr.f32.mxu1 %v6986_v23  ;;  %5238 = vmatpush3.msra.mxu1 %v7950_v20  ;;  %v742_v62 = vadd.f32 %v7958_v44, %v542_v53  ;;  %v1129_v6 = vadd.f32 %v7960_v34, %v935_v3  ;;  %v7961_v53 = vld [vmem:[#allocation15_spill] sm:$0xff]  ;;  %v1128_v26 = vadd.f32 %v7964_v42, %v934_v21  ;;  %v7965_v20 = vld [vmem:[#allocation18_spill] sm:$0xff]  ;;  %v7968_v10 = vld [vmem:[#allocation5_spill] sm:$0xff] }
 0x1a7   :  { %1978 = vst [vmem:[#allocation3 + $0x41] sm:$0xff] %v7010_v51  ;;  %v7024_v5 = vmax.f32 %v1895_v38, 0.0  ;;  %v1898_v36 = vadd.f32 %v5109_v19, %v1704_v15  ;;  %5239 = vmatprep.subr.mxu1 %v3947_v0  ;;  %v1320_v15 = vadd.f32 %v7963_v59, %v1126_v49  ;;  %v7057_v38 = vpop.f32.mrf.mxu1  ;;  %v1708_v11 = vadd.f32 %v6963_v24, %v1514_v9  ;;  %v7972_v14 = vld [vmem:[#allocation37_spill] sm:$0xff] }
 0x1a8   :  { %v1834_v8 = vpop.f32.mrf.mxu0  ;;  %5240 = vmatpush3.msra.mxu1 %v3947_v0  ;;  %v937_v0 = vadd.f32 %v7962_v41, %v7961_v53  ;;  %v1322_v54 = vadd.f32 %v7969_v12, %v1128_v26  ;;  %v1710_v32 = vadd.f32 %v7002_v61, %v1516_v2 }
 0x1a9   :  { %1977 = vst [vmem:[#allocation3 + $0x31] sm:$0xff] %v7024_v5  ;;  %v7039_v43 = vmax.f32 %v1898_v36, 0.0  ;;  %v1897_v13 = vadd.f32 %v1834_v8, %v1703_v18  ;;  %5161 = vmatmul.mubr.f32.gmra.mxu1 %v7024_v5  ;;  %5241 = vmatprep.subr.mxu1 %v3946_v29  ;;  %v7966_v18 = vld [vmem:[#allocation32_spill] sm:$0xff]  ;;  %v1515_v3 = vadd.f32 %v6934_v4, %v1320_v15  ;;  %v1680_v8 = vpop.f32.mrf.mxu1 }
 0x1aa   :  { %v5112_v50 = vpop.f32.mrf.mxu0  ;;  %5163 = vmatprep.mubr.f32.mxu1 %v7010_v51  ;;  %5242 = vmatpush3.msra.mxu1 %v3946_v29  ;;  %v7072_v19 = vld [vmem:[#allocation3 + $0x20] sm:$0xff]  ;;  %v936_v29 = vadd.f32 %v7965_v20, %v742_v62  ;;  %v1323_v63 = vadd.f32 %v7966_v18, %v1129_v6  ;;  %v1131_v36 = vadd.f32 %v7967_v60, %v937_v0  ;;  %v3943_v62 = vld [vmem:[%s7887_s2 + $0x150] sm:$0xff] }
 0x1ab   :  { %1980 = vst [vmem:[#allocation3 + $0x61] sm:$0xff] %v7039_v43  ;;  %v7049_v16 = vmax.f32 %v1897_v13, 0.0  ;;  %v7051_v37 = vadd.f32 %v5112_v50, %v1706_v58  ;;  %5243 = vmatprep.subr.mxu1 %v3945_v30  ;;  %v3961_v4 = vld [vmem:[%s7887_s2 + $0x1e0] sm:$0xff]  ;;  %v1709_v61 = vadd.f32 %v7031_v31, %v1515_v3  ;;  %v1517_v6 = vadd.f32 %v6946_v35, %v1322_v54  ;;  %v5068_v41 = vpop.f32.mrf.mxu1  ;;  %v3959_v31 = vld [vmem:[%s7887_s2 + $0x1d0] sm:$0xff] }
 0x1ac   :  { %v1844_v27 = vpop.f32.mrf.mxu0  ;;  %v7059_v22 = vld [vmem:[#allocation3 + $0x10] sm:$0xff]  ;;  %5244 = vmatpush3.msra.mxu1 %v3945_v30  ;;  %v1130_v49 = vadd.f32 %v7970_v28, %v936_v29  ;;  %v1518_v55 = vadd.f32 %v6939_v56, %v1323_v63  ;;  %v1325_v48 = vadd.f32 %v7971_v46, %v1131_v36  ;;  %v3960_v56 = vld [vmem:[%s7887_s2 + $0x1d8] sm:$0xff] }
 0x1ad   :  { %1979 = vst [vmem:[#allocation3 + $0x51] sm:$0xff] %v7049_v16  ;;  %v1916_v7 = vmax.f32 %v7051_v37, 0.0  ;;  %v1899_v47 = vadd.f32 %v1844_v27, %v1705_v40  ;;  %5214 = vmatmul.mubr.f32.vlgmr.msra.gmra.mxu0 %v7059_v22  ;;  %5164 = vmatmul.mubr.f32.gmra.mxu1 %v7049_v16  ;;  %v1690_v20 = vpop.f32.mrf.mxu1  ;;  %v4004_v37 = vld [vmem:[%s7887_s2 + $0x338] sm:$0xff] }
 0x1ae   :  { %v5115_v24 = vpop.f32.mrf.mxu0  ;;  %5216 = vmatprep.mubr.f32.mxu0 %v7072_v19  ;;  %5294 = vmatpush3.msra.mxu0 %v7968_v10  ;;  %v7103_v44 = vld [vmem:[#allocation3 + $0x40] sm:$0xff]  ;;  %v1324_v53 = vadd.f32 %v7972_v14, %v1130_v49  ;;  %v1712_v35 = vadd.f32 %v7057_v38, %v1518_v55  ;;  %v1520_v15 = vadd.f32 %v6954_v17, %v1325_v48  ;;  %v3942_v38 = vld [vmem:[%s7887_s2 + $0x148] sm:$0xff]  ;;  %v3940_v49 = vld [vmem:[%s7887_s2 + $0x138] sm:$0xff] }
 0x1af   :  { %1982 = vst [vmem:[#allocation3 + $0x81] sm:$0xff] %v1916_v7  ;;  %v7087_v39 = vmax.f32 %v1899_v47, 0.0  ;;  %v1902_v21 = vadd.f32 %v5115_v24, %v1708_v11  ;;  %5295 = vmatprep.subr.mxu0 %v3963_v57  ;;  %5245 = vmatprep.subr.mxu1 %v3944_v33  ;;  %v3958_v47 = vld [vmem:[%s7887_s2 + $0x1c8] sm:$0xff]  ;;  %v3957_v24 = vld [vmem:[%s7887_s2 + $0x1c0] sm:$0xff]  ;;  %v3939_v55 = vld [vmem:[%s7887_s2 + $0x130] sm:$0xff] }
 0x1b0   :  { %v1854_v30 = vpop.f32.mrf.mxu0  ;;  %5296 = vmatpush3.msra.mxu0 %v3963_v57  ;;  %v7091_v58 = vld [vmem:[#allocation3 + $0x30] sm:$0xff]  ;;  %5166 = vmatprep.mubr.f32.mxu1 %v7039_v43  ;;  %v1519_v17 = vadd.f32 %v6965_v1, %v1324_v53  ;;  %v3941_v1 = vld [vmem:[%s7887_s2 + $0x140] sm:$0xff]  ;;  %v1714_v63 = vadd.f32 %v5068_v41, %v1520_v15  ;;  %v3938_v48 = vld [vmem:[%s7887_s2 + $0x128] sm:$0xff] }
 0x1b1   :  { %1981 = vst [vmem:[#allocation3 + $0x71] sm:$0xff] %v7087_v39  ;;  %v7100_v9 = vmax.f32 %v1902_v21, 0.0  ;;  %v1901_v13 = vadd.f32 %v1854_v30, %v1707_v45  ;;  %5217 = vmatmul.mubr.f32.gmra.mxu0 %v7091_v58  ;;  %5297 = vmatprep.subr.mxu0 %v3962_v52  ;;  %v2031_v10 = vld [vmem:[#allocation3 + $0xa1] sm:$0xff]  ;;  %v3936_v14 = vld [vmem:[%s7887_s2 + $0x118] sm:$0xff]  ;;  %v3935_v41 = vld [vmem:[%s7887_s2 + $0x110] sm:$0xff] }
 0x1b2   :  { %v5118_v34 = vpop.f32.mrf.mxu0  ;;  %5219 = vmatprep.mubr.f32.mxu0 %v7103_v44  ;;  %5298 = vmatpush3.msra.mxu0 %v3962_v52  ;;  %v7130_v27 = vld [vmem:[#allocation3 + $0x60] sm:$0xff]  ;;  %v1713_v3 = vadd.f32 %v1690_v20, %v1519_v17  ;;  %v3952_v53 = vld [vmem:[%s7887_s2 + $0x198] sm:$0xff]  ;;  %v3934_v15 = vld [vmem:[%s7887_s2 + $0x108] sm:$0xff] }
 0x1b3   :  { %1984 = vst [vmem:[#allocation3 + $0xc1] sm:$0xff] %v7100_v9  ;;  %v7116_v50 = vmax.f32 %v1901_v13, 0.0  ;;  %v1904_v40 = vadd.f32 %v5118_v34, %v1710_v32  ;;  %5299 = vmatprep.subr.mxu0 %v3961_v4  ;;  %5246 = vmatpush3.msra.mxu1 %v3944_v33  ;;  %v1711_v33 = vadd.f32 %v1680_v8, %v1517_v6  ;;  %v1999_v45 = vld [vmem:[#allocation3 + $0xa0] sm:$0xff]  ;;  %v3954_v34 = vld [vmem:[%s7887_s2 + $0x1a8] sm:$0xff]  ;;  %v3980_v17 = vld [vmem:[%s7887_s2 + $0x278] sm:$0xff] }
 0x1b4   :  { %v1864_v0 = vpop.f32.mrf.mxu0  ;;  %5300 = vmatpush3.msra.mxu0 %v3961_v4  ;;  %v7119_v59 = vld [vmem:[#allocation3 + $0x50] sm:$0xff]  ;;  %5247 = vmatprep.subr.mxu1 %v3943_v62  ;;  %v3956_v4 = vld [vmem:[%s7887_s2 + $0x1b8] sm:$0xff]  ;;  %v3953_v6 = vld [vmem:[%s7887_s2 + $0x1a0] sm:$0xff] }
 0x1b5   :  { %1983 = vst [vmem:[#allocation3 + $0xb1] sm:$0xff] %v7116_v50  ;;  %v7127_v42 = vmax.f32 %v1904_v40, 0.0  ;;  %v1903_v26 = vadd.f32 %v1864_v0, %v1709_v61  ;;  %5220 = vmatmul.mubr.f32.gmra.mxu0 %v7119_v59  ;;  %5301 = vmatprep.subr.mxu0 %v3960_v56  ;;  %v3979_v20 = vld [vmem:[%s7887_s2 + $0x270] sm:$0xff] }
 0x1b6   :  { %v5121_v57 = vpop.f32.mrf.mxu0  ;;  %5222 = vmatprep.mubr.f32.mxu0 %v7130_v27  ;;  %5302 = vmatpush3.msra.mxu0 %v3960_v56  ;;  %v3937_v56 = vld [vmem:[%s7887_s2 + $0x120] sm:$0xff] }
 0x1b7   :  { %1986 = vst [vmem:[#allocation3 + $0xe1] sm:$0xff] %v7127_v42  ;;  %v7138_v11 = vmax.f32 %v1903_v26, 0.0  ;;  %v1906_v2 = vadd.f32 %v5121_v57, %v1712_v35  ;;  %5303 = vmatprep.subr.mxu0 %v3959_v31  ;;  %5248 = vmatpush3.msra.mxu1 %v3943_v62  ;;  %v3955_v62 = vld [vmem:[%s7887_s2 + $0x1b0] sm:$0xff]  ;;  %v3950_v26 = vld [vmem:[%s7887_s2 + $0x188] sm:$0xff]  ;;  %v3933_v57 = vld [vmem:[%s7887_s2 + $0x100] sm:$0xff] }
 0x1b8   :  { %v1874_v29 = vpop.f32.mrf.mxu0  ;;  %5304 = vmatpush3.msra.mxu0 %v3959_v31  ;;  %5167 = vmatmul.mubr.f32.gmra.mxu1 %v7087_v39  ;;  %v7144_v18 = vld [vmem:[#allocation3 + $0x70] sm:$0xff] }
 0x1b9   :  { %1985 = vst [vmem:[#allocation3 + $0xd1] sm:$0xff] %v7138_v11  ;;  %v7150_v60 = vmax.f32 %v1906_v2, 0.0  ;;  %v1905_v36 = vadd.f32 %v1874_v29, %v1711_v33  ;;  %5223 = vmatmul.mubr.f32.gmra.mxu0 %v7144_v18  ;;  %5249 = vmatprep.subr.mxu1 %v3942_v38  ;;  %v3951_v31 = vld [vmem:[%s7887_s2 + $0x190] sm:$0xff]  ;;  %v2346_v33 = vld [vmem:[#allocation3 + $0x2] sm:$0xff] }
 0x1ba   :  { %5305 = vmatprep.subr.mxu0 %v3958_v47  ;;  %v5124_v52 = vpop.f32.mrf.mxu0  ;;  %5250 = vmatpush3.msra.mxu1 %v3942_v38  ;;  %v7179_v13 = vld [vmem:[#allocation3 + $0xc0] sm:$0xff]  ;;  %v7246_v2 = vld [vmem:[#allocation3 + $0x12] sm:$0xff] }
 0x1bb   :  { %1988 = vst [vmem:[#allocation3 + $0x101] sm:$0xff] %v7150_v60  ;;  %v7157_v21 = vmax.f32 %v1905_v36, 0.0  ;;  %v1908_v12 = vadd.f32 %v5124_v52, %v1714_v63  ;;  %5306 = vmatpush3.msra.mxu0 %v3958_v47  ;;  %5251 = vmatprep.subr.mxu1 %v3941_v1  ;;  %v3949_v38 = vld [vmem:[%s7887_s2 + $0x180] sm:$0xff]  ;;  %v3996_v47 = vld [vmem:[%s7887_s2 + $0x2f8] sm:$0xff]  ;;  %v3995_v29 = vld [vmem:[%s7887_s2 + $0x2f0] sm:$0xff] }
 0x1bc   :  { %5307 = vmatprep.subr.mxu0 %v3957_v24  ;;  %v1884_v54 = vpop.f32.mrf.mxu0  ;;  %5169 = vmatprep.mubr.f32.mxu1 %v2031_v10  ;;  %v7159_v28 = vld [vmem:[#allocation3 + $0xb0] sm:$0xff]  ;;  %v3994_v36 = vld [vmem:[%s7887_s2 + $0x2e8] sm:$0xff]  ;;  %v3977_v10 = vld [vmem:[%s7887_s2 + $0x260] sm:$0xff] }
 0x1bd   :  { %1987 = vst [vmem:[#allocation3 + $0xf1] sm:$0xff] %v7157_v21  ;;  %v7165_v8 = vmax.f32 %v1908_v12, 0.0  ;;  %v1907_v30 = vadd.f32 %v1884_v54, %v1713_v3  ;;  %5225 = vmatprep.mubr.f32.mxu0 %v1999_v45  ;;  %5252 = vmatpush3.msra.mxu1 %v3941_v1  ;;  %v3978_v1 = vld [vmem:[%s7887_s2 + $0x268] sm:$0xff]  ;;  %v7266_v63 = vld [vmem:[#allocation3 + $0x32] sm:$0xff]  ;;  %v3993_v52 = vld [vmem:[%s7887_s2 + $0x2e0] sm:$0xff] }
 0x1be   :  { %5308 = vmatpush3.msra.mxu0 %v3957_v24  ;;  %5170 = vmatmul.mubr.f32.gmra.mxu1 %v7116_v50  ;;  %v7200_v61 = vld [vmem:[#allocation3 + $0xe0] sm:$0xff]  ;;  %v3976_v45 = vld [vmem:[%s7887_s2 + $0x258] sm:$0xff] }
 0x1bf   :  { %1990 = vst [vmem:[#allocation3 + $0x121] sm:$0xff] %v7165_v8  ;;  %v7172_v32 = vmax.f32 %v1907_v30, 0.0  ;;  %5226 = vmatmul.mubr.f32.gmra.mxu0 %v7159_v28  ;;  %5253 = vmatprep.subr.mxu1 %v3940_v49  ;;  %v7273_v24 = vld [vmem:[#allocation3 + $0x42] sm:$0xff]  ;;  %v7286_v3 = vld [vmem:[#allocation3 + $0x52] sm:$0xff] }
 0x1c0   :  { %5309 = vmatprep.subr.mxu0 %v3956_v4  ;;  %5172 = vmatprep.mubr.f32.mxu1 %v7100_v9  ;;  %v7186_v46 = vld [vmem:[#allocation3 + $0xd0] sm:$0xff]  ;;  %v3992_v12 = vld [vmem:[%s7887_s2 + $0x2d8] sm:$0xff]  ;;  %v7293_v54 = vld [vmem:[#allocation3 + $0x62] sm:$0xff] }
 0x1c1   :  { %1989 = vst [vmem:[#allocation3 + $0x111] sm:$0xff] %v7172_v32  ;;  %5228 = vmatprep.mubr.f32.mxu0 %v7179_v13  ;;  %5254 = vmatpush3.msra.mxu1 %v3940_v49  ;;  %v3975_v49 = vld [vmem:[%s7887_s2 + $0x250] sm:$0xff] }
 0x1c2   :  { %5310 = vmatpush3.msra.mxu0 %v3956_v4  ;;  %5255 = vmatprep.subr.mxu1 %v3939_v55  ;;  %v7220_v0 = vld [vmem:[#allocation3 + $0x100] sm:$0xff]  ;;  %v3991_v30 = vld [vmem:[%s7887_s2 + $0x2d0] sm:$0xff]  ;;  %v3974_v4 = vld [vmem:[%s7887_s2 + $0x248] sm:$0xff] }
 0x1c3   :  { %5311 = vmatprep.subr.mxu0 %v3955_v62  ;;  %5256 = vmatpush3.msra.mxu1 %v3939_v55  ;;  %v7306_v55 = vld [vmem:[#allocation3 + $0x72] sm:$0xff] }
 0x1c4   :  { %5312 = vmatpush3.msra.mxu0 %v3955_v62  ;;  %5173 = vmatmul.mubr.f32.gmra.mxu1 %v7138_v11  ;;  %v7206_v40 = vld [vmem:[#allocation3 + $0xf0] sm:$0xff]  ;;  %v3990_v62 = vld [vmem:[%s7887_s2 + $0x2c8] sm:$0xff] }
 0x1c5   :  { %5229 = vmatmul.mubr.f32.gmra.mxu0 %v7186_v46  ;;  %5257 = vmatprep.subr.mxu1 %v3938_v48 }
 0x1c6   :  { %5313 = vmatprep.subr.mxu0 %v3954_v34  ;;  %5175 = vmatprep.mubr.f32.mxu1 %v7127_v42 }
 0x1c7   :  { %5231 = vmatprep.mubr.f32.mxu0 %v7200_v61  ;;  %5258 = vmatpush3.msra.mxu1 %v3938_v48  ;;  %v7312_v48 = vld [vmem:[#allocation3 + $0x80] sm:$0xff] }
 0x1c8   :  { %5314 = vmatpush3.msra.mxu0 %v3954_v34  ;;  %5259 = vmatprep.subr.mxu1 %v3937_v56  ;;  %v7226_v35 = vld [vmem:[#allocation3 + $0x110] sm:$0xff]  ;;  %v3973_v34 = vld [vmem:[%s7887_s2 + $0x240] sm:$0xff] }
 0x1c9   :  { %5315 = vmatprep.subr.mxu0 %v3953_v6  ;;  %5260 = vmatpush3.msra.mxu1 %v3937_v56  ;;  %v3989_v56 = vld [vmem:[%s7887_s2 + $0x2c0] sm:$0xff] }
 0x1ca   :  { %5316 = vmatpush3.msra.mxu0 %v3953_v6  ;;  %5176 = vmatmul.mubr.f32.gmra.mxu1 %v7157_v21  ;;  %v2354_v6 = vld [vmem:[#allocation3 + $0xa2] sm:$0xff] }
 0x1cb   :  { %5232 = vmatmul.mubr.f32.gmra.mxu0 %v7206_v40  ;;  %5261 = vmatprep.subr.mxu1 %v3936_v14 }
 0x1cc   :  { %5317 = vmatprep.subr.mxu0 %v3952_v53  ;;  %5178 = vmatprep.mubr.f32.mxu1 %v7150_v60 }
 0x1cd   :  { %5234 = vmatprep.mubr.f32.mxu0 %v7220_v0  ;;  %5262 = vmatpush3.msra.mxu1 %v3936_v14  ;;  %v3972_v14 = vld [vmem:[%s7887_s2 + $0x238] sm:$0xff] }
 0x1ce   :  { %5318 = vmatpush3.msra.mxu0 %v3952_v53  ;;  %5263 = vmatprep.subr.mxu1 %v3935_v41  ;;  %v7325_v53 = vld [vmem:[#allocation3 + $0xb2] sm:$0xff] }
 0x1cf   :  { %5319 = vmatprep.subr.mxu0 %v3951_v31  ;;  %5264 = vmatpush3.msra.mxu1 %v3935_v41  ;;  %v3988_v41 = vld [vmem:[%s7887_s2 + $0x2b8] sm:$0xff] }
 0x1d0   :  { %5320 = vmatpush3.msra.mxu0 %v3951_v31  ;;  %5179 = vmatmul.mubr.f32.gmra.mxu1 %v7172_v32  ;;  %v3971_v31 = vld [vmem:[%s7887_s2 + $0x230] sm:$0xff] }
 0x1d1   :  { %5235 = vmatmul.mubr.f32.gmra.mxu0 %v7226_v35  ;;  %5265 = vmatprep.subr.mxu1 %v3934_v15 }
 0x1d2   :  { %5321 = vmatprep.subr.mxu0 %v3950_v26  ;;  %5266 = vmatpush3.msra.mxu1 %v3934_v15  ;;  %v3987_v15 = vld [vmem:[%s7887_s2 + $0x2b0] sm:$0xff] }
 0x1d3   :  { %5322 = vmatpush3.msra.mxu0 %v3950_v26  ;;  %5325 = vmatprep.mubr.f32.mxu0 %v7059_v22  ;;  %v7253_v22 = vld [vmem:[#allocation3 + $0x22] sm:$0xff] }
 0x1d4   :  { %5267 = vmatprep.subr.mxu1 %v3933_v57  ;;  %5323 = vmatprep.subr.mxu0 %v3949_v38  ;;  %v3970_v26 = vld [vmem:[%s7887_s2 + $0x228] sm:$0xff] }
 0x1d5   :  { %5268 = vmatpush3.msra.mxu1 %v3933_v57  ;;  %5269 = vmatprep.mubr.f32.mxu1 %v2346_v33  ;;  %v7345_v57 = vld [vmem:[#allocation3 + $0xd2] sm:$0xff]  ;;  %v7352_v33 = vld [vmem:[#allocation3 + $0xe2] sm:$0xff] }
 0x1d6   :  { %5324 = vmatpush3.msra.mxu0 %v3949_v38  ;;  %5270 = vmatmul.mubr.f32.vlgmr.msra.gmra.mxu1 %v7246_v2  ;;  %v3986_v38 = vld [vmem:[%s7887_s2 + $0x2a8] sm:$0xff] }
 0x1d7   :  { %5326 = vmatmul.mubr.f32.vlgmr.msra.gmra.mxu0 %v7072_v19  ;;  %5349 = vmatprep.subr.mxu1 %v3980_v17 }
 0x1d8   :  { %5405 = vmatprep.subr.mxu0 %v3996_v47  ;;  %5272 = vmatprep.mubr.f32.mxu1 %v7253_v22 }
 0x1d9   :  { %5328 = vmatprep.mubr.f32.mxu0 %v7091_v58  ;;  %5350 = vmatpush3.msra.mxu1 %v3980_v17  ;;  %v3969_v17 = vld [vmem:[%s7887_s2 + $0x220] sm:$0xff] }
 0x1da   :  { %5406 = vmatpush3.msra.mxu0 %v3996_v47  ;;  %5351 = vmatprep.subr.mxu1 %v3979_v20  ;;  %v3985_v47 = vld [vmem:[%s7887_s2 + $0x2a0] sm:$0xff] }
 0x1db   :  { %5407 = vmatprep.subr.mxu0 %v3995_v29  ;;  %5352 = vmatpush3.msra.mxu1 %v3979_v20  ;;  %v3968_v20 = vld [vmem:[%s7887_s2 + $0x218] sm:$0xff] }
 0x1dc   :  { %5408 = vmatpush3.msra.mxu0 %v3995_v29  ;;  %5273 = vmatmul.mubr.f32.gmra.mxu1 %v7266_v63  ;;  %v7365_v29 = vld [vmem:[#allocation3 + $0xf2] sm:$0xff] }
 0x1dd   :  { %5329 = vmatmul.mubr.f32.gmra.mxu0 %v7103_v44  ;;  %5353 = vmatprep.subr.mxu1 %v3978_v1 }
 0x1de   :  { %5409 = vmatprep.subr.mxu0 %v3994_v36  ;;  %5275 = vmatprep.mubr.f32.mxu1 %v7273_v24 }
 0x1df   :  { %5331 = vmatprep.mubr.f32.mxu0 %v7119_v59  ;;  %5354 = vmatpush3.msra.mxu1 %v3978_v1  ;;  %v3984_v1 = vld [vmem:[%s7887_s2 + $0x298] sm:$0xff] }
 0x1e0   :  { %5410 = vmatpush3.msra.mxu0 %v3994_v36  ;;  %5355 = vmatprep.subr.mxu1 %v3977_v10  ;;  %v7372_v36 = vld [vmem:[#allocation3 + $0x102] sm:$0xff] }
 0x1e1   :  { %5411 = vmatprep.subr.mxu0 %v3993_v52  ;;  %5356 = vmatpush3.msra.mxu1 %v3977_v10  ;;  %v3967_v10 = vld [vmem:[%s7887_s2 + $0x210] sm:$0xff] }
 0x1e2   :  { %5412 = vmatpush3.msra.mxu0 %v3993_v52  ;;  %5276 = vmatmul.mubr.f32.gmra.mxu1 %v7286_v3  ;;  %v3983_v52 = vld [vmem:[%s7887_s2 + $0x290] sm:$0xff] }
 0x1e3   :  { %5332 = vmatmul.mubr.f32.gmra.mxu0 %v7130_v27  ;;  %5357 = vmatprep.subr.mxu1 %v3976_v45 }
 0x1e4   :  { %5413 = vmatprep.subr.mxu0 %v3992_v12  ;;  %5278 = vmatprep.mubr.f32.mxu1 %v7293_v54 }
 0x1e5   :  { %5334 = vmatprep.mubr.f32.mxu0 %v7144_v18  ;;  %5358 = vmatpush3.msra.mxu1 %v3976_v45  ;;  %v3966_v45 = vld [vmem:[%s7887_s2 + $0x208] sm:$0xff] }
 0x1e6   :  { %5414 = vmatpush3.msra.mxu0 %v3992_v12  ;;  %5359 = vmatprep.subr.mxu1 %v3975_v49  ;;  %v7385_v12 = vld [vmem:[#allocation3 + $0x112] sm:$0xff] }
 0x1e7   :  { %5415 = vmatprep.subr.mxu0 %v3991_v30  ;;  %5360 = vmatpush3.msra.mxu1 %v3975_v49  ;;  %v3982_v49 = vld [vmem:[%s7887_s2 + $0x288] sm:$0xff] }
 0x1e8   :  { %5416 = vmatpush3.msra.mxu0 %v3991_v30  ;;  %5279 = vmatmul.mubr.f32.gmra.mxu1 %v7306_v55  ;;  %v7391_v30 = vld [vmem:[#allocation3 + $0x120] sm:$0xff] }
 0x1e9   :  { %5335 = vmatmul.mubr.f32.gmra.mxu0 %v7312_v48  ;;  %5361 = vmatprep.subr.mxu1 %v3974_v4 }
 0x1ea   :  { %5417 = vmatprep.subr.mxu0 %v3990_v62  ;;  %5337 = vmatprep.mubr.f32.mxu0 %v7159_v28  ;;  %v7332_v28 = vld [vmem:[#allocation3 + $0xc2] sm:$0xff] }
 0x1eb   :  { %5362 = vmatpush3.msra.mxu1 %v3974_v4  ;;  %5418 = vmatpush3.msra.mxu0 %v3990_v62  ;;  %v3965_v4 = vld [vmem:[%s7887_s2 + $0x200] sm:$0xff] }
 0x1ec   :  { %5363 = vmatprep.subr.mxu1 %v3973_v34  ;;  %5419 = vmatprep.subr.mxu0 %v3989_v56  ;;  %v3981_v62 = vld [vmem:[%s7887_s2 + $0x280] sm:$0xff] }
 0x1ed   :  { %5281 = vmatprep.mubr.f32.mxu1 %v2354_v6  ;;  %5364 = vmatpush3.msra.mxu1 %v3973_v34  ;;  %v4012_v34 = vld [vmem:[%s7887_s2 + $0x378] sm:$0xff]  ;;  %v4026_v6 = vld [vmem:[%s7887_s2 + $0x3e8] sm:$0xff] }
 0x1ee   :  { %5420 = vmatpush3.msra.mxu0 %v3989_v56  ;;  %5282 = vmatmul.mubr.f32.gmra.mxu1 %v7325_v53  ;;  %v4028_v56 = vld [vmem:[%s7887_s2 + $0x3f8] sm:$0xff] }
 0x1ef   :  { %5338 = vmatmul.mubr.f32.gmra.mxu0 %v7179_v13  ;;  %5365 = vmatprep.subr.mxu1 %v3972_v14 }
 0x1f0   :  { %5421 = vmatprep.subr.mxu0 %v3988_v41  ;;  %5284 = vmatprep.mubr.f32.mxu1 %v7332_v28 }
 0x1f1   :  { %5340 = vmatprep.mubr.f32.mxu0 %v7186_v46  ;;  %5366 = vmatpush3.msra.mxu1 %v3972_v14  ;;  %v4025_v14 = vld [vmem:[%s7887_s2 + $0x3e0] sm:$0xff] }
 0x1f2   :  { %5422 = vmatpush3.msra.mxu0 %v3988_v41  ;;  %5367 = vmatprep.subr.mxu1 %v3971_v31  ;;  %v4024_v41 = vld [vmem:[%s7887_s2 + $0x3d8] sm:$0xff] }
 0x1f3   :  { %5423 = vmatprep.subr.mxu0 %v3987_v15  ;;  %5368 = vmatpush3.msra.mxu1 %v3971_v31  ;;  %v4023_v31 = vld [vmem:[%s7887_s2 + $0x3d0] sm:$0xff] }
 0x1f4   :  { %5424 = vmatpush3.msra.mxu0 %v3987_v15  ;;  %5285 = vmatmul.mubr.f32.gmra.mxu1 %v7345_v57  ;;  %v4022_v15 = vld [vmem:[%s7887_s2 + $0x3c8] sm:$0xff] }
 0x1f5   :  { %5341 = vmatmul.mubr.f32.gmra.mxu0 %v7200_v61  ;;  %5369 = vmatprep.subr.mxu1 %v3970_v26 }
 0x1f6   :  { %5425 = vmatprep.subr.mxu0 %v3986_v38  ;;  %5287 = vmatprep.mubr.f32.mxu1 %v7352_v33 }
 0x1f7   :  { %5343 = vmatprep.mubr.f32.mxu0 %v7206_v40  ;;  %5370 = vmatpush3.msra.mxu1 %v3970_v26  ;;  %v4005_v26 = vld [vmem:[%s7887_s2 + $0x340] sm:$0xff] }
 0x1f8   :  { %5426 = vmatpush3.msra.mxu0 %v3986_v38  ;;  %5371 = vmatprep.subr.mxu1 %v3969_v17  ;;  %v4021_v38 = vld [vmem:[%s7887_s2 + $0x3c0] sm:$0xff] }
 0x1f9   :  { %5427 = vmatprep.subr.mxu0 %v3985_v47  ;;  %5372 = vmatpush3.msra.mxu1 %v3969_v17  ;;  %v4018_v17 = vld [vmem:[%s7887_s2 + $0x3a8] sm:$0xff] }
 0x1fa   :  { %5428 = vmatpush3.msra.mxu0 %v3985_v47  ;;  %5288 = vmatmul.mubr.f32.gmra.mxu1 %v7365_v29  ;;  %v4017_v47 = vld [vmem:[%s7887_s2 + $0x3a0] sm:$0xff] }
 0x1fb   :  { %5344 = vmatmul.mubr.f32.gmra.mxu0 %v7220_v0  ;;  %5373 = vmatprep.subr.mxu1 %v3968_v20 }
 0x1fc   :  { %5429 = vmatprep.subr.mxu0 %v3984_v1  ;;  %5290 = vmatprep.mubr.f32.mxu1 %v7372_v36 }
 0x1fd   :  { %5346 = vmatprep.mubr.f32.mxu0 %v7226_v35  ;;  %5374 = vmatpush3.msra.mxu1 %v3968_v20  ;;  %v4016_v20 = vld [vmem:[%s7887_s2 + $0x398] sm:$0xff] }
 0x1fe   :  { %5430 = vmatpush3.msra.mxu0 %v3984_v1  ;;  %5375 = vmatprep.subr.mxu1 %v3967_v10  ;;  %v3999_v1 = vld [vmem:[%s7887_s2 + $0x310] sm:$0xff] }
 0x1ff   :  { %5431 = vmatprep.subr.mxu0 %v3983_v52  ;;  %5376 = vmatpush3.msra.mxu1 %v3967_v10  ;;  %v4015_v10 = vld [vmem:[%s7887_s2 + $0x390] sm:$0xff] }
 0x200   :  { %5432 = vmatpush3.msra.mxu0 %v3983_v52  ;;  %5291 = vmatmul.mubr.f32.gmra.mxu1 %v7385_v12  ;;  %v4014_v52 = vld [vmem:[%s7887_s2 + $0x388] sm:$0xff] }
 0x201   :  { %5347 = vmatmul.mubr.f32.gmra.mxu0 %v7391_v30  ;;  %5377 = vmatprep.subr.mxu1 %v3966_v45 }
 0x202   :  { %5433 = vmatprep.subr.mxu0 %v3982_v49  ;;  %5378 = vmatpush3.msra.mxu1 %v3966_v45  ;;  %v7524_v45 = vld [vmem:[#allocation3 + $0x122] sm:$0xff] }
 0x203   :  { %5381 = vmatprep.mubr.f32.mxu1 %v6995_v25  ;;  %5434 = vmatpush3.msra.mxu0 %v3982_v49  ;;  %v4011_v25 = vld [vmem:[%s7887_s2 + $0x370] sm:$0xff]  ;;  %v3997_v49 = vld [vmem:[%s7887_s2 + $0x300] sm:$0xff] }
 0x204   :  { %5437 = vmatprep.mubr.f32.mxu0 %v7246_v2  ;;  %5379 = vmatprep.subr.mxu1 %v3965_v4  ;;  %v4027_v2 = vld [vmem:[%s7887_s2 + $0x3f0] sm:$0xff] }
 0x205   :  { %5435 = vmatprep.subr.mxu0 %v3981_v62  ;;  %5380 = vmatpush3.msra.mxu1 %v3965_v4  ;;  %v4013_v4 = vld [vmem:[%s7887_s2 + $0x380] sm:$0xff] }
 0x206   :  { %5436 = vmatpush3.msra.mxu0 %v3981_v62  ;;  %5382 = vmatmul.mubr.f32.vlgmr.msra.gmra.mxu1 %v6986_v23  ;;  %v4010_v23 = vld [vmem:[%s7887_s2 + $0x368] sm:$0xff] }
 0x207   :  { %5438 = vmatmul.mubr.f32.vlgmr.msra.gmra.mxu0 %v7253_v22  ;;  %5461 = vmatprep.subr.mxu1 %v4012_v34  ;;  %v3317_v62 = vld [vmem:[#allocation3 + $0x21] sm:$0xff] }
 0x208   :  { %5517 = vmatprep.subr.mxu0 %v4028_v56  ;;  %5384 = vmatprep.mubr.f32.mxu1 %v7024_v5  ;;  %v4009_v5 = vld [vmem:[%s7887_s2 + $0x360] sm:$0xff] }
 0x209   :  { %5440 = vmatprep.mubr.f32.mxu0 %v7266_v63  ;;  %5462 = vmatpush3.msra.mxu1 %v4012_v34  ;;  %v4044_v34 = vld [vmem:[%s7887_s2 + $0x478] sm:$0xff] }
 0x20a   :  { %5518 = vmatpush3.msra.mxu0 %v4028_v56  ;;  %5463 = vmatprep.subr.mxu1 %v4011_v25  ;;  %v3318_v56 = vld [vmem:[#allocation3 + $0x31] sm:$0xff] }
 0x20b   :  { %5519 = vmatprep.subr.mxu0 %v4027_v2  ;;  %5464 = vmatpush3.msra.mxu1 %v4011_v25  ;;  %v3319_v25 = vld [vmem:[#allocation3 + $0x41] sm:$0xff] }
 0x20c   :  { %5520 = vmatpush3.msra.mxu0 %v4027_v2  ;;  %5385 = vmatmul.mubr.f32.gmra.mxu1 %v7010_v51  ;;  %v4008_v51 = vld [vmem:[%s7887_s2 + $0x358] sm:$0xff]  ;;  %v4042_v2 = vld [vmem:[%s7887_s2 + $0x468] sm:$0xff] }
 0x20d   :  { %5441 = vmatmul.mubr.f32.gmra.mxu0 %v7273_v24  ;;  %5465 = vmatprep.subr.mxu1 %v4010_v23 }
 0x20e   :  { %5521 = vmatprep.subr.mxu0 %v4026_v6  ;;  %5387 = vmatprep.mubr.f32.mxu1 %v7049_v16  ;;  %v4007_v16 = vld [vmem:[%s7887_s2 + $0x350] sm:$0xff] }
 0x20f   :  { %5443 = vmatprep.mubr.f32.mxu0 %v7286_v3  ;;  %5466 = vmatpush3.msra.mxu1 %v4010_v23  ;;  %v4041_v23 = vld [vmem:[%s7887_s2 + $0x460] sm:$0xff] }
 0x210   :  { %5522 = vmatpush3.msra.mxu0 %v4026_v6  ;;  %5467 = vmatprep.subr.mxu1 %v4009_v5  ;;  %v4040_v6 = vld [vmem:[%s7887_s2 + $0x458] sm:$0xff] }
 0x211   :  { %5523 = vmatprep.subr.mxu0 %v4025_v14  ;;  %5468 = vmatpush3.msra.mxu1 %v4009_v5  ;;  %v4039_v5 = vld [vmem:[%s7887_s2 + $0x450] sm:$0xff] }
 0x212   :  { %5524 = vmatpush3.msra.mxu0 %v4025_v14  ;;  %5388 = vmatmul.mubr.f32.gmra.mxu1 %v7039_v43  ;;  %v4006_v43 = vld [vmem:[%s7887_s2 + $0x348] sm:$0xff]  ;;  %v3130_v14 = vld [vmem:[#allocation3 + $0x90] sm:$0xff] }
 0x213   :  { %5444 = vmatmul.mubr.f32.gmra.mxu0 %v7293_v54  ;;  %5469 = vmatprep.subr.mxu1 %v4008_v51 }
 0x214   :  { %5525 = vmatprep.subr.mxu0 %v4024_v41  ;;  %5390 = vmatprep.mubr.f32.mxu1 %v7087_v39  ;;  %v7458_v39 = vld [vmem:[#allocation3 + $0x82] sm:$0xff] }
 0x215   :  { %5446 = vmatprep.mubr.f32.mxu0 %v7306_v55  ;;  %5470 = vmatpush3.msra.mxu1 %v4008_v51  ;;  %v3324_v51 = vld [vmem:[#allocation3 + $0x91] sm:$0xff] }
 0x216   :  { %5526 = vmatpush3.msra.mxu0 %v4024_v41  ;;  %5471 = vmatprep.subr.mxu1 %v4007_v16  ;;  %v4038_v41 = vld [vmem:[%s7887_s2 + $0x448] sm:$0xff] }
 0x217   :  { %5527 = vmatprep.subr.mxu0 %v4023_v31  ;;  %5472 = vmatpush3.msra.mxu1 %v4007_v16  ;;  %v4036_v16 = vld [vmem:[%s7887_s2 + $0x438] sm:$0xff] }
 0x218   :  { %5528 = vmatpush3.msra.mxu0 %v4023_v31  ;;  %5391 = vmatmul.mubr.f32.gmra.mxu1 %v1916_v7  ;;  %v4020_v7 = vld [vmem:[%s7887_s2 + $0x3b8] sm:$0xff] }
 0x219   :  { %5447 = vmatmul.mubr.f32.gmra.mxu0 %v7458_v39  ;;  %5473 = vmatprep.subr.mxu1 %v4006_v43  ;;  %v3326_v31 = vld [vmem:[#allocation3 + $0xd1] sm:$0xff] }
 0x21a   :  { %5529 = vmatprep.subr.mxu0 %v4022_v15  ;;  %5393 = vmatprep.mubr.f32.mxu1 %v7116_v50  ;;  %v4003_v50 = vld [vmem:[%s7887_s2 + $0x330] sm:$0xff] }
 0x21b   :  { %5449 = vmatprep.mubr.f32.mxu0 %v7325_v53  ;;  %5474 = vmatpush3.msra.mxu1 %v4006_v43  ;;  %v4019_v53 = vld [vmem:[%s7887_s2 + $0x3b0] sm:$0xff] }
 0x21c   :  { %5530 = vmatpush3.msra.mxu0 %v4022_v15  ;;  %5475 = vmatprep.subr.mxu1 %v4005_v26  ;;  %v4035_v43 = vld [vmem:[%s7887_s2 + $0x430] sm:$0xff]  ;;  %v4034_v15 = vld [vmem:[%s7887_s2 + $0x428] sm:$0xff] }
 0x21d   :  { %5531 = vmatprep.subr.mxu0 %v4021_v38  ;;  %5476 = vmatpush3.msra.mxu1 %v4005_v26  ;;  %v4032_v26 = vld [vmem:[%s7887_s2 + $0x418] sm:$0xff] }
 0x21e   :  { %5532 = vmatpush3.msra.mxu0 %v4021_v38  ;;  %5394 = vmatmul.mubr.f32.gmra.mxu1 %v7100_v9  ;;  %v4002_v9 = vld [vmem:[%s7887_s2 + $0x328] sm:$0xff]  ;;  %v3332_v38 = vld [vmem:[#allocation3 + $0x131] sm:$0xff] }
 0x21f   :  { %5450 = vmatmul.mubr.f32.gmra.mxu0 %v7332_v28  ;;  %5477 = vmatprep.subr.mxu1 %v4004_v37 }
 0x220   :  { %5533 = vmatprep.subr.mxu0 %v4020_v7  ;;  %5396 = vmatprep.mubr.f32.mxu1 %v7138_v11  ;;  %v4001_v11 = vld [vmem:[%s7887_s2 + $0x320] sm:$0xff] }
 0x221   :  { %5452 = vmatprep.mubr.f32.mxu0 %v7345_v57  ;;  %5478 = vmatpush3.msra.mxu1 %v4004_v37 }
 0x222   :  { %5534 = vmatpush3.msra.mxu0 %v4020_v7  ;;  %5479 = vmatprep.subr.mxu1 %v4003_v50 }
 0x223   :  { %5535 = vmatprep.subr.mxu0 %v4019_v53  ;;  %5480 = vmatpush3.msra.mxu1 %v4003_v50 }
 0x224   :  { %5536 = vmatpush3.msra.mxu0 %v4019_v53  ;;  %5397 = vmatmul.mubr.f32.gmra.mxu1 %v7127_v42  ;;  %v4000_v42 = vld [vmem:[%s7887_s2 + $0x318] sm:$0xff] }
 0x225   :  { %5453 = vmatmul.mubr.f32.gmra.mxu0 %v7352_v33  ;;  %5481 = vmatprep.subr.mxu1 %v4002_v9 }
 0x226   :  { %5537 = vmatprep.subr.mxu0 %v4018_v17  ;;  %5399 = vmatprep.mubr.f32.mxu1 %v7157_v21 }
 0x227   :  { %5455 = vmatprep.mubr.f32.mxu0 %v7365_v29  ;;  %5482 = vmatpush3.msra.mxu1 %v4002_v9 }
 0x228   :  { %5538 = vmatpush3.msra.mxu0 %v4018_v17  ;;  %5483 = vmatprep.subr.mxu1 %v4001_v11 }
 0x229   :  { %5539 = vmatprep.subr.mxu0 %v4017_v47  ;;  %5484 = vmatpush3.msra.mxu1 %v4001_v11 }
 0x22a   :  { %5540 = vmatpush3.msra.mxu0 %v4017_v47  ;;  %5400 = vmatmul.mubr.f32.gmra.mxu1 %v7150_v60  ;;  %v3998_v60 = vld [vmem:[%s7887_s2 + $0x308] sm:$0xff] }
 0x22b   :  { %5456 = vmatmul.mubr.f32.gmra.mxu0 %v7372_v36  ;;  %5485 = vmatprep.subr.mxu1 %v4000_v42 }
 0x22c   :  { %5541 = vmatprep.subr.mxu0 %v4016_v20  ;;  %5402 = vmatprep.mubr.f32.mxu1 %v7172_v32 }
 0x22d   :  { %5458 = vmatprep.mubr.f32.mxu0 %v7385_v12  ;;  %5486 = vmatpush3.msra.mxu1 %v4000_v42 }
 0x22e   :  { %5542 = vmatpush3.msra.mxu0 %v4016_v20  ;;  %5487 = vmatprep.subr.mxu1 %v3999_v1 }
 0x22f   :  { %5543 = vmatprep.subr.mxu0 %v4015_v10  ;;  %5488 = vmatpush3.msra.mxu1 %v3999_v1 }
 0x230   :  { %5544 = vmatpush3.msra.mxu0 %v4015_v10  ;;  %5403 = vmatmul.mubr.f32.gmra.mxu1 %v7165_v8 }
 0x231   :  { %5459 = vmatmul.mubr.f32.gmra.mxu0 %v7524_v45  ;;  %5489 = vmatprep.subr.mxu1 %v3998_v60 }
 0x232   :  { %5545 = vmatprep.subr.mxu0 %v4014_v52  ;;  %5490 = vmatpush3.msra.mxu1 %v3998_v60 }
 0x233   :  { %5493 = vmatprep.mubr.f32.mxu1 %v7072_v19  ;;  %5546 = vmatpush3.msra.mxu0 %v4014_v52  ;;  %v4043_v19 = vld [vmem:[%s7887_s2 + $0x470] sm:$0xff] }
 0x234   :  { %5549 = vmatprep.mubr.f32.mxu0 %v3317_v62  ;;  %5491 = vmatprep.subr.mxu1 %v3997_v49 }
 0x235   :  { %5547 = vmatprep.subr.mxu0 %v4013_v4  ;;  %5492 = vmatpush3.msra.mxu1 %v3997_v49 }
 0x236   :  { %5548 = vmatpush3.msra.mxu0 %v4013_v4  ;;  %5494 = vmatmul.mubr.f32.vlgmr.msra.gmra.mxu1 %v7091_v58  ;;  %v3320_v58 = vld [vmem:[#allocation3 + $0x51] sm:$0xff] }
 0x237   :  { %5550 = vmatmul.mubr.f32.vlgmr.msra.gmra.mxu0 %v3318_v56  ;;  %5573 = vmatprep.subr.mxu1 %v4044_v34 }
 0x238   :  { %5496 = vmatprep.mubr.f32.mxu1 %v7103_v44  ;;  %5552 = vmatprep.mubr.f32.mxu0 %v3319_v25  ;;  %v3321_v44 = vld [vmem:[#allocation3 + $0x61] sm:$0xff] }
 0x239   :  { %5574 = vmatpush3.msra.mxu1 %v4044_v34 }
 0x23a   :  { %5575 = vmatprep.subr.mxu1 %v4043_v19  ;;  %5497 = vmatmul.mubr.f32.gmra.mxu1 %v7119_v59  ;;  %v3322_v59 = vld [vmem:[#allocation3 + $0x71] sm:$0xff] }
 0x23b   :  { %5576 = vmatpush3.msra.mxu1 %v4043_v19  ;;  %5553 = vmatmul.mubr.f32.gmra.mxu0 %v3320_v58 }
 0x23c   :  { %5577 = vmatprep.subr.mxu1 %v4042_v2  ;;  %5499 = vmatprep.mubr.f32.mxu1 %v7130_v27  ;;  %v3323_v27 = vld [vmem:[#allocation3 + $0x81] sm:$0xff] }
 0x23d   :  { %5555 = vmatprep.mubr.f32.mxu0 %v3321_v44  ;;  %5578 = vmatpush3.msra.mxu1 %v4042_v2 }
 0x23e   :  { %5579 = vmatprep.subr.mxu1 %v4041_v23  ;;  %5500 = vmatmul.mubr.f32.gmra.mxu1 %v7144_v18  ;;  %v4037_v18 = vld [vmem:[%s7887_s2 + $0x440] sm:$0xff] }
 0x23f   :  { %5580 = vmatpush3.msra.mxu1 %v4041_v23  ;;  %5556 = vmatmul.mubr.f32.gmra.mxu0 %v3322_v59 }
 0x240   :  { %5581 = vmatprep.subr.mxu1 %v4040_v6  ;;  %5502 = vmatprep.mubr.f32.mxu1 %v7312_v48  ;;  %v3325_v48 = vld [vmem:[#allocation3 + $0xc1] sm:$0xff] }
 0x241   :  { %5558 = vmatprep.mubr.f32.mxu0 %v3323_v27  ;;  %5582 = vmatpush3.msra.mxu1 %v4040_v6 }
 0x242   :  { %5583 = vmatprep.subr.mxu1 %v4039_v5  ;;  %5503 = vmatmul.mubr.f32.gmra.mxu1 %v3130_v14 }
 0x243   :  { %5584 = vmatpush3.msra.mxu1 %v4039_v5  ;;  %5559 = vmatmul.mubr.f32.gmra.mxu0 %v3324_v51 }
 0x244   :  { %5585 = vmatprep.subr.mxu1 %v4038_v41  ;;  %5505 = vmatprep.mubr.f32.mxu1 %v7179_v13  ;;  %v3327_v13 = vld [vmem:[#allocation3 + $0xe1] sm:$0xff] }
 0x245   :  { %5561 = vmatprep.mubr.f32.mxu0 %v3325_v48  ;;  %5586 = vmatpush3.msra.mxu1 %v4038_v41 }
 0x246   :  { %5587 = vmatprep.subr.mxu1 %v4037_v18  ;;  %5506 = vmatmul.mubr.f32.gmra.mxu1 %v7186_v46  ;;  %v4033_v46 = vld [vmem:[%s7887_s2 + $0x420] sm:$0xff] }
 0x247   :  { %5588 = vmatpush3.msra.mxu1 %v4037_v18  ;;  %5562 = vmatmul.mubr.f32.gmra.mxu0 %v3326_v31 }
 0x248   :  { %5589 = vmatprep.subr.mxu1 %v4036_v16  ;;  %5508 = vmatprep.mubr.f32.mxu1 %v7200_v61  ;;  %v3329_v61 = vld [vmem:[#allocation3 + $0x101] sm:$0xff] }
 0x249   :  { %5564 = vmatprep.mubr.f32.mxu0 %v3327_v13  ;;  %5590 = vmatpush3.msra.mxu1 %v4036_v16 }
 0x24a   :  { %5591 = vmatprep.subr.mxu1 %v4035_v43  ;;  %5509 = vmatmul.mubr.f32.gmra.mxu1 %v7206_v40  ;;  %v3138_v40 = vld [vmem:[#allocation3 + $0x130] sm:$0xff] }
 0x24b   :  { %5592 = vmatpush3.msra.mxu1 %v4035_v43  ;;  %5565 = vmatmul.mubr.f32.gmra.mxu0 %v7157_v21  ;;  %v4031_v21 = vld [vmem:[%s7887_s2 + $0x410] sm:$0xff] }
 0x24c   :  { %5593 = vmatprep.subr.mxu1 %v4034_v15  ;;  %5511 = vmatprep.mubr.f32.mxu1 %v7220_v0  ;;  %v4030_v0 = vld [vmem:[%s7887_s2 + $0x408] sm:$0xff] }
 0x24d   :  { %5567 = vmatprep.mubr.f32.mxu0 %v3329_v61  ;;  %5594 = vmatpush3.msra.mxu1 %v4034_v15 }
 0x24e   :  { %5595 = vmatprep.subr.mxu1 %v4033_v46  ;;  %5512 = vmatmul.mubr.f32.gmra.mxu1 %v7226_v35 }
 0x24f   :  { %5596 = vmatpush3.msra.mxu1 %v4033_v46  ;;  %5568 = vmatmul.mubr.f32.gmra.mxu0 %v7172_v32  ;;  %v4029_v32 = vld [vmem:[%s7887_s2 + $0x400] sm:$0xff] }
 0x250   :  { %5597 = vmatprep.subr.mxu1 %v4032_v26  ;;  %5514 = vmatprep.mubr.f32.mxu1 %v7391_v30 }
 0x251   :  { %5570 = vmatprep.mubr.f32.mxu0 %v7165_v8  ;;  %5598 = vmatpush3.msra.mxu1 %v4032_v26  ;;  %v3518_v8 = vld [vmem:[#allocation3 + $0x92] sm:$0xff] }
 0x252   :  { %5599 = vmatprep.subr.mxu1 %v4031_v21  ;;  %5515 = vmatmul.mubr.f32.gmra.mxu1 %v3138_v40 }
 0x253   :  { %5600 = vmatpush3.msra.mxu1 %v4031_v21  ;;  %5605 = vmatprep.mubr.f32.mxu1 %v7253_v22 }
 0x254   :  { %5601 = vmatprep.subr.mxu1 %v4030_v0  ;;  %5571 = vmatmul.mubr.f32.gmra.mxu0 %v3332_v38 }
 0x255   :  { %5602 = vmatpush3.msra.mxu1 %v4030_v0 }
 0x256   :  { %5603 = vmatprep.subr.mxu1 %v4029_v32 }
 0x257   :  { %5604 = vmatpush3.msra.mxu1 %v4029_v32 }
 0x258   :  { %5606 = vmatmul.mubr.f32.vlgmr.msra.gmra.mxu1 %v7266_v63 }
 0x259   :  { %5608 = vmatprep.mubr.f32.mxu1 %v7273_v24 }
 0x25c   :  { %5609 = vmatmul.mubr.f32.gmra.mxu1 %v7286_v3 }
 0x25d   :  { %5611 = vmatprep.mubr.f32.mxu1 %v7293_v54 }
 0x260   :  { %5612 = vmatmul.mubr.f32.gmra.mxu1 %v7306_v55 }
 0x261   :  { %5614 = vmatprep.mubr.f32.mxu1 %v7458_v39 }
 0x264   :  { %5615 = vmatmul.mubr.f32.gmra.mxu1 %v3518_v8 }
 0x265   :  { %5617 = vmatprep.mubr.f32.mxu1 %v7332_v28  ;;  %v5159_v35 = vpop.f32.mrf.mxu1  ;;  %v3526_v28 = vld [vmem:[#allocation3 + $0x132] sm:$0xff] }
 0x267   :  { %v2122_v22 = vpop.f32.mrf.mxu1 }
 0x268   :  { %5618 = vmatmul.mubr.f32.gmra.mxu1 %v7345_v57 }
 0x269   :  { %5620 = vmatprep.mubr.f32.mxu1 %v7352_v33  ;;  %v5162_v63 = vpop.f32.mrf.mxu1 }
 0x26b   :  { %v2132_v24 = vpop.f32.mrf.mxu1 }
 0x26c   :  { %5621 = vmatmul.mubr.f32.gmra.mxu1 %v7365_v29 }
 0x26d   :  { %5623 = vmatprep.mubr.f32.mxu1 %v7372_v36  ;;  %v5215_v3 = vpop.f32.mrf.mxu0  ;;  %v5165_v39 = vpop.f32.mrf.mxu1 }
 0x26e   :  { %v2273_v54 = vadd.f32 %v5215_v3, %v5159_v35 }
 0x26f   :  { %v2267_v55 = vpop.f32.mrf.mxu0  ;;  %v2142_v50 = vpop.f32.mrf.mxu1 }
 0x270   :  { %5624 = vmatmul.mubr.f32.gmra.mxu1 %v7385_v12  ;;  %v2268_v30 = vadd.f32 %v2267_v55, %v2122_v22 }
 0x271   :  { %5626 = vmatprep.mubr.f32.mxu1 %v7524_v45  ;;  %v5218_v37 = vpop.f32.mrf.mxu0 }
 0x272   :  { %v2283_v57 = vadd.f32 %v5218_v37, %v5162_v63 }
 0x273   :  { %v2277_v7 = vpop.f32.mrf.mxu0 }
 0x274   :  { %5627 = vmatmul.mubr.f32.gmra.mxu1 %v3526_v28  ;;  %v2278_v33 = vadd.f32 %v2277_v7, %v2132_v24 }
 0x275   :  { %v5221_v29 = vpop.f32.mrf.mxu0 }
 0x276   :  { %v2293_v53 = vadd.f32 %v5221_v29, %v5165_v39 }
 0x277   :  { %v2287_v9 = vpop.f32.mrf.mxu0 }
 0x278   :  { %v2288_v36 = vadd.f32 %v2287_v9, %v2142_v50  ;;  %v5168_v17 = vpop.f32.mrf.mxu1 }
 0x279   :  { %v5224_v11 = vpop.f32.mrf.mxu0 }
 0x27a   :  { %v2303_v47 = vadd.f32 %v5224_v11, %v5168_v17  ;;  %v2152_v42 = vpop.f32.mrf.mxu1 }
 0x27b   :  { %v2297_v12 = vpop.f32.mrf.mxu0 }
 0x27c   :  { %v2298_v20 = vadd.f32 %v2297_v12, %v2152_v42 }
 0x27e   :  { %v5171_v1 = vpop.f32.mrf.mxu1 }
 0x27f   :  { %v5227_v10 = vpop.f32.mrf.mxu0 }
 0x280   :  { %v2313_v60 = vadd.f32 %v5227_v10, %v5171_v1  ;;  %v2162_v52 = vpop.f32.mrf.mxu1 }
 0x281   :  { %v2307_v45 = vpop.f32.mrf.mxu0 }
 0x282   :  { %v2308_v49 = vadd.f32 %v2307_v45, %v2162_v52 }
 0x284   :  { %v5174_v4 = vpop.f32.mrf.mxu1 }
 0x285   :  { %v5230_v62 = vpop.f32.mrf.mxu0 }
 0x286   :  { %v2323_v34 = vadd.f32 %v5230_v62, %v5174_v4  ;;  %v2172_v56 = vpop.f32.mrf.mxu1 }
 0x287   :  { %v2317_v25 = vpop.f32.mrf.mxu0 }
 0x288   :  { %v2318_v19 = vadd.f32 %v2317_v25, %v2172_v56 }
 0x28a   :  { %v5177_v2 = vpop.f32.mrf.mxu1 }
 0x28b   :  { %v5233_v58 = vpop.f32.mrf.mxu0 }
 0x28c   :  { %v2333_v23 = vadd.f32 %v5233_v58, %v5177_v2  ;;  %v2182_v44 = vpop.f32.mrf.mxu1 }
 0x28d   :  { %v2327_v6 = vpop.f32.mrf.mxu0 }
 0x28e   :  { %v2328_v59 = vadd.f32 %v2327_v6, %v2182_v44 }
 0x290   :  { %v5180_v5 = vpop.f32.mrf.mxu1 }
 0x291   :  { %v5236_v14 = vpop.f32.mrf.mxu0 }
 0x292   :  { %v2343_v27 = vadd.f32 %v5236_v14, %v5180_v5  ;;  %v2192_v51 = vpop.f32.mrf.mxu1 }
 0x293   :  { %v2337_v41 = vpop.f32.mrf.mxu0 }
 0x294   :  { %v2338_v18 = vadd.f32 %v2337_v41, %v2192_v51 }
 0x296   :  { %v5271_v48 = vpop.f32.mrf.mxu1 }
 0x297   :  { %v7612_v16 = vadd.f32 %v5271_v48, %v2273_v54  ;;  %v7614_v31 = vpop.f32.mrf.mxu0 }
 0x298   :  { %v2445_v43 = vpop.f32.mrf.mxu1 }
 0x299   :  { %v7616_v13 = vadd.f32 %v2445_v43, %v2268_v30  ;;  %v7618_v15 = vpop.f32.mrf.mxu0 }
 0x29c   :  { %v5274_v46 = vpop.f32.mrf.mxu1 }
 0x29d   :  { %v7620_v61 = vadd.f32 %v5274_v46, %v2283_v57  ;;  %v7622_v26 = vpop.f32.mrf.mxu0 }
 0x29e   :  { %v2455_v21 = vpop.f32.mrf.mxu1 }
 0x29f   :  { %v7624_v40 = vadd.f32 %v2455_v21, %v2278_v33  ;;  %v7626_v0 = vpop.f32.mrf.mxu0 }
 0x2a2   :  { %v5277_v38 = vpop.f32.mrf.mxu1 }
 0x2a3   :  { %v7628_v32 = vadd.f32 %v5277_v38, %v2293_v53  ;;  %v7630_v8 = vpop.f32.mrf.mxu0 }
 0x2a4   :  { %v2465_v35 = vpop.f32.mrf.mxu1 }
 0x2a5   :  { %v7632_v22 = vadd.f32 %v2465_v35, %v2288_v36  ;;  %v7634_v63 = vpop.f32.mrf.mxu0 }
 0x2a8   :  { %v5280_v24 = vpop.f32.mrf.mxu1 }
 0x2a9   :  { %v7636_v3 = vadd.f32 %v5280_v24, %v2303_v47  ;;  %v7638_v54 = vpop.f32.mrf.mxu0 }
 0x2aa   :  { %v2475_v55 = vpop.f32.mrf.mxu1 }
 0x2ab   :  { %v7640_v30 = vadd.f32 %v2475_v55, %v2298_v20  ;;  %v7642_v39 = vpop.f32.mrf.mxu0 }
 0x2ae   :  { %v5283_v28 = vpop.f32.mrf.mxu1 }
 0x2af   :  { %v7644_v37 = vadd.f32 %v5283_v28, %v2313_v60  ;;  %v7646_v57 = vpop.f32.mrf.mxu0 }
 0x2b0   :  { %v2485_v7 = vpop.f32.mrf.mxu1 }
 0x2b1   :  { %v7648_v33 = vadd.f32 %v2485_v7, %v2308_v49  ;;  %v7650_v50 = vpop.f32.mrf.mxu0 }
 0x2b4   :  { %v5286_v29 = vpop.f32.mrf.mxu1 }
 0x2b5   :  { %v7652_v53 = vadd.f32 %v5286_v29, %v2323_v34  ;;  %v7654_v9 = vpop.f32.mrf.mxu0 }
 0x2b6   :  { %v2495_v36 = vpop.f32.mrf.mxu1 }
 0x2b7   :  { %v7656_v17 = vadd.f32 %v2495_v36, %v2318_v19  ;;  %v7658_v11 = vpop.f32.mrf.mxu0 }
 0x2b8   :  { %7974 = vst [vmem:[#allocation38_spill] sm:$0xff] %v7658_v11 }
 0x2b9   :  { %7973 = vst [vmem:[#allocation19_spill] sm:$0xff] %v7656_v17 }
 0x2ba   :  { %v5289_v47 = vpop.f32.mrf.mxu1 }
 0x2bb   :  { %v7660_v42 = vadd.f32 %v5289_v47, %v2333_v23  ;;  %v7662_v12 = vpop.f32.mrf.mxu0 }
 0x2bc   :  { %7976 = vst [vmem:[#allocation6_spill] sm:$0xff] %v7662_v12  ;;  %v2505_v20 = vpop.f32.mrf.mxu1 }
 0x2bd   :  { %7975 = vst [vmem:[#allocation39_spill] sm:$0xff] %v7660_v42  ;;  %v7664_v1 = vadd.f32 %v2505_v20, %v2328_v59  ;;  %v7666_v10 = vpop.f32.mrf.mxu0 }
 0x2be   :  { %7978 = vst [vmem:[#allocation20_spill] sm:$0xff] %v7666_v10 }
 0x2bf   :  { %7977 = vst [vmem:[#allocation8_spill] sm:$0xff] %v7664_v1 }
 0x2c0   :  { %v5292_v60 = vpop.f32.mrf.mxu1 }
 0x2c1   :  { %v7668_v52 = vadd.f32 %v5292_v60, %v2343_v27  ;;  %v7670_v45 = vpop.f32.mrf.mxu0 }
 0x2c2   :  { %7980 = vst [vmem:[#allocation40_spill] sm:$0xff] %v7670_v45  ;;  %v2515_v49 = vpop.f32.mrf.mxu1 }
 0x2c3   :  { %7979 = vst [vmem:[#allocation21_spill] sm:$0xff] %v7668_v52  ;;  %v7672_v4 = vadd.f32 %v2515_v49, %v2338_v18  ;;  %v7674_v62 = vpop.f32.mrf.mxu0 }
 0x2c4   :  { %7982 = vst [vmem:[#allocation9_spill] sm:$0xff] %v7674_v62 }
 0x2c5   :  { %7981 = vst [vmem:[#allocation7_spill] sm:$0xff] %v7672_v4 }
 0x2c6   :  { %v5383_v34 = vpop.f32.mrf.mxu1 }
 0x2c7   :  { %v5439_v56 = vpop.f32.mrf.mxu0 }
 0x2c8   :  { %v2833_v25 = vpop.f32.mrf.mxu1 }
 0x2c9   :  { %v3027_v19 = vpop.f32.mrf.mxu0 }
 0x2cc   :  { %v5386_v2 = vpop.f32.mrf.mxu1 }
 0x2cd   :  { %v7676_v58 = vpop.f32.mrf.mxu0 }
 0x2ce   :  { %v7678_v23 = vpop.f32.mrf.mxu1 }
 0x2cf   :  { %v7680_v44 = vpop.f32.mrf.mxu0 }
 0x2d2   :  { %v7682_v6 = vpop.f32.mrf.mxu1 }
 0x2d3   :  { %v7684_v59 = vpop.f32.mrf.mxu0 }
 0x2d4   :  { %v7686_v5 = vpop.f32.mrf.mxu1 }
 0x2d5   :  { %v7688_v14 = vpop.f32.mrf.mxu0 }
 0x2d8   :  { %v7690_v27 = vpop.f32.mrf.mxu1 }
 0x2d9   :  { %v7692_v51 = vpop.f32.mrf.mxu0 }
 0x2da   :  { %v7694_v41 = vpop.f32.mrf.mxu1 }
 0x2db   :  { %v7696_v18 = vpop.f32.mrf.mxu0 }
 0x2de   :  { %v7698_v48 = vpop.f32.mrf.mxu1 }
 0x2df   :  { %v7700_v43 = vpop.f32.mrf.mxu0 }
 0x2e0   :  { %v7702_v46 = vpop.f32.mrf.mxu1 }
 0x2e1   :  { %7983 = vst [vmem:[#allocation12_spill] sm:$0xff] %v7702_v46  ;;  %v7704_v21 = vpop.f32.mrf.mxu0 }
 0x2e2   :  { %7984 = vst [vmem:[#allocation22_spill] sm:$0xff] %v7704_v21  ;;  %v2719_v21 = vadd.f32 %v7614_v31, %v7612_v16  ;;  %v2720_v16 = vadd.f32 %v7626_v0, %v7624_v40 }
 0x2e4   :  { %v7706_v38 = vpop.f32.mrf.mxu1  ;;  %v2913_v17 = vadd.f32 %v5383_v34, %v2719_v21  ;;  %v2914_v21 = vadd.f32 %v7678_v23, %v2720_v16 }
 0x2e5   :  { %7985 = vst [vmem:[#allocation23_spill] sm:$0xff] %v7706_v38  ;;  %v7708_v35 = vpop.f32.mrf.mxu0 }
 0x2e6   :  { %7986 = vst [vmem:[#allocation42_spill] sm:$0xff] %v7708_v35  ;;  %v7710_v24 = vpop.f32.mrf.mxu1  ;;  %v3108_v0 = vadd.f32 %v7680_v44, %v2914_v21  ;;  %v8009_v21 = vld [vmem:[#allocation38_spill] sm:$0xff] }
 0x2e7   :  { %7987 = vst [vmem:[#allocation41_spill] sm:$0xff] %v7710_v24  ;;  %v7712_v55 = vpop.f32.mrf.mxu0 }
 0x2e8   :  { %7988 = vst [vmem:[#allocation10_spill] sm:$0xff] %v7712_v55 }
 0x2ea   :  { %v7714_v28 = vpop.f32.mrf.mxu1 }
 0x2eb   :  { %7989 = vst [vmem:[#allocation24_spill] sm:$0xff] %v7714_v28  ;;  %v7716_v7 = vpop.f32.mrf.mxu0 }
 0x2ec   :  { %7990 = vst [vmem:[#allocation25_spill] sm:$0xff] %v7716_v7  ;;  %v7718_v29 = vpop.f32.mrf.mxu1 }
 0x2ed   :  { %7991 = vst [vmem:[#allocation4_spill] sm:$0xff] %v7718_v29  ;;  %v7720_v36 = vpop.f32.mrf.mxu0 }
 0x2ee   :  { %7992 = vst [vmem:[#allocation43_spill] sm:$0xff] %v7720_v36 }
 0x2f0   :  { %v7722_v47 = vpop.f32.mrf.mxu1 }
 0x2f1   :  { %7993 = vst [vmem:[#allocation11_spill] sm:$0xff] %v7722_v47  ;;  %v7724_v20 = vpop.f32.mrf.mxu0 }
 0x2f2   :  { %7994 = vst [vmem:[#allocation13_spill] sm:$0xff] %v7724_v20  ;;  %v7726_v60 = vpop.f32.mrf.mxu1 }
 0x2f3   :  { %7995 = vst [vmem:[#allocation14_spill] sm:$0xff] %v7726_v60  ;;  %v7728_v49 = vpop.f32.mrf.mxu0 }
 0x2f4   :  { %7996 = vst [vmem:[#allocation26_spill] sm:$0xff] %v7728_v49 }
 0x2f6   :  { %v5495_v62 = vpop.f32.mrf.mxu1 }
 0x2f7   :  { %v5551_v4 = vpop.f32.mrf.mxu0 }
 0x2f8   :  { %v3222_v45 = vpop.f32.mrf.mxu1 }
 0x2f9   :  { %v3416_v52 = vpop.f32.mrf.mxu0 }
 0x2fa   :  { %v5498_v55 = vpop.f32.mrf.mxu1 }
 0x2fb   :  { %v5554_v10 = vpop.f32.mrf.mxu0 }
 0x2fc   :  { %v3232_v28 = vpop.f32.mrf.mxu1 }
 0x2fd   :  { %v3426_v29 = vpop.f32.mrf.mxu0 }
 0x2fe   :  { %v5501_v7 = vpop.f32.mrf.mxu1 }
 0x2ff   :  { %v5557_v20 = vpop.f32.mrf.mxu0 }
 0x300   :  { %v7730_v1 = vpop.f32.mrf.mxu1 }
 0x301   :  { %v7740_v49 = vpop.f32.mrf.mxu0 }
 0x302   :  { %v7732_v36 = vpop.f32.mrf.mxu1 }
 0x303   :  { %v7746_v42 = vpop.f32.mrf.mxu0 }
 0x304   :  { %v7734_v47 = vpop.f32.mrf.mxu1  ;;  %8002 = vst [vmem:[#allocation15_spill] sm:$0xff] %v7746_v42 }
 0x305   :  { %7997 = vst [vmem:[#allocation27_spill] sm:$0xff] %v7734_v47 }
 0x306   :  { %v7736_v24 = vpop.f32.mrf.mxu1 }
 0x307   :  { %7998 = vst [vmem:[#allocation44_spill] sm:$0xff] %v7736_v24  ;;  %v2718_v24 = vadd.f32 %v7618_v15, %v7616_v13  ;;  %v2723_v13 = vadd.f32 %v7630_v8, %v7628_v32  ;;  %v2725_v32 = vadd.f32 %v7638_v54, %v7636_v3 }
 0x308   :  { %v7738_v60 = vpop.f32.mrf.mxu1 }
 0x309   :  { %7999 = vst [vmem:[#allocation16_spill] sm:$0xff] %v7738_v60  ;;  %v7756_v60 = vpop.f32.mrf.mxu0  ;;  %v2912_v42 = vadd.f32 %v2833_v25, %v2718_v24  ;;  %v2726_v24 = vadd.f32 %v7650_v50, %v7648_v33  ;;  %v8005_v50 = vld [vmem:[#allocation12_spill] sm:$0xff] }
 0x30a   :  { %v7742_v35 = vpop.f32.mrf.mxu1 }
 0x30b   :  { %8000 = vst [vmem:[#allocation28_spill] sm:$0xff] %v7742_v35  ;;  %v3107_v35 = vadd.f32 %v5439_v56, %v2913_v17  ;;  %v3106_v31 = vadd.f32 %v3027_v19, %v2912_v42  ;;  %v7768_v15 = vpop.f32.mrf.mxu0  ;;  %v2722_v17 = vadd.f32 %v7634_v63, %v7632_v22  ;;  %v2917_v56 = vadd.f32 %v7682_v6, %v2723_v13 }
 0x30c   :  { %v7744_v12 = vpop.f32.mrf.mxu1  ;;  %v3303_v22 = vadd.f32 %v3232_v28, %v3108_v0 }
 0x30d   :  { %8001 = vst [vmem:[#allocation29_spill] sm:$0xff] %v7744_v12  ;;  %v2721_v12 = vadd.f32 %v7622_v26, %v7620_v61  ;;  %v3301_v26 = vadd.f32 %v3222_v45, %v3106_v31  ;;  %v3111_v8 = vadd.f32 %v7684_v59, %v2917_v56 }
 0x30e   :  { %v7748_v38 = vpop.f32.mrf.mxu1  ;;  %v3497_v3 = vadd.f32 %v3426_v29, %v3303_v22 }
 0x30f   :  { %8003 = vst [vmem:[#allocation17_spill] sm:$0xff] %v7748_v38  ;;  %v3302_v38 = vadd.f32 %v5495_v62, %v3107_v35  ;;  %v3495_v42 = vadd.f32 %v3416_v52, %v3301_v26  ;;  %v3306_v54 = vadd.f32 %v5501_v7, %v3111_v8  ;;  %v2729_v7 = vadd.f32 %v7654_v9, %v7652_v53  ;;  %v8010_v53 = vld [vmem:[#allocation22_spill] sm:$0xff] }
 0x310   :  { %v7752_v11 = vpop.f32.mrf.mxu1 }
 0x311   :  { %8004 = vst [vmem:[#allocation30_spill] sm:$0xff] %v7752_v11  ;;  %v2915_v11 = vadd.f32 %v5386_v2, %v2721_v12  ;;  %v3496_v61 = vadd.f32 %v5551_v4, %v3302_v38  ;;  %v7780_v4 = vpop.f32.mrf.mxu0  ;;  %v2724_v2 = vadd.f32 %v7642_v39, %v7640_v30 }
 0x312   :  { %v7758_v47 = vpop.f32.mrf.mxu1 }
 0x313   :  { %v3109_v34 = vadd.f32 %v7676_v58, %v2915_v11  ;;  %v2916_v11 = vadd.f32 %v7686_v5, %v2722_v17  ;;  %v2919_v58 = vadd.f32 %v7690_v27, %v2725_v32  ;;  %v2918_v30 = vadd.f32 %v7694_v41, %v2724_v2  ;;  %v5566_v39 = vpop.f32.mrf.mxu0  ;;  %v8014_v32 = vld [vmem:[#allocation6_spill] sm:$0xff] }
 0x314   :  { %v7762_v46 = vpop.f32.mrf.mxu1 }
 0x315   :  { %v3304_v12 = vadd.f32 %v5498_v55, %v3109_v34  ;;  %v3110_v52 = vadd.f32 %v7688_v14, %v2916_v11  ;;  %v3113_v59 = vadd.f32 %v7692_v51, %v2919_v58  ;;  %v3500_v14 = vadd.f32 %v5557_v20, %v3306_v54  ;;  %v3466_v29 = vpop.f32.mrf.mxu0  ;;  %v8006_v20 = vld [vmem:[#allocation15_spill] sm:$0xff]  ;;  %v8015_v11 = vld [vmem:[#allocation42_spill] sm:$0xff]  ;;  %v8019_v54 = vld [vmem:[#allocation20_spill] sm:$0xff] }
 0x316   :  { %v8008_v34 = vld [vmem:[#allocation19_spill] sm:$0xff] }
 0x317   :  { %v3498_v25 = vadd.f32 %v5554_v10, %v3304_v12  ;;  %v2727_v10 = vadd.f32 %v7646_v57, %v7644_v37  ;;  %v3305_v27 = vadd.f32 %v7730_v1, %v3110_v52  ;;  %v3112_v37 = vadd.f32 %v7696_v18, %v2918_v30 }
 0x318   :  { %v5607_v40 = vpop.f32.mrf.mxu1  ;;  %v3308_v55 = vadd.f32 %v7732_v36, %v3113_v59  ;;  %v2920_v18 = vadd.f32 %v8005_v50, %v2726_v24  ;;  %v8021_v59 = vld [vmem:[#allocation24_spill] sm:$0xff]  ;;  %v8023_v24 = vld [vmem:[#allocation21_spill] sm:$0xff] }
 0x319   :  { %v3690_v62 = vadd.f32 %v5607_v40, %v3496_v61  ;;  %v2921_v57 = vadd.f32 %v7698_v48, %v2727_v10  ;;  %v3499_v41 = vadd.f32 %v7740_v49, %v3305_v27  ;;  %v8007_v49 = vld [vmem:[#allocation27_spill] sm:$0xff]  ;;  %v2728_v61 = vadd.f32 %v8009_v21, %v8008_v34  ;;  %v8012_v40 = vld [vmem:[#allocation44_spill] sm:$0xff]  ;;  %v8027_v50 = vld [vmem:[#allocation29_spill] sm:$0xff] }
 0x31a   :  { %v3610_v45 = vpop.f32.mrf.mxu1  ;;  %v3502_v16 = vadd.f32 %v8006_v20, %v3308_v55  ;;  %v3307_v31 = vadd.f32 %v8007_v49, %v3112_v37  ;;  %v3114_v9 = vadd.f32 %v8010_v53, %v2920_v18  ;;  %v8022_v27 = vld [vmem:[#allocation28_spill] sm:$0xff]  ;;  %v8028_v20 = vld [vmem:[#allocation7_spill] sm:$0xff]  ;;  %v8032_v53 = vld [vmem:[#allocation17_spill] sm:$0xff] }
 0x31b   :  { %v3706_v63 = vmax.f32 %v3690_v62, 0.0  ;;  %v3689_v19 = vadd.f32 %v3610_v45, %v3495_v42  ;;  %v3115_v33 = vadd.f32 %v7700_v43, %v2921_v57  ;;  %v8011_v43 = vld [vmem:[#allocation23_spill] sm:$0xff]  ;;  %v8024_v37 = vld [vmem:[#allocation40_spill] sm:$0xff] }
 0x31c   :  { %v5610_v23 = vpop.f32.mrf.mxu1  ;;  %v2923_v26 = vadd.f32 %v8011_v43, %v2729_v7  ;;  %v3501_v56 = vadd.f32 %v7756_v60, %v3307_v31  ;;  %v8013_v62 = vld [vmem:[#allocation39_spill] sm:$0xff]  ;;  %v8017_v60 = vld [vmem:[#allocation16_spill] sm:$0xff]  ;;  %v2733_v57 = vadd.f32 %v8024_v37, %v8023_v24 }
 0x31d   :  { %3722 = vst [vmem:[%s7888_s3 + $0x8] sm:$0xff] %v3706_v63  ;;  %v3705_v44 = vmax.f32 %v3689_v19, 0.0  ;;  %v3692_v6 = vadd.f32 %v5610_v23, %v3498_v25  ;;  %v3310_v0 = vadd.f32 %v8012_v40, %v3115_v33  ;;  %v2731_v8 = vadd.f32 %v8014_v32, %v8013_v62  ;;  %v8016_v25 = vld [vmem:[#allocation41_spill] sm:$0xff]  ;;  %v5569_v63 = vpop.f32.mrf.mxu0  ;;  %v8026_v55 = vld [vmem:[#allocation4_spill] sm:$0xff]  ;;  %v8030_v31 = vld [vmem:[#allocation43_spill] sm:$0xff] }
 0x31e   :  { %v3620_v5 = vpop.f32.mrf.mxu1  ;;  %v3117_v45 = vadd.f32 %v8015_v11, %v2923_v26  ;;  %v2922_v22 = vadd.f32 %v8016_v25, %v2728_v61  ;;  %v3309_v52 = vadd.f32 %v8017_v60, %v3114_v9  ;;  %v8033_v26 = vld [vmem:[#allocation13_spill] sm:$0xff]  ;;  %v8035_v62 = vld [vmem:[#allocation30_spill] sm:$0xff] }
 0x31f   :  { %3721 = vst [vmem:[%s7888_s3] sm:$0xff] %v3705_v44  ;;  %v3708_v38 = vmax.f32 %v3692_v6, 0.0  ;;  %v3691_v35 = vadd.f32 %v3620_v5, %v3497_v3  ;;  %v3504_v2 = vadd.f32 %v7768_v15, %v3310_v0  ;;  %v8018_v3 = vld [vmem:[#allocation8_spill] sm:$0xff]  ;;  %v8020_v6 = vld [vmem:[#allocation10_spill] sm:$0xff]  ;;  %v2925_v30 = vadd.f32 %v8021_v59, %v2731_v8 }
 0x320   :  { %v5613_v51 = vpop.f32.mrf.mxu1  ;;  %v2730_v44 = vadd.f32 %v8019_v54, %v8018_v3  ;;  %v3116_v10 = vadd.f32 %v8020_v6, %v2922_v22  ;;  %v3312_v15 = vadd.f32 %v8022_v27, %v3117_v45  ;;  %v8036_v11 = vld [vmem:[#allocation26_spill] sm:$0xff] }
 0x321   :  { %3724 = vst [vmem:[%s7888_s3 + $0x18] sm:$0xff] %v3708_v38  ;;  %v3707_v1 = vmax.f32 %v3691_v35, 0.0  ;;  %v3694_v28 = vadd.f32 %v5613_v51, %v3500_v14  ;;  %v3503_v14 = vadd.f32 %v7780_v4, %v3309_v52  ;;  %v8025_v51 = vld [vmem:[#allocation25_spill] sm:$0xff] }
 0x322   :  { %v3630_v48 = vpop.f32.mrf.mxu1  ;;  %v3506_v33 = vadd.f32 %v5566_v39, %v3312_v15  ;;  %v3311_v4 = vadd.f32 %v8027_v50, %v3116_v10 }
 0x323   :  { %3723 = vst [vmem:[%s7888_s3 + $0x10] sm:$0xff] %v3707_v1  ;;  %v3710_v36 = vmax.f32 %v3694_v28, 0.0  ;;  %v3693_v13 = vadd.f32 %v3630_v48, %v3499_v41  ;;  %v3119_v41 = vadd.f32 %v8025_v51, %v2925_v30  ;;  %v2924_v1 = vadd.f32 %v8026_v55, %v2730_v44  ;;  %v3476_v28 = vpop.f32.mrf.mxu0 }
 0x324   :  { %v5616_v17 = vpop.f32.mrf.mxu1  ;;  %v3505_v61 = vadd.f32 %v3466_v29, %v3311_v4 }
 0x325   :  { %3726 = vst [vmem:[%s7888_s3 + $0x28] sm:$0xff] %v3710_v36  ;;  %v3709_v42 = vmax.f32 %v3693_v13, 0.0  ;;  %v3696_v12 = vadd.f32 %v5616_v17, %v3502_v16  ;;  %v8029_v16 = vld [vmem:[#allocation9_spill] sm:$0xff]  ;;  %v3118_v36 = vadd.f32 %v8030_v31, %v2924_v1  ;;  %v8031_v13 = vld [vmem:[#allocation11_spill] sm:$0xff]  ;;  %v3314_v9 = vadd.f32 %v8032_v53, %v3119_v41  ;;  %v5572_v0 = vpop.f32.mrf.mxu0 }
 0x326   :  { %v3640_v19 = vpop.f32.mrf.mxu1  ;;  %v2732_v49 = vadd.f32 %v8029_v16, %v8028_v20  ;;  %v2927_v34 = vadd.f32 %v8031_v13, %v2733_v57 }
 0x327   :  { %3725 = vst [vmem:[%s7888_s3 + $0x20] sm:$0xff] %v3709_v42  ;;  %v3712_v58 = vmax.f32 %v3696_v12, 0.0  ;;  %v3695_v23 = vadd.f32 %v3640_v19, %v3501_v56  ;;  %v8034_v56 = vld [vmem:[#allocation14_spill] sm:$0xff]  ;;  %v3508_v12 = vadd.f32 %v5569_v63, %v3314_v9  ;;  %v3313_v32 = vadd.f32 %v8035_v62, %v3118_v36  ;;  %v3486_v60 = vpop.f32.mrf.mxu0 }
 0x328   :  { %v5619_v5 = vpop.f32.mrf.mxu1  ;;  %v3121_v17 = vadd.f32 %v8033_v26, %v2927_v34  ;;  %v2926_v40 = vadd.f32 %v8034_v56, %v2732_v49 }
 0x329   :  { %3728 = vst [vmem:[%s7888_s3 + $0x38] sm:$0xff] %v3712_v58  ;;  %v3711_v38 = vmax.f32 %v3695_v23, 0.0  ;;  %v3698_v35 = vadd.f32 %v5619_v5, %v3504_v2  ;;  %v3507_v22 = vadd.f32 %v3476_v28, %v3313_v32 }
 0x32a   :  { %v3650_v7 = vpop.f32.mrf.mxu1  ;;  %v3120_v45 = vadd.f32 %v8036_v11, %v2926_v40  ;;  %v3316_v19 = vadd.f32 %v7758_v47, %v3121_v17 }
 0x32b   :  { %3727 = vst [vmem:[%s7888_s3 + $0x30] sm:$0xff] %v3711_v38  ;;  %v3714_v18 = vmax.f32 %v3698_v35, 0.0  ;;  %v3697_v48 = vadd.f32 %v3650_v7, %v3503_v14 }
 0x32c   :  { %v5622_v21 = vpop.f32.mrf.mxu1  ;;  %v3315_v58 = vadd.f32 %v7762_v46, %v3120_v45  ;;  %v3510_v23 = vadd.f32 %v5572_v0, %v3316_v19 }
 0x32d   :  { %3730 = vst [vmem:[%s7888_s3 + $0x48] sm:$0xff] %v3714_v18  ;;  %v3713_v39 = vmax.f32 %v3697_v48, 0.0  ;;  %v3700_v43 = vadd.f32 %v5622_v21, %v3506_v33 }
 0x32e   :  { %v3660_v42 = vpop.f32.mrf.mxu1  ;;  %v3509_v6 = vadd.f32 %v3486_v60, %v3315_v58 }
 0x32f   :  { %3729 = vst [vmem:[%s7888_s3 + $0x40] sm:$0xff] %v3713_v39  ;;  %v3716_v29 = vmax.f32 %v3700_v43, 0.0  ;;  %v3699_v8 = vadd.f32 %v3660_v42, %v3505_v61 }
 0x330   :  { %v5625_v25 = vpop.f32.mrf.mxu1 }
 0x331   :  { %3732 = vst [vmem:[%s7888_s3 + $0x58] sm:$0xff] %v3716_v29  ;;  %v3715_v2 = vmax.f32 %v3699_v8, 0.0  ;;  %v3702_v63 = vadd.f32 %v5625_v25, %v3508_v12 }
 0x332   :  { %v3670_v52 = vpop.f32.mrf.mxu1 }
 0x333   :  { %3731 = vst [vmem:[%s7888_s3 + $0x50] sm:$0xff] %v3715_v2  ;;  %v3718_v3 = vmax.f32 %v3702_v63, 0.0  ;;  %v3701_v54 = vadd.f32 %v3670_v52, %v3507_v22 }
 0x334   :  { %v5628_v44 = vpop.f32.mrf.mxu1 }
 0x335   :  { %3734 = vst [vmem:[%s7888_s3 + $0x68] sm:$0xff] %v3718_v3  ;;  %v3717_v47 = vmax.f32 %v3701_v54, 0.0  ;;  %v3704_v10 = vadd.f32 %v5628_v44, %v3510_v23 }
 0x336   :  { %v3680_v59 = vpop.f32.mrf.mxu1 }
 0x337   :  { %3733 = vst [vmem:[%s7888_s3 + $0x60] sm:$0xff] %v3717_v47  ;;  %v3720_v46 = vmax.f32 %v3704_v10, 0.0  ;;  %v3703_v30 = vadd.f32 %v3680_v59, %v3509_v6 }
 0x339   :  { %3736 = vst [vmem:[%s7888_s3 + $0x78] sm:$0xff] %v3720_v46  ;;  %v3719_v5 = vmax.f32 %v3703_v30, 0.0 }
 0x33b   :  { %3735 = vst [vmem:[%s7888_s3 + $0x70] sm:$0xff] %v3719_v5 }

</bundles_post_ra>
